<compile_context>
chip_gen: v7x
topology: tpu7x:2x2x1
jax: 0.10.0
libtpu: 0.0.40
codegen_flags: <defaults>
</compile_context>

<pallas_src>
import jax
import jax.numpy as jnp
from jax.experimental import pallas as pl
from jax.experimental.pallas import tpu as pltpu


DIM_IN = 1280        # EfficientNet-b0 feature dim
FEAT_DIM = 128       # projection dim (SupCon default)
_HIDDEN_CHUNK = 256  # matches the 2x256^2 MXU tiling on v6e/v7x; 1280 -> 5 chunks


# ----------------------------------------------------------------------------- kernel
def _head_kernel(x_ref, w1_ref, b1_ref, w2_ref, b2_ref, o_ref):
    # x_ref : (TB, 1280) f32  (cast to bf16 in-kernel; VPU cast is a free slot)
    # w1_ref: (1280, 1280) bf16   b1_ref: (1, 1280) f32
    # w2_ref: (1280, 128) bf16    b2_ref: (1, 128) f32
    # o_ref : (TB, 128) f32
    x = x_ref[...].astype(jnp.bfloat16)

    tb = x_ref.shape[0]
    feat_dim = o_ref.shape[1]
    n_chunks = DIM_IN // _HIDDEN_CHUNK

    # Chunk the 1280-wide hidden dim: interleave fc1/fc2 on the MXU and keep only a
    # (tb, 256) slice of the intermediate activation alive per iteration. 5 static
    # iterations, fully unrolled at trace time (static ref slices are views).
    z = jnp.zeros((tb, feat_dim), jnp.float32)
    for c in range(n_chunks):
        lo = c * _HIDDEN_CHUNK
        hi = lo + _HIDDEN_CHUNK
        # fc1 chunk: (TB,1280) @ (1280,256) -> f32 accumulate; bias + ReLU on the VPU.
        h_c = jnp.dot(x, w1_ref[:, lo:hi], preferred_element_type=jnp.float32)
        h_c = jnp.maximum(h_c + b1_ref[:, lo:hi], 0.0)
        # fc2 chunk: feed MXU in bf16, accumulate into z in f32.
        z = z + jnp.dot(h_c.astype(jnp.bfloat16), w2_ref[lo:hi, :],
                        preferred_element_type=jnp.float32)
    z = z + b2_ref[...]

    # F.normalize(z, dim=1): z / max(||z||, eps). rsqrt goes to the EUP slot.
    sumsq = jnp.sum(z * z, axis=-1, keepdims=True)
    inv_norm = jax.lax.rsqrt(jnp.maximum(sumsq, 1e-24))
    o_ref[...] = (z * inv_norm).astype(o_ref.dtype)


# ----------------------------------------------------------------------------- wrapper
def _pick_batch_tile(B):
    """Core-aware batch tile: aim for >= 2 tiles (v7x has 2 TensorCores) while keeping
    tiles (16,128)-aligned for bf16 packing. Tiny batches get a single 16-row tile."""
    for tb in (512, 256, 128, 64, 32, 16):
        if B >= 2 * tb:
            return tb
    return 16


def prepare_head_params(w1, b1, w2, b2):
    """One-time parameter prep (NOT per call): transpose to (in, out) and cast to bf16."""
    return dict(
        w1_t=jnp.asarray(w1).T.astype(jnp.bfloat16),             # (1280, 1280)
        b1=jnp.asarray(b1).reshape(1, -1).astype(jnp.float32),   # (1, 1280)
        w2_t=jnp.asarray(w2).T.astype(jnp.bfloat16),             # (1280, feat)
        b2=jnp.asarray(b2).reshape(1, -1).astype(jnp.float32),   # (1, feat)
    )


def supcon_head_forward(features, params):
    """features: encoder output (B, 1280, 1, 1) (or any (B, ...) flattening to 1280).
    Returns L2-normalized projections (B, FEAT_DIM) in f32."""
    B = features.shape[0]
    x = features.reshape(B, -1).astype(jnp.float32)   # == feat.view(B, -1); stays f32
    assert x.shape[1] == DIM_IN, f"expected flattened dim {DIM_IN}, got {x.shape[1]}"
    assert DIM_IN % _HIDDEN_CHUNK == 0

    w1_t, b1 = params["w1_t"], params["b1"]
    w2_t, b2 = params["w2_t"], params["b2"]
    feat_dim = w2_t.shape[1]
    assert feat_dim % 128 == 0, "projection dim should be a multiple of 128 for lane-dense stores"

    # Core-aware batch tiling; pad ragged batches up to a tile multiple (zeros are harmless:
    # padded rows are computed and then sliced off; rsqrt(max(.,eps)) guards the zero rows).
    tb = _pick_batch_tile(B)
    B_pad = pl.cdiv(B, tb) * tb
    if B_pad != B:
        x = jnp.pad(x, ((0, B_pad - B), (0, 0)))
    grid = (B_pad // tb,)

    cost = pl.CostEstimate(
        flops=2 * B_pad * DIM_IN * (DIM_IN + feat_dim),
        transcendentals=B_pad,  # one rsqrt per row
        bytes_accessed=(x.size * 4                      # f32 activations (cast in-kernel)
                        + w1_t.size * 2 + w2_t.size * 2  # bf16 weights
                        + b1.size * 4 + b2.size * 4
                        + B_pad * feat_dim * 4),         # f32 output
    )

    out = pl.pallas_call(
        _head_kernel,
        out_shape=jax.ShapeDtypeStruct((B_pad, feat_dim), jnp.float32),
        grid=grid,
        in_specs=[
            # x: tiled over batch, default double-buffered stream.
            pl.BlockSpec((tb, DIM_IN), lambda i: (i, 0)),
            # Weights / biases: constant block index -> VMEM-resident across all batch tiles;
            # single-buffered (they never revolve, so a second buffer is wasted VMEM).
            pl.BlockSpec((DIM_IN, DIM_IN), lambda i: (0, 0),
                         pipeline_mode=pl.Buffered(buffer_count=1)),
            pl.BlockSpec((1, DIM_IN), lambda i: (0, 0),
                         pipeline_mode=pl.Buffered(buffer_count=1)),
            pl.BlockSpec((DIM_IN, feat_dim), lambda i: (0, 0),
                         pipeline_mode=pl.Buffered(buffer_count=1)),
            pl.BlockSpec((1, feat_dim), lambda i: (0, 0),
                         pipeline_mode=pl.Buffered(buffer_count=1)),
        ],
        out_specs=pl.BlockSpec((tb, feat_dim), lambda i: (i, 0)),
        compiler_params=pltpu.CompilerParams(
            dimension_semantics=("parallel",),          # shard batch tiles across TCs (v7x)
            vmem_limit_bytes=32 * 1024 * 1024,          # lifts v5e's 16 MiB scoped default
        ),
        cost_estimate=cost,
    )(x, w1_t, b1, w2_t, b2)

    return out[:B] if B_pad != B else out


# ----------------------------------------------------------------------------- params / reference
def init_params(key, feat_dim=FEAT_DIM):
    """Mimics nn.Linear init U(-1/sqrt(fan_in), 1/sqrt(fan_in)) for the mlp head."""
    k1, k2, k3, k4 = jax.random.split(key, 4)
    bound1 = 1.0 / jnp.sqrt(DIM_IN)
    bound2 = 1.0 / jnp.sqrt(DIM_IN)
    w1 = jax.random.uniform(k1, (DIM_IN, DIM_IN), jnp.float32, -bound1, bound1)
    b1 = jax.random.uniform(k2, (DIM_IN,), jnp.float32, -bound1, bound1)
    w2 = jax.random.uniform(k3, (feat_dim, DIM_IN), jnp.float32, -bound2, bound2)
    b2 = jax.random.uniform(k4, (feat_dim,), jnp.float32, -bound2, bound2)
    return w1, b1, w2, b2


def _reference(features, params):
    """Pure-JAX reference mirroring the kernel's bf16-input / f32-accumulate path."""
    B = features.shape[0]
    x = features.reshape(B, -1).astype(jnp.bfloat16)
    h = jnp.dot(x, params["w1_t"], preferred_element_type=jnp.float32) + params["b1"]
    h = jnp.maximum(h, 0.0)
    z = jnp.dot(h.astype(jnp.bfloat16), params["w2_t"],
                preferred_element_type=jnp.float32) + params["b2"]
    return z * jax.lax.rsqrt(jnp.maximum(jnp.sum(z * z, axis=-1, keepdims=True), 1e-24))


def _reference_f32(features, w1, b1, w2, b2):
    """Full-precision PyTorch-equivalent reference (for a loose sanity check).
    NOTE: the kernel's bf16 MXU inputs are a deliberate numerics change vs. the f32 head."""
    B = features.shape[0]
    x = features.reshape(B, -1)
    h = jnp.maximum(x @ w1.T + b1, 0.0)
    z = h @ w2.T + b2
    norm = jnp.sqrt(jnp.sum(z * z, axis=-1, keepdims=True))
    return z / jnp.maximum(norm, 1e-12)


# ----------------------------------------------------------------------------- main
if __name__ == "__main__":
    key = jax.random.PRNGKey(0)
    k_feat, k_param = jax.random.split(key)

    B = 2
    # Encoder output of EfficientNet-b0 with include_top=False: (B, 1280, 1, 1).
    # TODO(synk): the EfficientNet backbone itself is not implemented as a Pallas kernel.
    features = jax.random.normal(k_feat, (B, DIM_IN, 1, 1), jnp.float32)

    w1, b1, w2, b2 = init_params(k_param, FEAT_DIM)
    params = prepare_head_params(w1, b1, w2, b2)  # one-time prep (transpose + bf16 cast)

    out = supcon_head_forward(features, params)
    out = jax.block_until_ready(out)
    assert out.shape == (B, FEAT_DIM)

    # Exact-path check (same bf16-input / f32-accumulate precision as the kernel).
    ref = _reference(features, params)
    assert jnp.allclose(out, ref, atol=1e-3, rtol=1e-3), "mismatch vs matched-precision reference"

    # Loose sanity check against the full-f32 PyTorch-equivalent math.
    ref32 = _reference_f32(features, w1, b1, w2, b2)
    assert jnp.allclose(out, ref32, atol=3e-2, rtol=3e-2), "mismatch vs f32 reference"

    # Output rows are unit-norm (F.normalize semantics).
    norms = jnp.sqrt(jnp.sum(out * out, axis=-1))
    assert jnp.allclose(norms, 1.0, atol=1e-3)

    print("KERNEL_OK")
</pallas_src>

<mosaic_0001>
module attributes {stable_mosaic.version = 11 : i64} {
  func.func @_head_kernel(%arg0: i32, %arg1: memref<16x1280xf32, #tpu.memory_space<vmem>>, %arg2: memref<1280x1280xbf16, #tpu.memory_space<vmem>>, %arg3: memref<1x1280xf32, #tpu.memory_space<vmem>>, %arg4: memref<1280x128xbf16, #tpu.memory_space<vmem>>, %arg5: memref<1x128xf32, #tpu.memory_space<vmem>>, %arg6: memref<16x128xf32, #tpu.memory_space<vmem>>) attributes {dimension_semantics = [#tpu.dimension_semantics<parallel>], iteration_bounds = array<i64: 1>, scalar_prefetch = 0 : i64, scratch_operands = 0 : i64, tpu.core_type = #tpu.core_type<tc>, window_params = [{transform_indices = @transform_0, window_bounds = array<i64: 16, 1280>}, {pipeline_mode = #tpu.pipeline_mode<synchronous>, transform_indices = @transform_1, window_bounds = array<i64: 1280, 1280>}, {pipeline_mode = #tpu.pipeline_mode<synchronous>, transform_indices = @transform_2, window_bounds = array<i64: 1, 1280>}, {pipeline_mode = #tpu.pipeline_mode<synchronous>, transform_indices = @transform_3, window_bounds = array<i64: 1280, 128>}, {pipeline_mode = #tpu.pipeline_mode<synchronous>, transform_indices = @transform_4, window_bounds = array<i64: 1, 128>}, {transform_indices = @transform_5, window_bounds = array<i64: 16, 128>}]} {
    %c0 = arith.constant 0 : index
    %c0_0 = arith.constant 0 : index
    %0 = vector.load %arg1[%c0, %c0_0] : memref<16x1280xf32, #tpu.memory_space<vmem>>, vector<16x1280xf32>
    %1 = arith.truncf %0 : vector<16x1280xf32> to vector<16x1280xbf16>
    %cst = arith.constant 0.000000e+00 : f32
    %2 = vector.broadcast %cst : f32 to vector<16x128xf32>
    %c0_1 = arith.constant 0 : index
    %c0_2 = arith.constant 0 : index
    %3 = vector.load %arg2[%c0_1, %c0_2] : memref<1280x1280xbf16, #tpu.memory_space<vmem>>, vector<1280x256xbf16>
    %cst_3 = arith.constant dense<0.000000e+00> : vector<16x256xf32>
    %4 = tpu.matmul %1, %3, %cst_3 {dimension_numbers = #tpu.dot_dimension_numbers<[1], [0], [0], [1], [0, 0, 1, 1], [], []>} : vector<16x1280xbf16>, vector<1280x256xbf16>, vector<16x256xf32> -> vector<16x256xf32>
    %c0_4 = arith.constant 0 : index
    %c0_5 = arith.constant 0 : index
    %5 = vector.load %arg3[%c0_4, %c0_5] : memref<1x1280xf32, #tpu.memory_space<vmem>>, vector<1x256xf32>
    %6 = vector.broadcast %5 : vector<1x256xf32> to vector<16x256xf32>
    %7 = arith.addf %4, %6 : vector<16x256xf32>
    %cst_6 = arith.constant 0.000000e+00 : f32
    %8 = vector.broadcast %cst_6 : f32 to vector<16x256xf32>
    %9 = arith.maximumf %7, %8 : vector<16x256xf32>
    %10 = arith.truncf %9 : vector<16x256xf32> to vector<16x256xbf16>
    %c0_7 = arith.constant 0 : index
    %c0_8 = arith.constant 0 : index
    %11 = vector.load %arg4[%c0_7, %c0_8] : memref<1280x128xbf16, #tpu.memory_space<vmem>>, vector<256x128xbf16>
    %cst_9 = arith.constant dense<0.000000e+00> : vector<16x128xf32>
    %12 = tpu.matmul %10, %11, %cst_9 {dimension_numbers = #tpu.dot_dimension_numbers<[1], [0], [0], [1], [0, 0, 1, 1], [], []>} : vector<16x256xbf16>, vector<256x128xbf16>, vector<16x128xf32> -> vector<16x128xf32>
    %13 = arith.addf %2, %12 : vector<16x128xf32>
    %c0_10 = arith.constant 0 : index
    %c256 = arith.constant 256 : index
    %14 = vector.load %arg2[%c0_10, %c256] : memref<1280x1280xbf16, #tpu.memory_space<vmem>>, vector<1280x256xbf16>
    %cst_11 = arith.constant dense<0.000000e+00> : vector<16x256xf32>
    %15 = tpu.matmul %1, %14, %cst_11 {dimension_numbers = #tpu.dot_dimension_numbers<[1], [0], [0], [1], [0, 0, 1, 1], [], []>} : vector<16x1280xbf16>, vector<1280x256xbf16>, vector<16x256xf32> -> vector<16x256xf32>
    %c0_12 = arith.constant 0 : index
    %c256_13 = arith.constant 256 : index
    %16 = vector.load %arg3[%c0_12, %c256_13] : memref<1x1280xf32, #tpu.memory_space<vmem>>, vector<1x256xf32>
    %17 = vector.broadcast %16 : vector<1x256xf32> to vector<16x256xf32>
    %18 = arith.addf %15, %17 : vector<16x256xf32>
    %cst_14 = arith.constant 0.000000e+00 : f32
    %19 = vector.broadcast %cst_14 : f32 to vector<16x256xf32>
    %20 = arith.maximumf %18, %19 : vector<16x256xf32>
    %21 = arith.truncf %20 : vector<16x256xf32> to vector<16x256xbf16>
    %c256_15 = arith.constant 256 : index
    %c0_16 = arith.constant 0 : index
    %22 = vector.load %arg4[%c256_15, %c0_16] : memref<1280x128xbf16, #tpu.memory_space<vmem>>, vector<256x128xbf16>
    %cst_17 = arith.constant dense<0.000000e+00> : vector<16x128xf32>
    %23 = tpu.matmul %21, %22, %cst_17 {dimension_numbers = #tpu.dot_dimension_numbers<[1], [0], [0], [1], [0, 0, 1, 1], [], []>} : vector<16x256xbf16>, vector<256x128xbf16>, vector<16x128xf32> -> vector<16x128xf32>
    %24 = arith.addf %13, %23 : vector<16x128xf32>
    %c0_18 = arith.constant 0 : index
    %c512 = arith.constant 512 : index
    %25 = vector.load %arg2[%c0_18, %c512] : memref<1280x1280xbf16, #tpu.memory_space<vmem>>, vector<1280x256xbf16>
    %cst_19 = arith.constant dense<0.000000e+00> : vector<16x256xf32>
    %26 = tpu.matmul %1, %25, %cst_19 {dimension_numbers = #tpu.dot_dimension_numbers<[1], [0], [0], [1], [0, 0, 1, 1], [], []>} : vector<16x1280xbf16>, vector<1280x256xbf16>, vector<16x256xf32> -> vector<16x256xf32>
    %c0_20 = arith.constant 0 : index
    %c512_21 = arith.constant 512 : index
    %27 = vector.load %arg3[%c0_20, %c512_21] : memref<1x1280xf32, #tpu.memory_space<vmem>>, vector<1x256xf32>
    %28 = vector.broadcast %27 : vector<1x256xf32> to vector<16x256xf32>
    %29 = arith.addf %26, %28 : vector<16x256xf32>
    %cst_22 = arith.constant 0.000000e+00 : f32
    %30 = vector.broadcast %cst_22 : f32 to vector<16x256xf32>
    %31 = arith.maximumf %29, %30 : vector<16x256xf32>
    %32 = arith.truncf %31 : vector<16x256xf32> to vector<16x256xbf16>
    %c512_23 = arith.constant 512 : index
    %c0_24 = arith.constant 0 : index
    %33 = vector.load %arg4[%c512_23, %c0_24] : memref<1280x128xbf16, #tpu.memory_space<vmem>>, vector<256x128xbf16>
    %cst_25 = arith.constant dense<0.000000e+00> : vector<16x128xf32>
    %34 = tpu.matmul %32, %33, %cst_25 {dimension_numbers = #tpu.dot_dimension_numbers<[1], [0], [0], [1], [0, 0, 1, 1], [], []>} : vector<16x256xbf16>, vector<256x128xbf16>, vector<16x128xf32> -> vector<16x128xf32>
    %35 = arith.addf %24, %34 : vector<16x128xf32>
    %c0_26 = arith.constant 0 : index
    %c768 = arith.constant 768 : index
    %36 = vector.load %arg2[%c0_26, %c768] : memref<1280x1280xbf16, #tpu.memory_space<vmem>>, vector<1280x256xbf16>
    %cst_27 = arith.constant dense<0.000000e+00> : vector<16x256xf32>
    %37 = tpu.matmul %1, %36, %cst_27 {dimension_numbers = #tpu.dot_dimension_numbers<[1], [0], [0], [1], [0, 0, 1, 1], [], []>} : vector<16x1280xbf16>, vector<1280x256xbf16>, vector<16x256xf32> -> vector<16x256xf32>
    %c0_28 = arith.constant 0 : index
    %c768_29 = arith.constant 768 : index
    %38 = vector.load %arg3[%c0_28, %c768_29] : memref<1x1280xf32, #tpu.memory_space<vmem>>, vector<1x256xf32>
    %39 = vector.broadcast %38 : vector<1x256xf32> to vector<16x256xf32>
    %40 = arith.addf %37, %39 : vector<16x256xf32>
    %cst_30 = arith.constant 0.000000e+00 : f32
    %41 = vector.broadcast %cst_30 : f32 to vector<16x256xf32>
    %42 = arith.maximumf %40, %41 : vector<16x256xf32>
    %43 = arith.truncf %42 : vector<16x256xf32> to vector<16x256xbf16>
    %c768_31 = arith.constant 768 : index
    %c0_32 = arith.constant 0 : index
    %44 = vector.load %arg4[%c768_31, %c0_32] : memref<1280x128xbf16, #tpu.memory_space<vmem>>, vector<256x128xbf16>
    %cst_33 = arith.constant dense<0.000000e+00> : vector<16x128xf32>
    %45 = tpu.matmul %43, %44, %cst_33 {dimension_numbers = #tpu.dot_dimension_numbers<[1], [0], [0], [1], [0, 0, 1, 1], [], []>} : vector<16x256xbf16>, vector<256x128xbf16>, vector<16x128xf32> -> vector<16x128xf32>
    %46 = arith.addf %35, %45 : vector<16x128xf32>
    %c0_34 = arith.constant 0 : index
    %c1024 = arith.constant 1024 : index
    %47 = vector.load %arg2[%c0_34, %c1024] : memref<1280x1280xbf16, #tpu.memory_space<vmem>>, vector<1280x256xbf16>
    %cst_35 = arith.constant dense<0.000000e+00> : vector<16x256xf32>
    %48 = tpu.matmul %1, %47, %cst_35 {dimension_numbers = #tpu.dot_dimension_numbers<[1], [0], [0], [1], [0, 0, 1, 1], [], []>} : vector<16x1280xbf16>, vector<1280x256xbf16>, vector<16x256xf32> -> vector<16x256xf32>
    %c0_36 = arith.constant 0 : index
    %c1024_37 = arith.constant 1024 : index
    %49 = vector.load %arg3[%c0_36, %c1024_37] : memref<1x1280xf32, #tpu.memory_space<vmem>>, vector<1x256xf32>
    %50 = vector.broadcast %49 : vector<1x256xf32> to vector<16x256xf32>
    %51 = arith.addf %48, %50 : vector<16x256xf32>
    %cst_38 = arith.constant 0.000000e+00 : f32
    %52 = vector.broadcast %cst_38 : f32 to vector<16x256xf32>
    %53 = arith.maximumf %51, %52 : vector<16x256xf32>
    %54 = arith.truncf %53 : vector<16x256xf32> to vector<16x256xbf16>
    %c1024_39 = arith.constant 1024 : index
    %c0_40 = arith.constant 0 : index
    %55 = vector.load %arg4[%c1024_39, %c0_40] : memref<1280x128xbf16, #tpu.memory_space<vmem>>, vector<256x128xbf16>
    %cst_41 = arith.constant dense<0.000000e+00> : vector<16x128xf32>
    %56 = tpu.matmul %54, %55, %cst_41 {dimension_numbers = #tpu.dot_dimension_numbers<[1], [0], [0], [1], [0, 0, 1, 1], [], []>} : vector<16x256xbf16>, vector<256x128xbf16>, vector<16x128xf32> -> vector<16x128xf32>
    %57 = arith.addf %46, %56 : vector<16x128xf32>
    %c0_42 = arith.constant 0 : index
    %c0_43 = arith.constant 0 : index
    %58 = vector.load %arg5[%c0_42, %c0_43] : memref<1x128xf32, #tpu.memory_space<vmem>>, vector<1x128xf32>
    %59 = vector.broadcast %58 : vector<1x128xf32> to vector<16x128xf32>
    %60 = arith.addf %57, %59 : vector<16x128xf32>
    %61 = arith.mulf %60, %60 : vector<16x128xf32>
    %cst_44 = arith.constant dense<0.000000e+00> : vector<16xf32>
    %62 = vector.multi_reduction <add>, %61, %cst_44 [1] : vector<16x128xf32> to vector<16xf32>
    %63 = vector.shape_cast %62 : vector<16xf32> to vector<16x1xf32>
    %cst_45 = arith.constant 1.000000e-24 : f32
    %64 = vector.broadcast %cst_45 : f32 to vector<16x1xf32>
    %65 = arith.maximumf %63, %64 : vector<16x1xf32>
    %66 = math.rsqrt %65 : vector<16x1xf32>
    %67 = vector.broadcast %66 : vector<16x1xf32> to vector<16x128xf32>
    %68 = arith.mulf %60, %67 : vector<16x128xf32>
    %c0_46 = arith.constant 0 : index
    %c0_47 = arith.constant 0 : index
    %69 = vector.load %arg6[%c0_46, %c0_47] : memref<16x128xf32, #tpu.memory_space<vmem>>, vector<16x128xf32>
    tpu.vector_store %arg6[%c0_46, %c0_47], %68 {strides = array<i32>} : memref<16x128xf32, #tpu.memory_space<vmem>>, vector<16x128xf32>,
    return
  }
  func.func @transform_0(%arg0: i32) -> (i32, i32) {
    %c0_i32 = arith.constant 0 : i32
    %c0_i32_0 = arith.constant 0 : i32
    return %arg0, %c0_i32 : i32, i32
  }
  func.func @transform_1(%arg0: i32) -> (i32, i32) {
    %c0_i32 = arith.constant 0 : i32
    %c0_i32_0 = arith.constant 0 : i32
    %c0_i32_1 = arith.constant 0 : i32
    return %c0_i32, %c0_i32_0 : i32, i32
  }
  func.func @transform_2(%arg0: i32) -> (i32, i32) {
    %c0_i32 = arith.constant 0 : i32
    %c0_i32_0 = arith.constant 0 : i32
    %c0_i32_1 = arith.constant 0 : i32
    return %c0_i32, %c0_i32_0 : i32, i32
  }
  func.func @transform_3(%arg0: i32) -> (i32, i32) {
    %c0_i32 = arith.constant 0 : i32
    %c0_i32_0 = arith.constant 0 : i32
    %c0_i32_1 = arith.constant 0 : i32
    return %c0_i32, %c0_i32_0 : i32, i32
  }
  func.func @transform_4(%arg0: i32) -> (i32, i32) {
    %c0_i32 = arith.constant 0 : i32
    %c0_i32_0 = arith.constant 0 : i32
    %c0_i32_1 = arith.constant 0 : i32
    return %c0_i32, %c0_i32_0 : i32, i32
  }
  func.func @transform_5(%arg0: i32) -> (i32, i32) {
    %c0_i32 = arith.constant 0 : i32
    %c0_i32_0 = arith.constant 0 : i32
    return %arg0, %c0_i32 : i32, i32
  }
}

</mosaic_0001>

<bundles_post_ra>
// kernel: tpu_custom_call.1
= control target key start
LH: loop header
LB: loop body
LE: loop exit
PB: predicated region body
PF: predicated region fallthrough
CT: control target
= control target key end

     0   :  { %10 = vsyncpa [#allocation3], 0  ;;  %s9742_s0 = inlined_call_operand.hbm [shape: f32[16,1280], index: 0, kind: input, shape index: {}]   ;;  %s9743_s1 = inlined_call_operand.hbm [shape: bf16[1280,1280], index: 1, kind: input, shape index: {}]   ;;  %s9744_s2 = inlined_call_operand.hbm [shape: f32[1,1280], index: 2, kind: input, shape index: {}]   ;;  %s9745_s3 = inlined_call_operand.hbm [shape: bf16[1280,128], index: 3, kind: input, shape index: {}]   ;;  %s9746_s4 = inlined_call_operand.hbm [shape: f32[1,128], index: 4, kind: input, shape index: {}]   ;;  %s9747_s5 = inlined_call_operand.hbm [shape: f32[16,128], index: 5, kind: output, shape index: {}]  }
   0x1   :  { %11 = vsyncpa [#allocation6], 0 }
   0x2   :  { %12 = vsyncpa [#allocation9], 0 }
   0x3   :  { %13 = vsyncpa [#allocation4], 0  ;;  %s9503_s18 = smov [#allocation5]   ;;  %s9363_s22 = scalar_lea.hbm %s9743_s1, 102400 }
   0x4   :  { %s31_s19 = sshll.u32 %s9503_s18, 4  ;;  %p9364_p0 = scmp.ne.s32.totalorder %s9743_s1, %s9363_s22  ;;  %s32_s19 = int_to_ptr.vmem [resolvable:$true] %s31_s19 }
   0x5   :  { %p9367_p1 = scmp.lt.u32.totalorder %s9363_s22, %s9743_s1 }
   0x7   :  { %p9369_p2 = pnand %p9367_p1, %p9364_p0 }
   0x9   :  { %9372 = shalt.err (!%p9369_p2)
}
   0xa   :  { %s9373_s27 = scalar_lea.vmem %s32_s19, 102400  ;;  %p9378_p4 = scmp.lt.s32.totalorder %s32_s19, %s32_s19 }
   0xb   :  { %p9374_p3 = scmp.ne.s32.totalorder %s32_s19, %s9373_s27  ;;  %p9379_p5 = scmp.lt.s32.totalorder %s9373_s27, %s9373_s27 }
   0xd   :  { %p9380_p6 = por %p9379_p5, %p9378_p4 }
   0xf   :  { %p9381_p7 = pnand %p9380_p6, %p9374_p3 }
  0x11   :  { %9384 = shalt.err (!%p9381_p7)
}
  0x12   :  { %s9504_s28 = smov 640   ;;  %s9505_s29 = smov 40  }
  0x13   :  { %37 = dma.hbm_to_vmem [thread:$0]  %s9743_s1, 102400, %s32_s19, [#allocation6], %s9504_s28, %s9504_s28, %s9505_s29  }
  0x14   :  { %s9506_s7 = smov [#allocation8]   ;;  %s9385_s11 = scalar_lea.hbm %s9745_s3, 10240 }
  0x15   :  { %s53_s8 = sshll.u32 %s9506_s7, 4  ;;  %p9386_p8 = scmp.ne.s32.totalorder %s9745_s3, %s9385_s11  ;;  %s54_s8 = int_to_ptr.vmem [resolvable:$true] %s53_s8 }
  0x16   :  { %p9389_p9 = scmp.lt.u32.totalorder %s9385_s11, %s9745_s3 }
  0x18   :  { %p9391_p10 = pnand %p9389_p9, %p9386_p8 }
  0x1a   :  { %9394 = shalt.err (!%p9391_p10)
}
  0x1b   :  { %s9395_s16 = scalar_lea.vmem %s54_s8, 10240  ;;  %p9400_p12 = scmp.lt.s32.totalorder %s54_s8, %s54_s8 }
  0x1c   :  { %p9396_p11 = scmp.ne.s32.totalorder %s54_s8, %s9395_s16  ;;  %p9401_p13 = scmp.lt.s32.totalorder %s9395_s16, %s9395_s16 }
  0x1e   :  { %p9402_p0 = por %p9401_p13, %p9400_p12 }
  0x20   :  { %p9403_p1 = pnand %p9402_p0, %p9396_p11 }
  0x22   :  { %9406 = shalt.err (!%p9403_p1)
}
  0x23   :  { %s9507_s1 = smov 64   ;;  %s9508_s17 = smov 4  }
  0x24   :  { %59 = dma.hbm_to_vmem [thread:$0]  %s9745_s3, 10240, %s54_s8, [#allocation9], %s9507_s1, %s9507_s1, %s9508_s17  }
  0x25   :  { %s9509_s20 = smov [#allocation2]   ;;  %s9407_s24 = scalar_lea.hbm %s9742_s0, 2560 }
  0x26   :  { %s19_s21 = sshll.u32 %s9509_s20, 4  ;;  %p9408_p2 = scmp.ne.s32.totalorder %s9742_s0, %s9407_s24  ;;  %s20_s21 = int_to_ptr.vmem [resolvable:$true] %s19_s21 }
  0x27   :  { %p9411_p3 = scmp.lt.u32.totalorder %s9407_s24, %s9742_s0 }
  0x29   :  { %p9413_p4 = pnand %p9411_p3, %p9408_p2 }
  0x2b   :  { %9416 = shalt.err (!%p9413_p4)
}
  0x2c   :  { %s9417_s29 = scalar_lea.vmem %s20_s21, 2560  ;;  %p9422_p6 = scmp.lt.s32.totalorder %s20_s21, %s20_s21 }
  0x2d   :  { %p9418_p5 = scmp.ne.s32.totalorder %s20_s21, %s9417_s29  ;;  %p9423_p7 = scmp.lt.s32.totalorder %s9417_s29, %s9417_s29 }
  0x2f   :  { %p9424_p8 = por %p9423_p7, %p9422_p6 }
  0x31   :  { %p9425_p9 = pnand %p9424_p8, %p9418_p5 }
  0x33   :  { %9428 = shalt.err (!%p9425_p9)
}
  0x34   :  { %s9510_s3 = smov 1280   ;;  %s9511_s30 = smov 80  }
  0x35   :  { %25 = dma.hbm_to_vmem [thread:$0]  %s9742_s0, 2560, %s20_s21, [#allocation3], %s9510_s3, %s9510_s3, %s9511_s30  }
  0x36   :  { %s9512_s8 = smov [#allocation7]   ;;  %s9513_s10 = smov [#allocation10]  }
  0x37   :  { %s44_s9 = sshll.u32 %s9512_s8, 4  ;;  %s66_s11 = sshll.u32 %s9513_s10, 4  ;;  %s45_s9 = int_to_ptr.vmem [resolvable:$true] %s44_s9  ;;  %s67_s11 = int_to_ptr.vmem [resolvable:$true] %s66_s11 }
  0x38   :  { %s9429_s14 = scalar_lea.hbm %s9744_s2, 160 }
  0x39   :  { %p9430_p10 = scmp.ne.s32.totalorder %s9744_s2, %s9429_s14  ;;  %p9433_p11 = scmp.lt.u32.totalorder %s9429_s14, %s9744_s2 }
  0x3b   :  { %p9435_p12 = pnand %p9433_p11, %p9430_p10 }
  0x3d   :  { %9438 = shalt.err (!%p9435_p12)
}
  0x3e   :  { %s9439_s0 = scalar_lea.vmem %s45_s9, 160  ;;  %p9444_p0 = scmp.lt.s32.totalorder %s45_s9, %s45_s9 }
  0x3f   :  { %p9440_p13 = scmp.ne.s32.totalorder %s45_s9, %s9439_s0  ;;  %p9445_p1 = scmp.lt.s32.totalorder %s9439_s0, %s9439_s0 }
  0x41   :  { %p9446_p2 = por %p9445_p1, %p9444_p0 }
  0x43   :  { %p9447_p3 = pnand %p9446_p2, %p9440_p13 }
  0x45   :  { %9450 = shalt.err (!%p9447_p3)
}
  0x46   :  { %47 = dma.hbm_to_vmem [thread:$0]  %s9744_s2, 160, %s45_s9, [#allocation6]  }
  0x47   :  { %s9451_s22 = scalar_lea.hbm %s9746_s4, 16 }
  0x48   :  { %p9452_p4 = scmp.ne.s32.totalorder %s9746_s4, %s9451_s22  ;;  %p9455_p5 = scmp.lt.u32.totalorder %s9451_s22, %s9746_s4 }
  0x4a   :  { %p9457_p6 = pnand %p9455_p5, %p9452_p4 }
  0x4c   :  { %9460 = shalt.err (!%p9457_p6)
}
  0x4d   :  { %s9461_s27 = scalar_lea.vmem %s67_s11, 16  ;;  %s9465_s28 = scalar_lea.vmem %s67_s11, 32 }
  0x4e   :  { %p9462_p7 = scmp.ne.s32.totalorder %s67_s11, %s9461_s27  ;;  %p9466_p8 = scmp.lt.s32.totalorder %s67_s11, %s67_s11 }
  0x4f   :  { %p9467_p9 = scmp.lt.s32.totalorder %s9465_s28, %s9461_s27 }
  0x51   :  { %p9468_p10 = por %p9467_p9, %p9466_p8 }
  0x53   :  { %p9469_p11 = pnand %p9468_p10, %p9462_p7 }
  0x55   :  { %9472 = shalt.err (!%p9469_p11)
}
  0x56   :  { %69 = dma.hbm_to_vmem [thread:$0]  %s9746_s4, 16, %s67_s11, [#allocation9]  }
  0x57   :  { %9495 = dma.done.wait [#allocation3], 2560  }
  0x58   :  { %9496 = vsyncadd [#allocation3], 4294964736 }
  0x59   :  { %9497 = dma.done.wait [#allocation6], 102560  }
  0x5a   :  { %9498 = vsyncadd [#allocation6], 4294864736 }
  0x5b   :  { %9499 = dma.done.wait [#allocation9], 10256  }
  0x5c   :  { %9500 = vsyncadd [#allocation9], 4294957040  ;;  %v8079_v0 = vld [vmem:[#allocation5 + $0x4] ss:$40 sps:$4 sm:$0xff]   ;;  %v8083_v2 = vld [vmem:[#allocation5] ss:$40 sps:$4 sm:$0xff]  }
  0x5d   :  { %v8081_v1 = vld [vmem:[#allocation5 + $0xa04] ss:$40 sps:$4 sm:$0xff]   ;;  %1088 = vmatprep.subr.bf16.mxu1 %v8079_v0  ;;  %v8084_v3 = vld [vmem:[#allocation5 + $0xa00] ss:$40 sps:$4 sm:$0xff]   ;;  %v8085_v4 = vld [vmem:[#allocation5 + $0x54] ss:$40 sps:$4 sm:$0xff]  }
  0x5e   :  { %1174 = vmatprep.subr.bf16.mxu0 %v8081_v1  ;;  %1089 = vmatpush1.bf16.msra.mxu1 %v8083_v2  ;;  %v8087_v5 = vld [vmem:[#allocation5 + $0xa54] ss:$40 sps:$4 sm:$0xff]   ;;  %v8089_v6 = vld [vmem:[#allocation5 + $0x50] ss:$40 sps:$4 sm:$0xff]   ;;  %v8091_v8 = vld [vmem:[#allocation5 + $0xa4] ss:$40 sps:$4 sm:$0xff]  }
  0x5f   :  { %1175 = vmatpush1.bf16.msra.mxu0 %v8084_v3  ;;  %1090 = vmatprep.subr.bf16.mxu1 %v8085_v4  ;;  %v8090_v7 = vld [vmem:[#allocation5 + $0xa50] ss:$40 sps:$4 sm:$0xff]   ;;  %v8093_v9 = vld [vmem:[#allocation5 + $0xaa4] ss:$40 sps:$4 sm:$0xff]   ;;  %v8095_v10 = vld [vmem:[#allocation5 + $0xa0] ss:$40 sps:$4 sm:$0xff]  }
  0x60   :  { %1176 = vmatprep.subr.bf16.mxu0 %v8087_v5  ;;  %v8096_v11 = vld [vmem:[#allocation5 + $0xaa0] ss:$40 sps:$4 sm:$0xff]   ;;  %v8097_v12 = vld [vmem:[#allocation5 + $0xf4] ss:$40 sps:$4 sm:$0xff]   ;;  %v8101_v14 = vld [vmem:[#allocation5 + $0xf0] ss:$40 sps:$4 sm:$0xff]  }
  0x61   :  { %v8099_v13 = vld [vmem:[#allocation5 + $0xaf4] ss:$40 sps:$4 sm:$0xff]   ;;  %v8102_v15 = vld [vmem:[#allocation5 + $0xaf0] ss:$40 sps:$4 sm:$0xff]   ;;  %v8103_v16 = vld [vmem:[#allocation5 + $0x144] ss:$40 sps:$4 sm:$0xff]  }
  0x62   :  { %1091 = vmatpush1.bf16.msra.mxu1 %v8089_v6  ;;  %v8105_v17 = vld [vmem:[#allocation5 + $0xb44] ss:$40 sps:$4 sm:$0xff]   ;;  %v8107_v18 = vld [vmem:[#allocation5 + $0x140] ss:$40 sps:$4 sm:$0xff]   ;;  %v8109_v20 = vld [vmem:[#allocation5 + $0x194] ss:$40 sps:$4 sm:$0xff]  }
  0x63   :  { %1177 = vmatpush1.bf16.msra.mxu0 %v8090_v7  ;;  %1092 = vmatprep.subr.bf16.mxu1 %v8091_v8  ;;  %v8108_v19 = vld [vmem:[#allocation5 + $0xb40] ss:$40 sps:$4 sm:$0xff]   ;;  %v8111_v21 = vld [vmem:[#allocation5 + $0xb94] ss:$40 sps:$4 sm:$0xff]   ;;  %v8113_v22 = vld [vmem:[#allocation5 + $0x190] ss:$40 sps:$4 sm:$0xff]  }
  0x64   :  { %1178 = vmatprep.subr.bf16.mxu0 %v8093_v9  ;;  %v8114_v23 = vld [vmem:[#allocation5 + $0xb90] ss:$40 sps:$4 sm:$0xff]   ;;  %v8115_v24 = vld [vmem:[#allocation5 + $0x1e4] ss:$40 sps:$4 sm:$0xff]   ;;  %v8119_v26 = vld [vmem:[#allocation5 + $0x1e0] ss:$40 sps:$4 sm:$0xff]  }
  0x65   :  { %v8117_v25 = vld [vmem:[#allocation5 + $0xbe4] ss:$40 sps:$4 sm:$0xff]   ;;  %v8120_v27 = vld [vmem:[#allocation5 + $0xbe0] ss:$40 sps:$4 sm:$0xff]   ;;  %v8121_v28 = vld [vmem:[#allocation5 + $0x234] ss:$40 sps:$4 sm:$0xff]  }
  0x66   :  { %1093 = vmatpush1.bf16.msra.mxu1 %v8095_v10  ;;  %v8123_v29 = vld [vmem:[#allocation5 + $0xc34] ss:$40 sps:$4 sm:$0xff]   ;;  %v8125_v30 = vld [vmem:[#allocation5 + $0x230] ss:$40 sps:$4 sm:$0xff]   ;;  %v8127_v32 = vld [vmem:[#allocation5 + $0x284] ss:$40 sps:$4 sm:$0xff]  }
  0x67   :  { %1179 = vmatpush1.bf16.msra.mxu0 %v8096_v11  ;;  %1094 = vmatprep.subr.bf16.mxu1 %v8097_v12  ;;  %v8126_v31 = vld [vmem:[#allocation5 + $0xc30] ss:$40 sps:$4 sm:$0xff]   ;;  %v8129_v33 = vld [vmem:[#allocation5 + $0xc84] ss:$40 sps:$4 sm:$0xff]   ;;  %v8131_v34 = vld [vmem:[#allocation5 + $0x280] ss:$40 sps:$4 sm:$0xff]  }
  0x68   :  { %1180 = vmatprep.subr.bf16.mxu0 %v8099_v13  ;;  %v8132_v35 = vld [vmem:[#allocation5 + $0xc80] ss:$40 sps:$4 sm:$0xff]   ;;  %v8133_v36 = vld [vmem:[#allocation5 + $0x2d4] ss:$40 sps:$4 sm:$0xff]   ;;  %v8137_v38 = vld [vmem:[#allocation5 + $0x2d0] ss:$40 sps:$4 sm:$0xff]  }
  0x69   :  { %v8135_v37 = vld [vmem:[#allocation5 + $0xcd4] ss:$40 sps:$4 sm:$0xff]   ;;  %v8138_v39 = vld [vmem:[#allocation5 + $0xcd0] ss:$40 sps:$4 sm:$0xff]   ;;  %v8139_v40 = vld [vmem:[#allocation5 + $0x324] ss:$40 sps:$4 sm:$0xff]  }
  0x6a   :  { %1095 = vmatpush1.bf16.msra.mxu1 %v8101_v14  ;;  %v8141_v41 = vld [vmem:[#allocation5 + $0xd24] ss:$40 sps:$4 sm:$0xff]   ;;  %v8143_v42 = vld [vmem:[#allocation5 + $0x320] ss:$40 sps:$4 sm:$0xff]   ;;  %v8145_v44 = vld [vmem:[#allocation5 + $0x374] ss:$40 sps:$4 sm:$0xff]  }
  0x6b   :  { %1181 = vmatpush1.bf16.msra.mxu0 %v8102_v15  ;;  %1096 = vmatprep.subr.bf16.mxu1 %v8103_v16  ;;  %v8144_v43 = vld [vmem:[#allocation5 + $0xd20] ss:$40 sps:$4 sm:$0xff]   ;;  %v8147_v45 = vld [vmem:[#allocation5 + $0xd74] ss:$40 sps:$4 sm:$0xff]   ;;  %v8149_v46 = vld [vmem:[#allocation5 + $0x370] ss:$40 sps:$4 sm:$0xff]  }
  0x6c   :  { %1182 = vmatprep.subr.bf16.mxu0 %v8105_v17  ;;  %v8150_v47 = vld [vmem:[#allocation5 + $0xd70] ss:$40 sps:$4 sm:$0xff]   ;;  %v87_v48 = vld [vmem:[#allocation2 + $0x8] sm:$0xff]  ;;  %v8157_v58 = vld [vmem:[#allocation5 + $0x414] ss:$40 sps:$4 sm:$0xff]   ;;  %s9514_s4 = smov [#allocation11]  }
  0x6d   :  { %v97_v49 = vld [vmem:[#allocation2 + $0x58] sm:$0xff]  ;;  %v8151_v50 = vld [vmem:[#allocation5 + $0x3c4] ss:$40 sps:$4 sm:$0xff]   ;;  %v8155_v56 = vld [vmem:[#allocation5 + $0x3c0] ss:$40 sps:$4 sm:$0xff]   ;;  %s6960_s3 = sshll.u32 %s9514_s4, 4  ;;  %s6961_s3 = int_to_ptr.vmem [resolvable:$true] %s6960_s3 }
  0x6e   :  { %1097 = vmatpush1.bf16.msra.mxu1 %v8107_v18  ;;  %v8153_v51 = vld [vmem:[#allocation5 + $0xdc4] ss:$40 sps:$4 sm:$0xff]   ;;  %v9607_v52 = vpack.c.bf16 %v97_v49, %v87_v48  ;;  %v101_v54 = vld [vmem:[#allocation2 + $0x78] sm:$0xff]  ;;  %v8156_v57 = vld [vmem:[#allocation5 + $0xdc0] ss:$40 sps:$4 sm:$0xff]   ;;  %s9473_s30 = scalar_lea.vmem %s6961_s3, 256  ;;  %p9478_p13 = scmp.lt.s32.totalorder %s6961_s3, %s6961_s3 }
  0x6f   :  { %1183 = vmatpush1.bf16.msra.mxu0 %v8108_v19  ;;  %1098 = vmatprep.subr.bf16.mxu1 %v8109_v20  ;;  %v91_v53 = vld [vmem:[#allocation2 + $0x28] sm:$0xff]  ;;  %v8159_v59 = vld [vmem:[#allocation5 + $0xe14] ss:$40 sps:$4 sm:$0xff]   ;;  %v8161_v60 = vld [vmem:[#allocation5 + $0x410] ss:$40 sps:$4 sm:$0xff]   ;;  %p9474_p12 = scmp.ne.s32.totalorder %s6961_s3, %s9473_s30  ;;  %p9479_p0 = scmp.lt.s32.totalorder %s9473_s30, %s9473_s30 }
  0x70   :  { %1184 = vmatprep.subr.bf16.mxu0 %v8111_v21  ;;  %1120 = vmatprep.mubr.bf16.mxu1 %v9607_v52  ;;  %v9610_v55 = vpack.c.bf16 %v101_v54, %v91_v53  ;;  %v8162_v61 = vld [vmem:[#allocation5 + $0xe10] ss:$40 sps:$4 sm:$0xff]   ;;  %v8163_v62 = vld [vmem:[#allocation5 + $0x464] ss:$40 sps:$4 sm:$0xff]   ;;  %v8167_v0 = vld [vmem:[#allocation5 + $0x460] ss:$40 sps:$4 sm:$0xff]  }
  0x71   :  { %v8165_v63 = vld [vmem:[#allocation5 + $0xe64] ss:$40 sps:$4 sm:$0xff]   ;;  %v8168_v1 = vld [vmem:[#allocation5 + $0xe60] ss:$40 sps:$4 sm:$0xff]   ;;  %v8169_v2 = vld [vmem:[#allocation5 + $0x4b4] ss:$40 sps:$4 sm:$0xff]   ;;  %p9480_p1 = por %p9479_p0, %p9478_p13 }
  0x72   :  { %1099 = vmatpush1.bf16.msra.mxu1 %v8113_v22  ;;  %1206 = vmatprep.mubr.bf16.mxu0 %v9610_v55  ;;  %v8171_v3 = vld [vmem:[#allocation5 + $0xeb4] ss:$40 sps:$4 sm:$0xff]   ;;  %v8173_v4 = vld [vmem:[#allocation5 + $0x4b0] ss:$40 sps:$4 sm:$0xff]   ;;  %v86_v6 = vld [vmem:[#allocation2] sm:$0xff] }
  0x73   :  { %1185 = vmatpush1.bf16.msra.mxu0 %v8114_v23  ;;  %1100 = vmatprep.subr.bf16.mxu1 %v8115_v24  ;;  %v8174_v5 = vld [vmem:[#allocation5 + $0xeb0] ss:$40 sps:$4 sm:$0xff]   ;;  %v8177_v7 = vld [vmem:[#allocation5 + $0x504] ss:$40 sps:$4 sm:$0xff]   ;;  %v8175_v12 = vld [vmem:[#allocation5 + $0x500] ss:$40 sps:$4 sm:$0xff]   ;;  %p9481_p2 = pnand %p9480_p1, %p9474_p12 }
  0x74   :  { %1186 = vmatprep.subr.bf16.mxu0 %v8117_v25  ;;  %v96_v8 = vld [vmem:[#allocation2 + $0x50] sm:$0xff]  ;;  %v90_v9 = vld [vmem:[#allocation2 + $0x20] sm:$0xff] }
  0x75   :  { %v100_v10 = vld [vmem:[#allocation2 + $0x70] sm:$0xff]  ;;  %v8180_v11 = vld [vmem:[#allocation5 + $0xf04] ss:$40 sps:$4 sm:$0xff]   ;;  %v8178_v13 = vld [vmem:[#allocation5 + $0xf00] ss:$40 sps:$4 sm:$0xff]   ;;  %v9613_v14 = vpack.c.bf16 %v96_v8, %v86_v6 }
  0x76   :  { %1101 = vmatpush1.bf16.msra.mxu1 %v8119_v26  ;;  %v9615_v15 = vpack.c.bf16 %v100_v10, %v90_v9  ;;  %v8183_v16 = vld [vmem:[#allocation5 + $0x554] ss:$40 sps:$4 sm:$0xff]   ;;  %v8181_v18 = vld [vmem:[#allocation5 + $0x550] ss:$40 sps:$4 sm:$0xff]   ;;  %v8189_v20 = vld [vmem:[#allocation5 + $0x5a4] ss:$40 sps:$4 sm:$0xff]  }
  0x77   :  { %1187 = vmatpush1.bf16.msra.mxu0 %v8120_v27  ;;  %1102 = vmatprep.subr.bf16.mxu1 %v8121_v28  ;;  %v8186_v17 = vld [vmem:[#allocation5 + $0xf54] ss:$40 sps:$4 sm:$0xff]   ;;  %v8184_v19 = vld [vmem:[#allocation5 + $0xf50] ss:$40 sps:$4 sm:$0xff]   ;;  %v8192_v21 = vld [vmem:[#allocation5 + $0xfa4] ss:$40 sps:$4 sm:$0xff]  }
  0x78   :  { %1188 = vmatprep.subr.bf16.mxu0 %v8123_v29  ;;  %v8187_v22 = vld [vmem:[#allocation5 + $0x5a0] ss:$40 sps:$4 sm:$0xff]   ;;  %v8195_v24 = vld [vmem:[#allocation5 + $0x5f4] ss:$40 sps:$4 sm:$0xff]   ;;  %v8193_v26 = vld [vmem:[#allocation5 + $0x5f0] ss:$40 sps:$4 sm:$0xff]  }
  0x79   :  { %v8190_v23 = vld [vmem:[#allocation5 + $0xfa0] ss:$40 sps:$4 sm:$0xff]   ;;  %v8198_v25 = vld [vmem:[#allocation5 + $0xff4] ss:$40 sps:$4 sm:$0xff]   ;;  %v8196_v27 = vld [vmem:[#allocation5 + $0xff0] ss:$40 sps:$4 sm:$0xff]  }
  0x7a   :  { %1103 = vmatpush1.bf16.msra.mxu1 %v8125_v30  ;;  %v8201_v28 = vld [vmem:[#allocation5 + $0x644] ss:$40 sps:$4 sm:$0xff]   ;;  %v8199_v30 = vld [vmem:[#allocation5 + $0x640] ss:$40 sps:$4 sm:$0xff]   ;;  %v8217_v48 = vld [vmem:[#allocation5 + $0x730] ss:$40 sps:$4 sm:$0xff]  }
  0x7b   :  { %1189 = vmatpush1.bf16.msra.mxu0 %v8126_v31  ;;  %1104 = vmatprep.subr.bf16.mxu1 %v8127_v32  ;;  %v8204_v29 = vld [vmem:[#allocation5 + $0x1044] ss:$40 sps:$4 sm:$0xff]   ;;  %v8202_v31 = vld [vmem:[#allocation5 + $0x1040] ss:$40 sps:$4 sm:$0xff]   ;;  %v8207_v32 = vld [vmem:[#allocation5 + $0x694] ss:$40 sps:$4 sm:$0xff]  }
  0x7c   :  { %1190 = vmatprep.subr.bf16.mxu0 %v8129_v33  ;;  %v8210_v33 = vld [vmem:[#allocation5 + $0x1094] ss:$40 sps:$4 sm:$0xff]   ;;  %v8220_v49 = vld [vmem:[#allocation5 + $0x1130] ss:$40 sps:$4 sm:$0xff]   ;;  %v8223_v53 = vld [vmem:[#allocation5 + $0x780] ss:$40 sps:$4 sm:$0xff]  }
  0x7d   :  { %v8226_v54 = vld [vmem:[#allocation5 + $0x1180] ss:$40 sps:$4 sm:$0xff]   ;;  %v8255_v8 = vld [vmem:[#allocation5 + $0x914] ss:$40 sps:$4 sm:$0xff]   ;;  %v8253_v10 = vld [vmem:[#allocation5 + $0x910] ss:$40 sps:$4 sm:$0xff]  }
  0x7e   :  { %1105 = vmatpush1.bf16.msra.mxu1 %v8131_v34  ;;  %v8205_v34 = vld [vmem:[#allocation5 + $0x690] ss:$40 sps:$4 sm:$0xff]   ;;  %v8247_v6 = vld [vmem:[#allocation5 + $0x8c0] ss:$40 sps:$4 sm:$0xff]   ;;  %v8258_v9 = vld [vmem:[#allocation5 + $0x1314] ss:$40 sps:$4 sm:$0xff]  }
  0x7f   :  { %1191 = vmatpush1.bf16.msra.mxu0 %v8132_v35  ;;  %1106 = vmatprep.subr.bf16.mxu1 %v8133_v36  ;;  %v8208_v35 = vld [vmem:[#allocation5 + $0x1090] ss:$40 sps:$4 sm:$0xff]   ;;  %v8213_v36 = vld [vmem:[#allocation5 + $0x6e4] ss:$40 sps:$4 sm:$0xff]  }
  0x80   :  { %1192 = vmatprep.subr.bf16.mxu0 %v8135_v37  ;;  %v8216_v37 = vld [vmem:[#allocation5 + $0x10e4] ss:$40 sps:$4 sm:$0xff]  }
  0x82   :  { %1107 = vmatpush1.bf16.msra.mxu1 %v8137_v38  ;;  %v8211_v38 = vld [vmem:[#allocation5 + $0x6e0] ss:$40 sps:$4 sm:$0xff]  }
  0x83   :  { %1193 = vmatpush1.bf16.msra.mxu0 %v8138_v39  ;;  %1108 = vmatprep.subr.bf16.mxu1 %v8139_v40  ;;  %v8214_v39 = vld [vmem:[#allocation5 + $0x10e0] ss:$40 sps:$4 sm:$0xff]   ;;  %v8219_v40 = vld [vmem:[#allocation5 + $0x734] ss:$40 sps:$4 sm:$0xff]  }
  0x84   :  { %1194 = vmatprep.subr.bf16.mxu0 %v8141_v41  ;;  %v89_v41 = vld [vmem:[#allocation2 + $0x18] sm:$0xff] }
  0x86   :  { %1109 = vmatpush1.bf16.msra.mxu1 %v8143_v42  ;;  %v99_v42 = vld [vmem:[#allocation2 + $0x68] sm:$0xff] }
  0x87   :  { %1195 = vmatpush1.bf16.msra.mxu0 %v8144_v43  ;;  %1110 = vmatprep.subr.bf16.mxu1 %v8145_v44  ;;  %v8222_v43 = vld [vmem:[#allocation5 + $0x1134] ss:$40 sps:$4 sm:$0xff]   ;;  %v9619_v44 = vpack.c.bf16 %v99_v42, %v89_v41  ;;  %v8283_v41 = vld [vmem:[#allocation5 + $0x14a0] ss:$40 sps:$4 sm:$0xff]  }
  0x88   :  { %1196 = vmatprep.subr.bf16.mxu0 %v8147_v45  ;;  %v93_v45 = vld [vmem:[#allocation2 + $0x38] sm:$0xff]  ;;  %v8286_v42 = vld [vmem:[#allocation5 + $0xa8] ss:$40 sps:$4 sm:$0xff]  }
  0x8a   :  { %1111 = vmatpush1.bf16.msra.mxu1 %v8149_v46  ;;  %v103_v46 = vld [vmem:[#allocation2 + $0x88] sm:$0xff] }
  0x8b   :  { %1197 = vmatpush1.bf16.msra.mxu0 %v8150_v47  ;;  %1112 = vmatprep.subr.bf16.mxu1 %v8151_v50  ;;  %v9621_v47 = vpack.c.bf16 %v103_v46, %v93_v45  ;;  %v8225_v50 = vld [vmem:[#allocation5 + $0x784] ss:$40 sps:$4 sm:$0xff]   ;;  %v8289_v46 = vld [vmem:[#allocation5 + $0x14f0] ss:$40 sps:$4 sm:$0xff]  }
  0x8c   :  { %1198 = vmatprep.subr.bf16.mxu0 %v8153_v51  ;;  %v8228_v51 = vld [vmem:[#allocation5 + $0x1184] ss:$40 sps:$4 sm:$0xff]  }
  0x8d   :  { %v8294_v45 = vld [vmem:[#allocation5 + $0xfc] ss:$40 sps:$4 sm:$0xff]  }
  0x8e   :  { %1113 = vmatpush1.bf16.msra.mxu1 %v8155_v56  ;;  %v8231_v56 = vld [vmem:[#allocation5 + $0x7d4] ss:$40 sps:$4 sm:$0xff]  }
  0x8f   :  { %1199 = vmatpush1.bf16.msra.mxu0 %v8156_v57  ;;  %1114 = vmatprep.subr.bf16.mxu1 %v8157_v58  ;;  %v8234_v57 = vld [vmem:[#allocation5 + $0x11d4] ss:$40 sps:$4 sm:$0xff]   ;;  %v8229_v58 = vld [vmem:[#allocation5 + $0x7d0] ss:$40 sps:$4 sm:$0xff]  }
  0x90   :  { %1200 = vmatprep.subr.bf16.mxu0 %v8159_v59  ;;  %v8232_v59 = vld [vmem:[#allocation5 + $0x11d0] ss:$40 sps:$4 sm:$0xff]  }
  0x92   :  { %1115 = vmatpush1.bf16.msra.mxu1 %v8161_v60  ;;  %v8237_v60 = vld [vmem:[#allocation5 + $0x824] ss:$40 sps:$4 sm:$0xff]  }
  0x93   :  { %1201 = vmatpush1.bf16.msra.mxu0 %v8162_v61  ;;  %1116 = vmatprep.subr.bf16.mxu1 %v8163_v62  ;;  %v8240_v61 = vld [vmem:[#allocation5 + $0x1224] ss:$40 sps:$4 sm:$0xff]   ;;  %v8235_v62 = vld [vmem:[#allocation5 + $0x820] ss:$40 sps:$4 sm:$0xff]  }
  0x94   :  { %1202 = vmatprep.subr.bf16.mxu0 %v8165_v63  ;;  %v8238_v63 = vld [vmem:[#allocation5 + $0x1220] ss:$40 sps:$4 sm:$0xff]  }
  0x96   :  { %1117 = vmatpush1.bf16.msra.mxu1 %v8167_v0  ;;  %v8243_v0 = vld [vmem:[#allocation5 + $0x874] ss:$40 sps:$4 sm:$0xff]  }
  0x97   :  { %1203 = vmatpush1.bf16.msra.mxu0 %v8168_v1  ;;  %1118 = vmatprep.subr.bf16.mxu1 %v8169_v2  ;;  %v8246_v1 = vld [vmem:[#allocation5 + $0x1274] ss:$40 sps:$4 sm:$0xff]   ;;  %v8241_v2 = vld [vmem:[#allocation5 + $0x870] ss:$40 sps:$4 sm:$0xff]  }
  0x98   :  { %1204 = vmatprep.subr.bf16.mxu0 %v8171_v3  ;;  %v8244_v3 = vld [vmem:[#allocation5 + $0x1270] ss:$40 sps:$4 sm:$0xff]  }
  0x9a   :  { %1119 = vmatpush1.bf16.msra.mxu1 %v8173_v4  ;;  %v8249_v4 = vld [vmem:[#allocation5 + $0x8c4] ss:$40 sps:$4 sm:$0xff]  }
  0x9b   :  { %1205 = vmatpush1.bf16.msra.mxu0 %v8174_v5  ;;  %1131 = vmatprep.subr.bf16.mxu1 %v8177_v7  ;;  %v8252_v5 = vld [vmem:[#allocation5 + $0x12c4] ss:$40 sps:$4 sm:$0xff]   ;;  %v8250_v7 = vld [vmem:[#allocation5 + $0x12c0] ss:$40 sps:$4 sm:$0xff]  }
  0x9c   :  { %1217 = vmatprep.subr.bf16.mxu0 %v8180_v11  ;;  %v8256_v11 = vld [vmem:[#allocation5 + $0x1310] ss:$40 sps:$4 sm:$0xff]  }
  0x9d   :  { %1121 = vmatmul.mubr.bf16.vlgmr.msra.gmra.mrb[0].mxu1 %v9613_v14 }
  0x9e   :  { %1207 = vmatmul.mubr.bf16.vlgmr.msra.gmra.mrb[0].mxu0 %v9615_v15  ;;  %1132 = vmatpush1.bf16.msra.mxu1 %v8175_v12  ;;  %v8261_v12 = vld [vmem:[#allocation5 + $0x964] ss:$40 sps:$4 sm:$0xff]  }
  0x9f   :  { %1218 = vmatpush1.bf16.msra.mxu0 %v8178_v13  ;;  %1133 = vmatprep.subr.bf16.mxu1 %v8183_v16  ;;  %v8264_v13 = vld [vmem:[#allocation5 + $0x1364] ss:$40 sps:$4 sm:$0xff]   ;;  %v8259_v16 = vld [vmem:[#allocation5 + $0x960] ss:$40 sps:$4 sm:$0xff]  }
  0xa0   :  { %1219 = vmatprep.subr.bf16.mxu0 %v8186_v17  ;;  %1163 = vmatprep.mubr.bf16.mxu1 %v9619_v44  ;;  %v8262_v17 = vld [vmem:[#allocation5 + $0x1360] ss:$40 sps:$4 sm:$0xff]  }
  0xa1   :  { %1249 = vmatprep.mubr.bf16.mxu0 %v9621_v47 }
  0xa2   :  { %1134 = vmatpush1.bf16.msra.mxu1 %v8181_v18  ;;  %v8267_v18 = vld [vmem:[#allocation5 + $0x9b4] ss:$40 sps:$4 sm:$0xff]  }
  0xa3   :  { %1220 = vmatpush1.bf16.msra.mxu0 %v8184_v19  ;;  %1135 = vmatprep.subr.bf16.mxu1 %v8189_v20  ;;  %v8270_v19 = vld [vmem:[#allocation5 + $0x13b4] ss:$40 sps:$4 sm:$0xff]   ;;  %v8265_v20 = vld [vmem:[#allocation5 + $0x9b0] ss:$40 sps:$4 sm:$0xff]  }
  0xa4   :  { %1221 = vmatprep.subr.bf16.mxu0 %v8192_v21  ;;  %v8268_v21 = vld [vmem:[#allocation5 + $0x13b0] ss:$40 sps:$4 sm:$0xff]  }
  0xa6   :  { %1136 = vmatpush1.bf16.msra.mxu1 %v8187_v22  ;;  %v88_v22 = vld [vmem:[#allocation2 + $0x10] sm:$0xff] }
  0xa7   :  { %1222 = vmatpush1.bf16.msra.mxu0 %v8190_v23  ;;  %1137 = vmatprep.subr.bf16.mxu1 %v8195_v24  ;;  %v98_v23 = vld [vmem:[#allocation2 + $0x60] sm:$0xff] }
  0xa8   :  { %1223 = vmatprep.subr.bf16.mxu0 %v8198_v25  ;;  %v8273_v24 = vld [vmem:[#allocation5 + $0x1404] ss:$40 sps:$4 sm:$0xff]   ;;  %v92_v25 = vld [vmem:[#allocation2 + $0x30] sm:$0xff] }
  0xaa   :  { %1138 = vmatpush1.bf16.msra.mxu1 %v8193_v26  ;;  %v102_v26 = vld [vmem:[#allocation2 + $0x80] sm:$0xff] }
  0xab   :  { %1224 = vmatpush1.bf16.msra.mxu0 %v8196_v27  ;;  %1139 = vmatprep.subr.bf16.mxu1 %v8201_v28  ;;  %v8276_v27 = vld [vmem:[#allocation5 + $0xc] ss:$40 sps:$4 sm:$0xff]   ;;  %v9625_v28 = vpack.c.bf16 %v98_v23, %v88_v22  ;;  %v8343_v23 = vld [vmem:[#allocation5 + $0x17c0] ss:$40 sps:$4 sm:$0xff]  }
  0xac   :  { %1225 = vmatprep.subr.bf16.mxu0 %v8204_v29  ;;  %v8271_v29 = vld [vmem:[#allocation5 + $0x1400] ss:$40 sps:$4 sm:$0xff]   ;;  %v8348_v22 = vld [vmem:[#allocation5 + $0x3cc] ss:$40 sps:$4 sm:$0xff]  }
  0xae   :  { %1140 = vmatpush1.bf16.msra.mxu1 %v8199_v30  ;;  %v8274_v30 = vld [vmem:[#allocation5 + $0x8] ss:$40 sps:$4 sm:$0xff]  }
  0xaf   :  { %1226 = vmatpush1.bf16.msra.mxu0 %v8202_v31  ;;  %1141 = vmatprep.subr.bf16.mxu1 %v8207_v32  ;;  %v9627_v31 = vpack.c.bf16 %v102_v26, %v92_v25  ;;  %v8279_v32 = vld [vmem:[#allocation5 + $0x1454] ss:$40 sps:$4 sm:$0xff]  }
  0xb0   :  { %1227 = vmatprep.subr.bf16.mxu0 %v8210_v33  ;;  %v8282_v33 = vld [vmem:[#allocation5 + $0x5c] ss:$40 sps:$4 sm:$0xff]  }
  0xb1   :  { %v8351_v25 = vld [vmem:[#allocation5 + $0x1814] ss:$40 sps:$4 sm:$0xff]  }
  0xb2   :  { %1142 = vmatpush1.bf16.msra.mxu1 %v8205_v34  ;;  %v8277_v34 = vld [vmem:[#allocation5 + $0x1450] ss:$40 sps:$4 sm:$0xff]   ;;  %v8354_v26 = vld [vmem:[#allocation5 + $0x41c] ss:$40 sps:$4 sm:$0xff]  }
  0xb3   :  { %1228 = vmatpush1.bf16.msra.mxu0 %v8208_v35  ;;  %1143 = vmatprep.subr.bf16.mxu1 %v8213_v36  ;;  %v8280_v35 = vld [vmem:[#allocation5 + $0x58] ss:$40 sps:$4 sm:$0xff]   ;;  %v8285_v36 = vld [vmem:[#allocation5 + $0x14a4] ss:$40 sps:$4 sm:$0xff]  }
  0xb4   :  { %1229 = vmatprep.subr.bf16.mxu0 %v8216_v37  ;;  %v8288_v37 = vld [vmem:[#allocation5 + $0xac] ss:$40 sps:$4 sm:$0xff]  }
  0xb6   :  { %1144 = vmatpush1.bf16.msra.mxu1 %v8211_v38  ;;  %v95_v38 = vld [vmem:[#allocation2 + $0x48] sm:$0xff] }
  0xb7   :  { %1230 = vmatpush1.bf16.msra.mxu0 %v8214_v39  ;;  %1145 = vmatprep.subr.bf16.mxu1 %v8219_v40  ;;  %v105_v39 = vld [vmem:[#allocation2 + $0x98] sm:$0xff] }
  0xb8   :  { %1231 = vmatprep.subr.bf16.mxu0 %v8222_v43  ;;  %v9631_v40 = vpack.c.bf16 %v105_v39, %v95_v38  ;;  %v8291_v43 = vld [vmem:[#allocation5 + $0x14f4] ss:$40 sps:$4 sm:$0xff]   ;;  %v8364_v38 = vld [vmem:[#allocation5 + $0x4b8] ss:$40 sps:$4 sm:$0xff]  }
  0xb9   :  { %v94_v39 = vld [vmem:[#allocation2 + $0x40] sm:$0xff] }
  0xba   :  { %1146 = vmatpush1.bf16.msra.mxu1 %v8217_v48  ;;  %v8292_v48 = vld [vmem:[#allocation5 + $0xf8] ss:$40 sps:$4 sm:$0xff]  }
  0xbb   :  { %1232 = vmatpush1.bf16.msra.mxu0 %v8220_v49  ;;  %1147 = vmatprep.subr.bf16.mxu1 %v8225_v50  ;;  %v8297_v49 = vld [vmem:[#allocation5 + $0x1544] ss:$40 sps:$4 sm:$0xff]  }
  0xbc   :  { %1233 = vmatprep.subr.bf16.mxu0 %v8228_v51  ;;  %v8300_v50 = vld [vmem:[#allocation5 + $0x14c] ss:$40 sps:$4 sm:$0xff]   ;;  %v8295_v51 = vld [vmem:[#allocation5 + $0x1540] ss:$40 sps:$4 sm:$0xff]  }
  0xbe   :  { %1148 = vmatpush1.bf16.msra.mxu1 %v8223_v53  ;;  %v8298_v53 = vld [vmem:[#allocation5 + $0x148] ss:$40 sps:$4 sm:$0xff]  }
  0xbf   :  { %1234 = vmatpush1.bf16.msra.mxu0 %v8226_v54  ;;  %1149 = vmatprep.subr.bf16.mxu1 %v8231_v56  ;;  %v8303_v54 = vld [vmem:[#allocation5 + $0x1594] ss:$40 sps:$4 sm:$0xff]  }
  0xc0   :  { %1235 = vmatprep.subr.bf16.mxu0 %v8234_v57  ;;  %v8306_v56 = vld [vmem:[#allocation5 + $0x19c] ss:$40 sps:$4 sm:$0xff]   ;;  %v8301_v57 = vld [vmem:[#allocation5 + $0x1590] ss:$40 sps:$4 sm:$0xff]  }
  0xc2   :  { %1150 = vmatpush1.bf16.msra.mxu1 %v8229_v58  ;;  %v8304_v58 = vld [vmem:[#allocation5 + $0x198] ss:$40 sps:$4 sm:$0xff]  }
  0xc3   :  { %1236 = vmatpush1.bf16.msra.mxu0 %v8232_v59  ;;  %1151 = vmatprep.subr.bf16.mxu1 %v8237_v60  ;;  %v8309_v59 = vld [vmem:[#allocation5 + $0x15e4] ss:$40 sps:$4 sm:$0xff]  }
  0xc4   :  { %1237 = vmatprep.subr.bf16.mxu0 %v8240_v61  ;;  %v8312_v60 = vld [vmem:[#allocation5 + $0x1ec] ss:$40 sps:$4 sm:$0xff]   ;;  %v8307_v61 = vld [vmem:[#allocation5 + $0x15e0] ss:$40 sps:$4 sm:$0xff]  }
  0xc6   :  { %1152 = vmatpush1.bf16.msra.mxu1 %v8235_v62  ;;  %v8310_v62 = vld [vmem:[#allocation5 + $0x1e8] ss:$40 sps:$4 sm:$0xff]  }
  0xc7   :  { %1238 = vmatpush1.bf16.msra.mxu0 %v8238_v63  ;;  %1153 = vmatprep.subr.bf16.mxu1 %v8243_v0  ;;  %v8315_v63 = vld [vmem:[#allocation5 + $0x1634] ss:$40 sps:$4 sm:$0xff]  }
  0xc8   :  { %1239 = vmatprep.subr.bf16.mxu0 %v8246_v1  ;;  %v8318_v0 = vld [vmem:[#allocation5 + $0x23c] ss:$40 sps:$4 sm:$0xff]   ;;  %v8313_v1 = vld [vmem:[#allocation5 + $0x1630] ss:$40 sps:$4 sm:$0xff]  }
  0xca   :  { %1154 = vmatpush1.bf16.msra.mxu1 %v8241_v2  ;;  %v8316_v2 = vld [vmem:[#allocation5 + $0x238] ss:$40 sps:$4 sm:$0xff]  }
  0xcb   :  { %1240 = vmatpush1.bf16.msra.mxu0 %v8244_v3  ;;  %1155 = vmatprep.subr.bf16.mxu1 %v8249_v4  ;;  %v8321_v3 = vld [vmem:[#allocation5 + $0x1684] ss:$40 sps:$4 sm:$0xff]  }
  0xcc   :  { %1241 = vmatprep.subr.bf16.mxu0 %v8252_v5  ;;  %v8324_v4 = vld [vmem:[#allocation5 + $0x28c] ss:$40 sps:$4 sm:$0xff]   ;;  %v8319_v5 = vld [vmem:[#allocation5 + $0x1680] ss:$40 sps:$4 sm:$0xff]  }
  0xce   :  { %1156 = vmatpush1.bf16.msra.mxu1 %v8247_v6  ;;  %v8322_v6 = vld [vmem:[#allocation5 + $0x288] ss:$40 sps:$4 sm:$0xff]  }
  0xcf   :  { %1242 = vmatpush1.bf16.msra.mxu0 %v8250_v7  ;;  %1157 = vmatprep.subr.bf16.mxu1 %v8255_v8  ;;  %v8327_v7 = vld [vmem:[#allocation5 + $0x16d4] ss:$40 sps:$4 sm:$0xff]  }
  0xd0   :  { %1243 = vmatprep.subr.bf16.mxu0 %v8258_v9  ;;  %v8330_v8 = vld [vmem:[#allocation5 + $0x2dc] ss:$40 sps:$4 sm:$0xff]   ;;  %v8325_v9 = vld [vmem:[#allocation5 + $0x16d0] ss:$40 sps:$4 sm:$0xff]  }
  0xd2   :  { %1158 = vmatpush1.bf16.msra.mxu1 %v8253_v10  ;;  %v8328_v10 = vld [vmem:[#allocation5 + $0x2d8] ss:$40 sps:$4 sm:$0xff]  }
  0xd3   :  { %1244 = vmatpush1.bf16.msra.mxu0 %v8256_v11  ;;  %1159 = vmatprep.subr.bf16.mxu1 %v8261_v12  ;;  %v8333_v11 = vld [vmem:[#allocation5 + $0x1724] ss:$40 sps:$4 sm:$0xff]  }
  0xd4   :  { %1245 = vmatprep.subr.bf16.mxu0 %v8264_v13  ;;  %v8336_v12 = vld [vmem:[#allocation5 + $0x32c] ss:$40 sps:$4 sm:$0xff]   ;;  %v8331_v13 = vld [vmem:[#allocation5 + $0x1720] ss:$40 sps:$4 sm:$0xff]  }
  0xd6   :  { %1160 = vmatpush1.bf16.msra.mxu1 %v8259_v16  ;;  %v8334_v16 = vld [vmem:[#allocation5 + $0x328] ss:$40 sps:$4 sm:$0xff]  }
  0xd7   :  { %1246 = vmatpush1.bf16.msra.mxu0 %v8262_v17  ;;  %1161 = vmatprep.subr.bf16.mxu1 %v8267_v18  ;;  %v8339_v17 = vld [vmem:[#allocation5 + $0x1774] ss:$40 sps:$4 sm:$0xff]  }
  0xd8   :  { %1247 = vmatprep.subr.bf16.mxu0 %v8270_v19  ;;  %v8342_v18 = vld [vmem:[#allocation5 + $0x37c] ss:$40 sps:$4 sm:$0xff]   ;;  %v8337_v19 = vld [vmem:[#allocation5 + $0x1770] ss:$40 sps:$4 sm:$0xff]  }
  0xda   :  { %1162 = vmatpush1.bf16.msra.mxu1 %v8265_v20  ;;  %v8340_v20 = vld [vmem:[#allocation5 + $0x378] ss:$40 sps:$4 sm:$0xff]  }
  0xdb   :  { %1248 = vmatpush1.bf16.msra.mxu0 %v8268_v21  ;;  %2313 = vmatprep.subr.bf16.mxu1 %v8276_v27  ;;  %v8345_v21 = vld [vmem:[#allocation5 + $0x17c4] ss:$40 sps:$4 sm:$0xff]   ;;  %v8349_v27 = vld [vmem:[#allocation5 + $0x1810] ss:$40 sps:$4 sm:$0xff]  }
  0xdc   :  { %1260 = vmatprep.subr.bf16.mxu0 %v8273_v24  ;;  %v8346_v24 = vld [vmem:[#allocation5 + $0x3c8] ss:$40 sps:$4 sm:$0xff]  }
  0xdd   :  { %1164 = vmatmul.mubr.bf16.vlgmr.msra.gmra.mrb[0].mxu1 %v9625_v28 }
  0xde   :  { %1250 = vmatmul.mubr.bf16.vlgmr.msra.gmra.mrb[0].mxu0 %v9627_v31  ;;  %2314 = vmatpush1.bf16.msra.mxu1 %v8274_v30  ;;  %v8357_v30 = vld [vmem:[#allocation5 + $0x1864] ss:$40 sps:$4 sm:$0xff]  }
  0xdf   :  { %1261 = vmatpush1.bf16.msra.mxu0 %v8271_v29  ;;  %2315 = vmatprep.subr.bf16.mxu1 %v8282_v33  ;;  %v8352_v29 = vld [vmem:[#allocation5 + $0x418] ss:$40 sps:$4 sm:$0xff]  }
  0xe0   :  { %1262 = vmatprep.subr.bf16.mxu0 %v8279_v32  ;;  %2345 = vmatprep.mubr.bf16.mxu1 %v9607_v52  ;;  %v8360_v32 = vld [vmem:[#allocation5 + $0x46c] ss:$40 sps:$4 sm:$0xff]   ;;  %v8355_v33 = vld [vmem:[#allocation5 + $0x1860] ss:$40 sps:$4 sm:$0xff]  }
  0xe1   :  { %1292 = vmatprep.mubr.bf16.mxu0 %v9631_v40 }
  0xe2   :  { %2316 = vmatpush1.bf16.msra.mxu1 %v8280_v35  ;;  %v8363_v35 = vld [vmem:[#allocation5 + $0x18b4] ss:$40 sps:$4 sm:$0xff]  }
  0xe3   :  { %1263 = vmatpush1.bf16.msra.mxu0 %v8277_v34  ;;  %2317 = vmatprep.subr.bf16.mxu1 %v8288_v37  ;;  %v8358_v34 = vld [vmem:[#allocation5 + $0x468] ss:$40 sps:$4 sm:$0xff]  }
  0xe4   :  { %1264 = vmatprep.subr.bf16.mxu0 %v8285_v36  ;;  %v8366_v36 = vld [vmem:[#allocation5 + $0x4bc] ss:$40 sps:$4 sm:$0xff]   ;;  %v8361_v37 = vld [vmem:[#allocation5 + $0x18b0] ss:$40 sps:$4 sm:$0xff]  }
  0xe6   :  { %2318 = vmatpush1.bf16.msra.mxu1 %v8286_v42  ;;  %v8369_v42 = vld [vmem:[#allocation5 + $0x50c] ss:$40 sps:$4 sm:$0xff]  }
  0xe7   :  { %1265 = vmatpush1.bf16.msra.mxu0 %v8283_v41  ;;  %2319 = vmatprep.subr.bf16.mxu1 %v8294_v45  ;;  %v104_v41 = vld [vmem:[#allocation2 + $0x90] sm:$0xff] }
  0xe8   :  { %1266 = vmatprep.subr.bf16.mxu0 %v8291_v43  ;;  %v9635_v43 = vpack.c.bf16 %v104_v41, %v94_v39  ;;  %v8367_v45 = vld [vmem:[#allocation5 + $0x508] ss:$40 sps:$4 sm:$0xff]   ;;  %v8447_v39 = vld [vmem:[#allocation5 + $0xd2c] ss:$40 sps:$4 sm:$0xff]  }
  0xe9   :  { %v8445_v41 = vld [vmem:[#allocation5 + $0xd28] ss:$40 sps:$4 sm:$0xff]  }
  0xea   :  { %2320 = vmatpush1.bf16.msra.mxu1 %v8292_v48  ;;  %v8370_v48 = vld [vmem:[#allocation5 + $0x558] ss:$40 sps:$4 sm:$0xff]  }
  0xeb   :  { %1267 = vmatpush1.bf16.msra.mxu0 %v8289_v46  ;;  %2321 = vmatprep.subr.bf16.mxu1 %v8300_v50  ;;  %v8372_v46 = vld [vmem:[#allocation5 + $0x55c] ss:$40 sps:$4 sm:$0xff]   ;;  %v8373_v50 = vld [vmem:[#allocation5 + $0x5a8] ss:$40 sps:$4 sm:$0xff]  }
  0xec   :  { %1268 = vmatprep.subr.bf16.mxu0 %v8297_v49  ;;  %v8375_v49 = vld [vmem:[#allocation5 + $0x5ac] ss:$40 sps:$4 sm:$0xff]  }
  0xee   :  { %2322 = vmatpush1.bf16.msra.mxu1 %v8298_v53  ;;  %v8376_v53 = vld [vmem:[#allocation5 + $0x5f8] ss:$40 sps:$4 sm:$0xff]  }
  0xef   :  { %1269 = vmatpush1.bf16.msra.mxu0 %v8295_v51  ;;  %2323 = vmatprep.subr.bf16.mxu1 %v8306_v56  ;;  %v8378_v51 = vld [vmem:[#allocation5 + $0x5fc] ss:$40 sps:$4 sm:$0xff]   ;;  %v8379_v56 = vld [vmem:[#allocation5 + $0x648] ss:$40 sps:$4 sm:$0xff]  }
  0xf0   :  { %1270 = vmatprep.subr.bf16.mxu0 %v8303_v54  ;;  %v8381_v54 = vld [vmem:[#allocation5 + $0x64c] ss:$40 sps:$4 sm:$0xff]  }
  0xf2   :  { %2324 = vmatpush1.bf16.msra.mxu1 %v8304_v58  ;;  %v8382_v58 = vld [vmem:[#allocation5 + $0x698] ss:$40 sps:$4 sm:$0xff]  }
  0xf3   :  { %1271 = vmatpush1.bf16.msra.mxu0 %v8301_v57  ;;  %2325 = vmatprep.subr.bf16.mxu1 %v8312_v60  ;;  %v8384_v57 = vld [vmem:[#allocation5 + $0x69c] ss:$40 sps:$4 sm:$0xff]   ;;  %v8385_v60 = vld [vmem:[#allocation5 + $0x6e8] ss:$40 sps:$4 sm:$0xff]  }
  0xf4   :  { %1272 = vmatprep.subr.bf16.mxu0 %v8309_v59  ;;  %v8387_v59 = vld [vmem:[#allocation5 + $0x6ec] ss:$40 sps:$4 sm:$0xff]  }
  0xf6   :  { %2326 = vmatpush1.bf16.msra.mxu1 %v8310_v62  ;;  %v8388_v62 = vld [vmem:[#allocation5 + $0x738] ss:$40 sps:$4 sm:$0xff]  }
  0xf7   :  { %1273 = vmatpush1.bf16.msra.mxu0 %v8307_v61  ;;  %2327 = vmatprep.subr.bf16.mxu1 %v8318_v0  ;;  %v8390_v61 = vld [vmem:[#allocation5 + $0x73c] ss:$40 sps:$4 sm:$0xff]   ;;  %v8391_v0 = vld [vmem:[#allocation5 + $0x788] ss:$40 sps:$4 sm:$0xff]  }
  0xf8   :  { %1274 = vmatprep.subr.bf16.mxu0 %v8315_v63  ;;  %v8393_v63 = vld [vmem:[#allocation5 + $0x78c] ss:$40 sps:$4 sm:$0xff]  }
  0xfa   :  { %2328 = vmatpush1.bf16.msra.mxu1 %v8316_v2  ;;  %v8394_v2 = vld [vmem:[#allocation5 + $0x7d8] ss:$40 sps:$4 sm:$0xff]  }
  0xfb   :  { %1275 = vmatpush1.bf16.msra.mxu0 %v8313_v1  ;;  %2329 = vmatprep.subr.bf16.mxu1 %v8324_v4  ;;  %v8396_v1 = vld [vmem:[#allocation5 + $0x7dc] ss:$40 sps:$4 sm:$0xff]   ;;  %v8397_v4 = vld [vmem:[#allocation5 + $0x828] ss:$40 sps:$4 sm:$0xff]  }
  0xfc   :  { %1276 = vmatprep.subr.bf16.mxu0 %v8321_v3  ;;  %v8399_v3 = vld [vmem:[#allocation5 + $0x82c] ss:$40 sps:$4 sm:$0xff]  }
  0xfe   :  { %2330 = vmatpush1.bf16.msra.mxu1 %v8322_v6  ;;  %v8400_v6 = vld [vmem:[#allocation5 + $0x878] ss:$40 sps:$4 sm:$0xff]  }
  0xff   :  { %1277 = vmatpush1.bf16.msra.mxu0 %v8319_v5  ;;  %2331 = vmatprep.subr.bf16.mxu1 %v8330_v8  ;;  %v8402_v5 = vld [vmem:[#allocation5 + $0x87c] ss:$40 sps:$4 sm:$0xff]   ;;  %v8403_v8 = vld [vmem:[#allocation5 + $0x8c8] ss:$40 sps:$4 sm:$0xff]  }
 0x100   :  { %1278 = vmatprep.subr.bf16.mxu0 %v8327_v7  ;;  %v8405_v7 = vld [vmem:[#allocation5 + $0x8cc] ss:$40 sps:$4 sm:$0xff]  }
 0x102   :  { %2332 = vmatpush1.bf16.msra.mxu1 %v8328_v10  ;;  %v8406_v10 = vld [vmem:[#allocation5 + $0x918] ss:$40 sps:$4 sm:$0xff]  }
 0x103   :  { %1279 = vmatpush1.bf16.msra.mxu0 %v8325_v9  ;;  %2333 = vmatprep.subr.bf16.mxu1 %v8336_v12  ;;  %v8408_v9 = vld [vmem:[#allocation5 + $0x91c] ss:$40 sps:$4 sm:$0xff]   ;;  %v8409_v12 = vld [vmem:[#allocation5 + $0x968] ss:$40 sps:$4 sm:$0xff]  }
 0x104   :  { %1280 = vmatprep.subr.bf16.mxu0 %v8333_v11  ;;  %v8411_v11 = vld [vmem:[#allocation5 + $0x96c] ss:$40 sps:$4 sm:$0xff]  }
 0x106   :  { %2334 = vmatpush1.bf16.msra.mxu1 %v8334_v16  ;;  %v8412_v16 = vld [vmem:[#allocation5 + $0x9b8] ss:$40 sps:$4 sm:$0xff]  }
 0x107   :  { %1281 = vmatpush1.bf16.msra.mxu0 %v8331_v13  ;;  %2335 = vmatprep.subr.bf16.mxu1 %v8342_v18  ;;  %v8414_v13 = vld [vmem:[#allocation5 + $0x9bc] ss:$40 sps:$4 sm:$0xff]   ;;  %v8415_v18 = vld [vmem:[#allocation5 + $0xa08] ss:$40 sps:$4 sm:$0xff]  }
 0x108   :  { %1282 = vmatprep.subr.bf16.mxu0 %v8339_v17  ;;  %v8417_v17 = vld [vmem:[#allocation5 + $0xa0c] ss:$40 sps:$4 sm:$0xff]  }
 0x10a   :  { %2336 = vmatpush1.bf16.msra.mxu1 %v8340_v20  ;;  %v8418_v20 = vld [vmem:[#allocation5 + $0xa58] ss:$40 sps:$4 sm:$0xff]  }
 0x10b   :  { %1283 = vmatpush1.bf16.msra.mxu0 %v8337_v19  ;;  %2337 = vmatprep.subr.bf16.mxu1 %v8348_v22  ;;  %v8420_v19 = vld [vmem:[#allocation5 + $0xa5c] ss:$40 sps:$4 sm:$0xff]   ;;  %v8421_v22 = vld [vmem:[#allocation5 + $0xaa8] ss:$40 sps:$4 sm:$0xff]  }
 0x10c   :  { %1284 = vmatprep.subr.bf16.mxu0 %v8345_v21  ;;  %v8423_v21 = vld [vmem:[#allocation5 + $0xaac] ss:$40 sps:$4 sm:$0xff]  }
 0x10e   :  { %2338 = vmatpush1.bf16.msra.mxu1 %v8346_v24  ;;  %v8424_v24 = vld [vmem:[#allocation5 + $0xaf8] ss:$40 sps:$4 sm:$0xff]  }
 0x10f   :  { %1285 = vmatpush1.bf16.msra.mxu0 %v8343_v23  ;;  %2339 = vmatprep.subr.bf16.mxu1 %v8354_v26  ;;  %v8426_v23 = vld [vmem:[#allocation5 + $0xafc] ss:$40 sps:$4 sm:$0xff]   ;;  %v8427_v26 = vld [vmem:[#allocation5 + $0xb48] ss:$40 sps:$4 sm:$0xff]  }
 0x110   :  { %1286 = vmatprep.subr.bf16.mxu0 %v8351_v25  ;;  %v8429_v25 = vld [vmem:[#allocation5 + $0xb4c] ss:$40 sps:$4 sm:$0xff]  }
 0x112   :  { %2340 = vmatpush1.bf16.msra.mxu1 %v8352_v29  ;;  %v8430_v29 = vld [vmem:[#allocation5 + $0xb98] ss:$40 sps:$4 sm:$0xff]  }
 0x113   :  { %1287 = vmatpush1.bf16.msra.mxu0 %v8349_v27  ;;  %2341 = vmatprep.subr.bf16.mxu1 %v8360_v32  ;;  %v8432_v27 = vld [vmem:[#allocation5 + $0xb9c] ss:$40 sps:$4 sm:$0xff]   ;;  %v8433_v32 = vld [vmem:[#allocation5 + $0xbe8] ss:$40 sps:$4 sm:$0xff]  }
 0x114   :  { %1288 = vmatprep.subr.bf16.mxu0 %v8357_v30  ;;  %v8435_v30 = vld [vmem:[#allocation5 + $0xbec] ss:$40 sps:$4 sm:$0xff]  }
 0x116   :  { %2342 = vmatpush1.bf16.msra.mxu1 %v8358_v34  ;;  %v8436_v34 = vld [vmem:[#allocation5 + $0xc38] ss:$40 sps:$4 sm:$0xff]  }
 0x117   :  { %1289 = vmatpush1.bf16.msra.mxu0 %v8355_v33  ;;  %2343 = vmatprep.subr.bf16.mxu1 %v8366_v36  ;;  %v8438_v33 = vld [vmem:[#allocation5 + $0xc3c] ss:$40 sps:$4 sm:$0xff]   ;;  %v8439_v36 = vld [vmem:[#allocation5 + $0xc88] ss:$40 sps:$4 sm:$0xff]  }
 0x118   :  { %1290 = vmatprep.subr.bf16.mxu0 %v8363_v35  ;;  %v8441_v35 = vld [vmem:[#allocation5 + $0xc8c] ss:$40 sps:$4 sm:$0xff]  }
 0x11a   :  { %2344 = vmatpush1.bf16.msra.mxu1 %v8364_v38  ;;  %v8442_v38 = vld [vmem:[#allocation5 + $0xcd8] ss:$40 sps:$4 sm:$0xff]  }
 0x11b   :  { %1291 = vmatpush1.bf16.msra.mxu0 %v8361_v37  ;;  %2356 = vmatprep.subr.bf16.mxu1 %v8369_v42  ;;  %v8444_v37 = vld [vmem:[#allocation5 + $0xcdc] ss:$40 sps:$4 sm:$0xff]  }
 0x11c   :  { %v8450_v42 = vld [vmem:[#allocation5 + $0xd7c] ss:$40 sps:$4 sm:$0xff]  }
 0x11d   :  { %2346 = vmatmul.mubr.bf16.vlgmr.msra.gmra.mrb[4].mxu1 %v9613_v14 }
 0x11e   :  { %1293 = vmatmul.mubr.bf16.vlgmr.msra.gmra.mrb[0].mxu0 %v9635_v43  ;;  %2357 = vmatpush1.bf16.msra.mxu1 %v8367_v45  ;;  %v8448_v45 = vld [vmem:[#allocation5 + $0xd78] ss:$40 sps:$4 sm:$0xff]  }
 0x11f   :  { %2388 = vmatprep.mubr.bf16.mxu1 %v9619_v44  ;;  %2358 = vmatprep.subr.bf16.mxu1 %v8372_v46  ;;  %v8453_v46 = vld [vmem:[#allocation5 + $0xdcc] ss:$40 sps:$4 sm:$0xff]  }
 0x122   :  { %2359 = vmatpush1.bf16.msra.mxu1 %v8370_v48  ;;  %v8451_v48 = vld [vmem:[#allocation5 + $0xdc8] ss:$40 sps:$4 sm:$0xff]  }
 0x123   :  { %2360 = vmatprep.subr.bf16.mxu1 %v8375_v49  ;;  %v8456_v49 = vld [vmem:[#allocation5 + $0xe1c] ss:$40 sps:$4 sm:$0xff]  }
 0x126   :  { %2361 = vmatpush1.bf16.msra.mxu1 %v8373_v50  ;;  %v8454_v50 = vld [vmem:[#allocation5 + $0xe18] ss:$40 sps:$4 sm:$0xff]  }
 0x127   :  { %2362 = vmatprep.subr.bf16.mxu1 %v8378_v51  ;;  %v8459_v51 = vld [vmem:[#allocation5 + $0xe6c] ss:$40 sps:$4 sm:$0xff]  }
 0x12a   :  { %2363 = vmatpush1.bf16.msra.mxu1 %v8376_v53  ;;  %v8457_v53 = vld [vmem:[#allocation5 + $0xe68] ss:$40 sps:$4 sm:$0xff]  }
 0x12b   :  { %2364 = vmatprep.subr.bf16.mxu1 %v8381_v54  ;;  %v8462_v54 = vld [vmem:[#allocation5 + $0xebc] ss:$40 sps:$4 sm:$0xff]  }
 0x12e   :  { %2365 = vmatpush1.bf16.msra.mxu1 %v8379_v56  ;;  %v8460_v56 = vld [vmem:[#allocation5 + $0xeb8] ss:$40 sps:$4 sm:$0xff]  }
 0x12f   :  { %2366 = vmatprep.subr.bf16.mxu1 %v8384_v57  ;;  %v8465_v57 = vld [vmem:[#allocation5 + $0xf0c] ss:$40 sps:$4 sm:$0xff]  }
 0x132   :  { %2367 = vmatpush1.bf16.msra.mxu1 %v8382_v58  ;;  %v8463_v58 = vld [vmem:[#allocation5 + $0xf08] ss:$40 sps:$4 sm:$0xff]  }
 0x133   :  { %2368 = vmatprep.subr.bf16.mxu1 %v8387_v59  ;;  %v8468_v59 = vld [vmem:[#allocation5 + $0xf5c] ss:$40 sps:$4 sm:$0xff]  }
 0x136   :  { %2369 = vmatpush1.bf16.msra.mxu1 %v8385_v60  ;;  %v8466_v60 = vld [vmem:[#allocation5 + $0xf58] ss:$40 sps:$4 sm:$0xff]  }
 0x137   :  { %2370 = vmatprep.subr.bf16.mxu1 %v8390_v61  ;;  %v8471_v61 = vld [vmem:[#allocation5 + $0xfac] ss:$40 sps:$4 sm:$0xff]  }
 0x13a   :  { %2371 = vmatpush1.bf16.msra.mxu1 %v8388_v62  ;;  %v8469_v62 = vld [vmem:[#allocation5 + $0xfa8] ss:$40 sps:$4 sm:$0xff]  }
 0x13b   :  { %2372 = vmatprep.subr.bf16.mxu1 %v8393_v63  ;;  %v8474_v63 = vld [vmem:[#allocation5 + $0xffc] ss:$40 sps:$4 sm:$0xff]  }
 0x13e   :  { %2373 = vmatpush1.bf16.msra.mxu1 %v8391_v0  ;;  %v8472_v0 = vld [vmem:[#allocation5 + $0xff8] ss:$40 sps:$4 sm:$0xff]  }
 0x13f   :  { %2374 = vmatprep.subr.bf16.mxu1 %v8396_v1  ;;  %v8477_v1 = vld [vmem:[#allocation5 + $0x104c] ss:$40 sps:$4 sm:$0xff]  }
 0x142   :  { %2375 = vmatpush1.bf16.msra.mxu1 %v8394_v2  ;;  %v8475_v2 = vld [vmem:[#allocation5 + $0x1048] ss:$40 sps:$4 sm:$0xff]  }
 0x143   :  { %2376 = vmatprep.subr.bf16.mxu1 %v8399_v3  ;;  %v8480_v3 = vld [vmem:[#allocation5 + $0x109c] ss:$40 sps:$4 sm:$0xff]  }
 0x146   :  { %2377 = vmatpush1.bf16.msra.mxu1 %v8397_v4  ;;  %v8478_v4 = vld [vmem:[#allocation5 + $0x1098] ss:$40 sps:$4 sm:$0xff]  }
 0x147   :  { %2378 = vmatprep.subr.bf16.mxu1 %v8402_v5  ;;  %v8483_v5 = vld [vmem:[#allocation5 + $0x10ec] ss:$40 sps:$4 sm:$0xff]  }
 0x14a   :  { %2379 = vmatpush1.bf16.msra.mxu1 %v8400_v6 }
 0x14b   :  { %2380 = vmatprep.subr.bf16.mxu1 %v8405_v7 }
 0x14e   :  { %2381 = vmatpush1.bf16.msra.mxu1 %v8403_v8 }
 0x14f   :  { %2382 = vmatprep.subr.bf16.mxu1 %v8408_v9  ;;  %v8481_v9 = vld [vmem:[#allocation5 + $0x10e8] ss:$40 sps:$4 sm:$0xff]  }
 0x152   :  { %2383 = vmatpush1.bf16.msra.mxu1 %v8406_v10 }
 0x153   :  { %2384 = vmatprep.subr.bf16.mxu1 %v8411_v11  ;;  %v8486_v11 = vld [vmem:[#allocation5 + $0x113c] ss:$40 sps:$4 sm:$0xff]  }
 0x156   :  { %2385 = vmatpush1.bf16.msra.mxu1 %v8409_v12  ;;  %v8484_v12 = vld [vmem:[#allocation5 + $0x1138] ss:$40 sps:$4 sm:$0xff]  }
 0x157   :  { %2386 = vmatprep.subr.bf16.mxu1 %v8414_v13  ;;  %v8489_v13 = vld [vmem:[#allocation5 + $0x118c] ss:$40 sps:$4 sm:$0xff]  }
 0x15a   :  { %2387 = vmatpush1.bf16.msra.mxu1 %v8412_v16  ;;  %v8487_v16 = vld [vmem:[#allocation5 + $0x1188] ss:$40 sps:$4 sm:$0xff]  }
 0x15b   :  { %2399 = vmatprep.subr.bf16.mxu1 %v8417_v17  ;;  %v8492_v17 = vld [vmem:[#allocation5 + $0x11dc] ss:$40 sps:$4 sm:$0xff]  }
 0x15d   :  { %2389 = vmatmul.mubr.bf16.vlgmr.msra.gmra.mrb[4].mxu1 %v9625_v28 }
 0x15e   :  { %2400 = vmatpush1.bf16.msra.mxu1 %v8415_v18  ;;  %2431 = vmatprep.mubr.bf16.mxu1 %v9610_v55  ;;  %v8575_v18 = vld [vmem:[#allocation8 + $0xc0] sm:$0xff]  }
 0x15f   :  { %2401 = vmatprep.subr.bf16.mxu1 %v8420_v19  ;;  %v8576_v19 = vld [vmem:[#allocation8 + $0x80] sm:$0xff]   ;;  %7855 = vmatprep.subr.bf16.mxu0 %v8575_v18 }
 0x160   :  { %7856 = vmatpush3.bf16.msra.mxu0 %v8576_v19 }
 0x162   :  { %2402 = vmatpush1.bf16.msra.mxu1 %v8418_v20  ;;  %v8577_v20 = vld [vmem:[#allocation8 + $0xc8] sm:$0xff]  }
 0x163   :  { %2403 = vmatprep.subr.bf16.mxu1 %v8423_v21  ;;  %v8490_v21 = vld [vmem:[#allocation5 + $0x11d8] ss:$40 sps:$4 sm:$0xff]   ;;  %7857 = vmatprep.subr.bf16.mxu0 %v8577_v20  ;;  %v8534_v20 = vld [vmem:[#allocation5 + $0x163c] ss:$40 sps:$4 sm:$0xff]  }
 0x166   :  { %2404 = vmatpush1.bf16.msra.mxu1 %v8421_v22  ;;  %v8495_v22 = vld [vmem:[#allocation5 + $0x122c] ss:$40 sps:$4 sm:$0xff]  }
 0x167   :  { %2405 = vmatprep.subr.bf16.mxu1 %v8426_v23  ;;  %v8493_v23 = vld [vmem:[#allocation5 + $0x1228] ss:$40 sps:$4 sm:$0xff]  }
 0x16a   :  { %2406 = vmatpush1.bf16.msra.mxu1 %v8424_v24  ;;  %v8578_v24 = vld [vmem:[#allocation8 + $0x88] sm:$0xff]  }
 0x16b   :  { %2407 = vmatprep.subr.bf16.mxu1 %v8429_v25  ;;  %v8498_v25 = vld [vmem:[#allocation5 + $0x127c] ss:$40 sps:$4 sm:$0xff]   ;;  %7858 = vmatpush3.bf16.msra.mxu0 %v8578_v24 }
 0x16e   :  { %2408 = vmatpush1.bf16.msra.mxu1 %v8427_v26  ;;  %v8579_v26 = vld [vmem:[#allocation8 + $0xd0] sm:$0xff]  }
 0x16f   :  { %2409 = vmatprep.subr.bf16.mxu1 %v8432_v27  ;;  %v8580_v27 = vld [vmem:[#allocation8 + $0x90] sm:$0xff]   ;;  %7859 = vmatprep.subr.bf16.mxu0 %v8579_v26 }
 0x170   :  { %7860 = vmatpush3.bf16.msra.mxu0 %v8580_v27 }
 0x172   :  { %2410 = vmatpush1.bf16.msra.mxu1 %v8430_v29  ;;  %v8581_v29 = vld [vmem:[#allocation8 + $0xd8] sm:$0xff]  }
 0x173   :  { %2411 = vmatprep.subr.bf16.mxu1 %v8435_v30  ;;  %v8496_v30 = vld [vmem:[#allocation5 + $0x1278] ss:$40 sps:$4 sm:$0xff]   ;;  %7861 = vmatprep.subr.bf16.mxu0 %v8581_v29 }
 0x176   :  { %2412 = vmatpush1.bf16.msra.mxu1 %v8433_v32  ;;  %v8501_v32 = vld [vmem:[#allocation5 + $0x12cc] ss:$40 sps:$4 sm:$0xff]  }
 0x177   :  { %2413 = vmatprep.subr.bf16.mxu1 %v8438_v33  ;;  %v8582_v33 = vld [vmem:[#allocation8 + $0x98] sm:$0xff]  }
 0x178   :  { %7862 = vmatpush3.bf16.msra.mxu0 %v8582_v33 }
 0x17a   :  { %2414 = vmatpush1.bf16.msra.mxu1 %v8436_v34  ;;  %v8583_v34 = vld [vmem:[#allocation8 + $0xe0] sm:$0xff]  }
 0x17b   :  { %2415 = vmatprep.subr.bf16.mxu1 %v8441_v35  ;;  %v8499_v35 = vld [vmem:[#allocation5 + $0x12c8] ss:$40 sps:$4 sm:$0xff]   ;;  %7863 = vmatprep.subr.bf16.mxu0 %v8583_v34 }
 0x17c   :  { %v8535_v34 = vld [vmem:[#allocation5 + $0x1688] ss:$40 sps:$4 sm:$0xff]  }
 0x17e   :  { %2416 = vmatpush1.bf16.msra.mxu1 %v8439_v36  ;;  %v8504_v36 = vld [vmem:[#allocation5 + $0x131c] ss:$40 sps:$4 sm:$0xff]  }
 0x17f   :  { %2417 = vmatprep.subr.bf16.mxu1 %v8444_v37  ;;  %v8584_v37 = vld [vmem:[#allocation8 + $0xa0] sm:$0xff]  }
 0x180   :  { %7864 = vmatpush3.bf16.msra.mxu0 %v8584_v37  ;;  %v8541_v37 = vld [vmem:[#allocation5 + $0x1728] ss:$40 sps:$4 sm:$0xff]  }
 0x182   :  { %2418 = vmatpush1.bf16.msra.mxu1 %v8442_v38  ;;  %v8585_v38 = vld [vmem:[#allocation8 + $0xe8] sm:$0xff]  }
 0x183   :  { %2419 = vmatprep.subr.bf16.mxu1 %v8447_v39  ;;  %v8502_v39 = vld [vmem:[#allocation5 + $0x1318] ss:$40 sps:$4 sm:$0xff]   ;;  %7865 = vmatprep.subr.bf16.mxu0 %v8585_v38  ;;  %v8546_v38 = vld [vmem:[#allocation5 + $0x177c] ss:$40 sps:$4 sm:$0xff]  }
 0x186   :  { %2420 = vmatpush1.bf16.msra.mxu1 %v8445_v41  ;;  %v8507_v41 = vld [vmem:[#allocation5 + $0x136c] ss:$40 sps:$4 sm:$0xff]  }
 0x187   :  { %2421 = vmatprep.subr.bf16.mxu1 %v8450_v42  ;;  %v8586_v42 = vld [vmem:[#allocation8 + $0xa8] sm:$0xff]  }
 0x188   :  { %7866 = vmatpush3.bf16.msra.mxu0 %v8586_v42  ;;  %v8547_v42 = vld [vmem:[#allocation5 + $0x17c8] ss:$40 sps:$4 sm:$0xff]  }
 0x18a   :  { %2422 = vmatpush1.bf16.msra.mxu1 %v8448_v45  ;;  %v8505_v45 = vld [vmem:[#allocation5 + $0x1368] ss:$40 sps:$4 sm:$0xff]  }
 0x18b   :  { %2423 = vmatprep.subr.bf16.mxu1 %v8453_v46  ;;  %v8510_v46 = vld [vmem:[#allocation5 + $0x13bc] ss:$40 sps:$4 sm:$0xff]  }
 0x18e   :  { %2424 = vmatpush1.bf16.msra.mxu1 %v8451_v48  ;;  %v8508_v48 = vld [vmem:[#allocation5 + $0x13b8] ss:$40 sps:$4 sm:$0xff]  }
 0x18f   :  { %2425 = vmatprep.subr.bf16.mxu1 %v8456_v49  ;;  %v8513_v49 = vld [vmem:[#allocation5 + $0x140c] ss:$40 sps:$4 sm:$0xff]  }
 0x192   :  { %2426 = vmatpush1.bf16.msra.mxu1 %v8454_v50  ;;  %v8511_v50 = vld [vmem:[#allocation5 + $0x1408] ss:$40 sps:$4 sm:$0xff]  }
 0x193   :  { %2427 = vmatprep.subr.bf16.mxu1 %v8459_v51  ;;  %v8516_v51 = vld [vmem:[#allocation5 + $0x145c] ss:$40 sps:$4 sm:$0xff]  }
 0x196   :  { %2428 = vmatpush1.bf16.msra.mxu1 %v8457_v53  ;;  %v8514_v53 = vld [vmem:[#allocation5 + $0x1458] ss:$40 sps:$4 sm:$0xff]  }
 0x197   :  { %2429 = vmatprep.subr.bf16.mxu1 %v8462_v54  ;;  %v8519_v54 = vld [vmem:[#allocation5 + $0x14ac] ss:$40 sps:$4 sm:$0xff]  }
 0x19a   :  { %2430 = vmatpush1.bf16.msra.mxu1 %v8460_v56  ;;  %v278_v56 = vlaneseq }
 0x19b   :  { %2442 = vmatprep.subr.bf16.mxu1 %v8465_v57  ;;  %v8517_v57 = vld [vmem:[#allocation5 + $0x14a8] ss:$40 sps:$4 sm:$0xff]  }
 0x19d   :  { %2432 = vmatmul.mubr.bf16.vlgmr.msra.gmra.mrb[4].mxu1 %v9615_v15 }
 0x19e   :  { %2443 = vmatpush1.bf16.msra.mxu1 %v8463_v58  ;;  %2474 = vmatprep.mubr.bf16.mxu1 %v9621_v47  ;;  %v8522_v58 = vld [vmem:[#allocation5 + $0x14fc] ss:$40 sps:$4 sm:$0xff]  }
 0x19f   :  { %2444 = vmatprep.subr.bf16.mxu1 %v8468_v59  ;;  %v279_v59 = vshrl.u32 %v278_v56, 7  ;;  %v8561_v56 = vld [vmem:[#allocation8 + $0x48] sm:$0xff]  }
 0x1a2   :  { %2445 = vmatpush1.bf16.msra.mxu1 %v8466_v60  ;;  %v8520_v60 = vld [vmem:[#allocation5 + $0x14f8] ss:$40 sps:$4 sm:$0xff]  }
 0x1a3   :  { %2446 = vmatprep.subr.bf16.mxu1 %v8471_v61  ;;  %v8525_v61 = vld [vmem:[#allocation5 + $0x154c] ss:$40 sps:$4 sm:$0xff]  }
 0x1a6   :  { %2447 = vmatpush1.bf16.msra.mxu1 %v8469_v62  ;;  %v276_v62 = vld [vmem:[#allocation7] sm:$0x3] }
 0x1a7   :  { %2448 = vmatprep.subr.bf16.mxu1 %v8474_v63  ;;  %v9654_v63 = vsub.s32 0, %v279_v59 }
 0x1aa   :  { %2449 = vmatpush1.bf16.msra.mxu1 %v8472_v0  ;;  %v9656_v0 = vsub.s32 1, %v279_v59  ;;  %v8564_v59 = vld [vmem:[#allocation8 + $0x10] sm:$0xff]  }
 0x1ab   :  { %2450 = vmatprep.subr.bf16.mxu1 %v8477_v1  ;;  %v8523_v1 = vld [vmem:[#allocation5 + $0x1548] ss:$40 sps:$4 sm:$0xff]  }
 0x1ae   :  { %2451 = vmatpush1.bf16.msra.mxu1 %v8475_v2  ;;  %v8528_v2 = vld [vmem:[#allocation5 + $0x159c] ss:$40 sps:$4 sm:$0xff]  }
 0x1af   :  { %2452 = vmatprep.subr.bf16.mxu1 %v8480_v3  ;;  %v281_v3 = vrot.slane %v276_v62, %v9654_v63 }
 0x1b0   :  { %v9644_v6 = vpop.f32.mrb[0].mxu1 }
 0x1b1   :  { %v9646_v7 = vpop.f32.mrb[1].mxu1 }
 0x1b2   :  { %v9648_v8 = vpop.f32.mrb[2].mxu1  ;;  %2453 = vmatpush1.bf16.msra.mxu1 %v8478_v4  ;;  %v285_v4 = vrot.slane %v276_v62, %v9656_v0  ;;  %v8567_v62 = vld [vmem:[#allocation8 + $0x60] sm:$0xff]  }
 0x1b3   :  { %v9650_v10 = vpop.f32.mrb[3].mxu1  ;;  %2454 = vmatprep.subr.bf16.mxu1 %v8483_v5  ;;  %v8526_v5 = vld [vmem:[#allocation5 + $0x1598] ss:$40 sps:$4 sm:$0xff]  }
 0x1b6   :  { %2455 = vmatpush1.bf16.msra.mxu1 %v8481_v9  ;;  %v8531_v9 = vld [vmem:[#allocation5 + $0x15ec] ss:$40 sps:$4 sm:$0xff]  }
 0x1b7   :  { %2456 = vmatprep.subr.bf16.mxu1 %v8486_v11  ;;  %v7965_v11 = vadd.f32 %v9644_v6, %v281_v3  ;;  %v8532_v6 = vld [vmem:[#allocation5 + $0x1638] ss:$40 sps:$4 sm:$0xff]  }
 0x1ba   :  { %2457 = vmatpush1.bf16.msra.mxu1 %v8484_v12  ;;  %v7967_v12 = vadd.f32 %v9646_v7, %v285_v4  ;;  %v8537_v7 = vld [vmem:[#allocation5 + $0x168c] ss:$40 sps:$4 sm:$0xff]  }
 0x1bb   :  { %2458 = vmatprep.subr.bf16.mxu1 %v8489_v13 }
 0x1be   :  { %2459 = vmatpush1.bf16.msra.mxu1 %v8487_v16  ;;  %v8529_v16 = vld [vmem:[#allocation5 + $0x15e8] ss:$40 sps:$4 sm:$0xff]  }
 0x1bf   :  { %2460 = vmatprep.subr.bf16.mxu1 %v8492_v17  ;;  %v7969_v17 = vadd.f32 %v9648_v8, %v281_v3  ;;  %v8570_v3 = vld [vmem:[#allocation8 + $0x28] sm:$0xff]  }
 0x1c2   :  { %2461 = vmatpush1.bf16.msra.mxu1 %v8490_v21  ;;  %v7971_v21 = vadd.f32 %v9650_v10, %v285_v4  ;;  %v8540_v10 = vld [vmem:[#allocation5 + $0x16dc] ss:$40 sps:$4 sm:$0xff]  }
 0x1c3   :  { %2462 = vmatprep.subr.bf16.mxu1 %v8495_v22  ;;  %v8571_v4 = vld [vmem:[#allocation8 + $0x70] sm:$0xff]  }
 0x1c6   :  { %2463 = vmatpush1.bf16.msra.mxu1 %v8493_v23 }
 0x1c7   :  { %2464 = vmatprep.subr.bf16.mxu1 %v8498_v25 }
 0x1ca   :  { %2465 = vmatpush1.bf16.msra.mxu1 %v8496_v30 }
 0x1cb   :  { %2466 = vmatprep.subr.bf16.mxu1 %v8501_v32 }
 0x1ce   :  { %2467 = vmatpush1.bf16.msra.mxu1 %v8499_v35  ;;  %v8538_v35 = vld [vmem:[#allocation5 + $0x16d8] ss:$40 sps:$4 sm:$0xff]  }
 0x1cf   :  { %2468 = vmatprep.subr.bf16.mxu1 %v8504_v36  ;;  %v8543_v36 = vld [vmem:[#allocation5 + $0x172c] ss:$40 sps:$4 sm:$0xff]  }
 0x1d2   :  { %2469 = vmatpush1.bf16.msra.mxu1 %v8502_v39  ;;  %v8544_v39 = vld [vmem:[#allocation5 + $0x1778] ss:$40 sps:$4 sm:$0xff]  }
 0x1d3   :  { %2470 = vmatprep.subr.bf16.mxu1 %v8507_v41  ;;  %v8549_v41 = vld [vmem:[#allocation5 + $0x17cc] ss:$40 sps:$4 sm:$0xff]  }
 0x1d6   :  { %2471 = vmatpush1.bf16.msra.mxu1 %v8505_v45  ;;  %v8552_v45 = vld [vmem:[#allocation5 + $0x181c] ss:$40 sps:$4 sm:$0xff]  }
 0x1d7   :  { %2472 = vmatprep.subr.bf16.mxu1 %v8510_v46  ;;  %v8550_v46 = vld [vmem:[#allocation5 + $0x1818] ss:$40 sps:$4 sm:$0xff]  }
 0x1da   :  { %2473 = vmatpush1.bf16.msra.mxu1 %v8508_v48  ;;  %v8555_v48 = vld [vmem:[#allocation5 + $0x186c] ss:$40 sps:$4 sm:$0xff]  }
 0x1db   :  { %2485 = vmatprep.subr.bf16.mxu1 %v8513_v49  ;;  %v8553_v49 = vld [vmem:[#allocation5 + $0x1868] ss:$40 sps:$4 sm:$0xff]  }
 0x1dd   :  { %2475 = vmatmul.mubr.bf16.vlgmr.msra.gmra.mrb[4].mxu1 %v9627_v31 }
 0x1de   :  { %2486 = vmatpush1.bf16.msra.mxu1 %v8511_v50  ;;  %2517 = vmatprep.mubr.bf16.mxu1 %v9631_v40  ;;  %v8558_v50 = vld [vmem:[#allocation5 + $0x18bc] ss:$40 sps:$4 sm:$0xff]  }
 0x1df   :  { %2487 = vmatprep.subr.bf16.mxu1 %v8516_v51  ;;  %v8556_v51 = vld [vmem:[#allocation5 + $0x18b8] ss:$40 sps:$4 sm:$0xff]  }
 0x1e2   :  { %2488 = vmatpush1.bf16.msra.mxu1 %v8514_v53  ;;  %v8559_v53 = vld [vmem:[#allocation8 + $0x40] sm:$0xff]  }
 0x1e3   :  { %2489 = vmatprep.subr.bf16.mxu1 %v8519_v54  ;;  %v8560_v54 = vld [vmem:[#allocation8] sm:$0xff]  }
 0x1e6   :  { %2490 = vmatpush1.bf16.msra.mxu1 %v8517_v57  ;;  %v8562_v57 = vld [vmem:[#allocation8 + $0x8] sm:$0xff]  }
 0x1e7   :  { %2491 = vmatprep.subr.bf16.mxu1 %v8522_v58  ;;  %v8563_v58 = vld [vmem:[#allocation8 + $0x50] sm:$0xff]  }
 0x1ea   :  { %2492 = vmatpush1.bf16.msra.mxu1 %v8520_v60  ;;  %v8565_v60 = vld [vmem:[#allocation8 + $0x58] sm:$0xff]  }
 0x1eb   :  { %2493 = vmatprep.subr.bf16.mxu1 %v8525_v61  ;;  %v8566_v61 = vld [vmem:[#allocation8 + $0x18] sm:$0xff]  }
 0x1ee   :  { %2494 = vmatpush1.bf16.msra.mxu1 %v8523_v1  ;;  %v8568_v1 = vld [vmem:[#allocation8 + $0x20] sm:$0xff]  }
 0x1ef   :  { %2495 = vmatprep.subr.bf16.mxu1 %v8528_v2  ;;  %v8569_v2 = vld [vmem:[#allocation8 + $0x68] sm:$0xff]  }
 0x1f1   :  { %v1294_v13 = vpop.f32.mrb[0].mxu0 }
 0x1f2   :  { %v7966_v18 = vadd.f32 %v7965_v11, %v1294_v13  ;;  %v1296_v19 = vpop.f32.mrb[1].mxu0  ;;  %2496 = vmatpush1.bf16.msra.mxu1 %v8526_v5  ;;  %v8572_v5 = vld [vmem:[#allocation8 + $0x30] sm:$0xff]   ;;  %v8574_v11 = vld [vmem:[#allocation8 + $0x38] sm:$0xff]  }
 0x1f3   :  { %v7968_v22 = vadd.f32 %v7967_v12, %v1296_v19  ;;  %v1298_v23 = vpop.f32.mrb[2].mxu0  ;;  %2497 = vmatprep.subr.bf16.mxu1 %v8531_v9  ;;  %v8573_v9 = vld [vmem:[#allocation8 + $0x78] sm:$0xff]   ;;  %v8587_v12 = vld [vmem:[#allocation8 + $0xf0] sm:$0xff]  }
 0x1f4   :  { %v7970_v24 = vadd.f32 %v7969_v17, %v1298_v23  ;;  %v1300_v25 = vpop.f32.mrb[3].mxu0  ;;  %v1303_v27 = vmax.f32 %v7966_v18, 0.0  ;;  %v8588_v13 = vld [vmem:[#allocation8 + $0xb0] sm:$0xff]   ;;  %7867 = vmatprep.subr.bf16.mxu0 %v8587_v12  ;;  %v8590_v17 = vld [vmem:[#allocation8 + $0xb8] sm:$0xff]  }
 0x1f5   :  { %v7972_v26 = vadd.f32 %v7971_v21, %v1300_v25  ;;  %v1304_v30 = vmax.f32 %v7968_v22, 0.0  ;;  %7868 = vmatpush3.bf16.msra.mxu0 %v8588_v13  ;;  %v8593_v18 = vld [vmem:[#allocation5 + $0x14] ss:$40 sps:$4 sm:$0xff]   ;;  %v1501_v19 = vld [vmem:[#allocation7 + $0x2] sm:$0x3] }
 0x1f6   :  { %v1305_v29 = vmax.f32 %v7970_v24, 0.0  ;;  %2498 = vmatpush1.bf16.msra.mxu1 %v8529_v16  ;;  %v8589_v16 = vld [vmem:[#allocation8 + $0xf8] sm:$0xff]   ;;  %v1510_v21 = vrot.slane %v1501_v19, %v9656_v0  ;;  %v8627_v12 = vld [vmem:[#allocation5 + $0x3d0] ss:$40 sps:$4 sm:$0xff]  }
 0x1f7   :  { %v1306_v32 = vmax.f32 %v7972_v26, 0.0  ;;  %2499 = vmatprep.subr.bf16.mxu1 %v8534_v20  ;;  %7869 = vmatprep.subr.bf16.mxu0 %v8589_v16  ;;  %v1506_v20 = vrot.slane %v1501_v19, %v9654_v63  ;;  %v8632_v13 = vld [vmem:[#allocation5 + $0x424] ss:$40 sps:$4 sm:$0xff]   ;;  %v8630_v16 = vld [vmem:[#allocation5 + $0x420] ss:$40 sps:$4 sm:$0xff]  }
 0x1f8   :  { %v9664_v8 = vpack.c.bf16 %v1305_v29, %v1303_v27  ;;  %v8638_v19 = vld [vmem:[#allocation5 + $0x4c4] ss:$40 sps:$4 sm:$0xff]  }
 0x1f9   :  { %v1308_v33 = vpack.c.bf16 %v1306_v32, %v1304_v30  ;;  %7870 = vmatpush3.bf16.msra.mxu0 %v8590_v17  ;;  %v8635_v17 = vld [vmem:[#allocation5 + $0x474] ss:$40 sps:$4 sm:$0xff]  }
 0x1fa   :  { %2500 = vmatpush1.bf16.msra.mxu1 %v8532_v6  ;;  %3812 = vmatprep.subr.bf16.mxu0 %v8593_v18  ;;  %v8633_v18 = vld [vmem:[#allocation5 + $0x470] ss:$40 sps:$4 sm:$0xff]  }
 0x1fb   :  { %2501 = vmatprep.subr.bf16.mxu1 %v8537_v7 }
 0x1fe   :  { %2502 = vmatpush1.bf16.msra.mxu1 %v8535_v34 }
 0x1ff   :  { %2503 = vmatprep.subr.bf16.mxu1 %v8540_v10  ;;  %v8591_v10 = vld [vmem:[#allocation5 + $0x10] ss:$40 sps:$4 sm:$0xff]  }
 0x202   :  { %2504 = vmatpush1.bf16.msra.mxu1 %v8538_v35  ;;  %v8596_v35 = vld [vmem:[#allocation5 + $0x64] ss:$40 sps:$4 sm:$0xff]  }
 0x203   :  { %2505 = vmatprep.subr.bf16.mxu1 %v8543_v36  ;;  %v8594_v36 = vld [vmem:[#allocation5 + $0x60] ss:$40 sps:$4 sm:$0xff]  }
 0x206   :  { %2506 = vmatpush1.bf16.msra.mxu1 %v8541_v37  ;;  %v8599_v37 = vld [vmem:[#allocation5 + $0xb4] ss:$40 sps:$4 sm:$0xff]  }
 0x207   :  { %2507 = vmatprep.subr.bf16.mxu1 %v8546_v38  ;;  %v8597_v38 = vld [vmem:[#allocation5 + $0xb0] ss:$40 sps:$4 sm:$0xff]  }
 0x20a   :  { %2508 = vmatpush1.bf16.msra.mxu1 %v8544_v39  ;;  %v8602_v39 = vld [vmem:[#allocation5 + $0x104] ss:$40 sps:$4 sm:$0xff]  }
 0x20b   :  { %2509 = vmatprep.subr.bf16.mxu1 %v8549_v41  ;;  %v8600_v41 = vld [vmem:[#allocation5 + $0x100] ss:$40 sps:$4 sm:$0xff]  }
 0x20e   :  { %2510 = vmatpush1.bf16.msra.mxu1 %v8547_v42  ;;  %v8605_v42 = vld [vmem:[#allocation5 + $0x154] ss:$40 sps:$4 sm:$0xff]  }
 0x20f   :  { %2511 = vmatprep.subr.bf16.mxu1 %v8552_v45  ;;  %v8603_v45 = vld [vmem:[#allocation5 + $0x150] ss:$40 sps:$4 sm:$0xff]  }
 0x212   :  { %2512 = vmatpush1.bf16.msra.mxu1 %v8550_v46  ;;  %v8608_v46 = vld [vmem:[#allocation5 + $0x1a4] ss:$40 sps:$4 sm:$0xff]  }
 0x213   :  { %2513 = vmatprep.subr.bf16.mxu1 %v8555_v48  ;;  %v8606_v48 = vld [vmem:[#allocation5 + $0x1a0] ss:$40 sps:$4 sm:$0xff]  }
 0x216   :  { %2514 = vmatpush1.bf16.msra.mxu1 %v8553_v49  ;;  %v8611_v49 = vld [vmem:[#allocation5 + $0x1f4] ss:$40 sps:$4 sm:$0xff]  }
 0x217   :  { %2515 = vmatprep.subr.bf16.mxu1 %v8558_v50 }
 0x21a   :  { %2516 = vmatpush1.bf16.msra.mxu1 %v8556_v51  ;;  %v8609_v51 = vld [vmem:[#allocation5 + $0x1f0] ss:$40 sps:$4 sm:$0xff]  }
 0x21b   :  { %7877 = vmatprep.subr.bf16.mxu1 %v8559_v53 }
 0x21d   :  { %2518 = vmatmul.mubr.bf16.vlgmr.msra.gmra.mrb[4].mxu1 %v9635_v43 }
 0x21e   :  { %7878 = vmatpush3.bf16.msra.mxu1 %v8560_v54  ;;  %2831 = vmatprep.mubr.bf16.mxu1 %v1308_v33  ;;  %v8614_v54 = vld [vmem:[#allocation5 + $0x244] ss:$40 sps:$4 sm:$0xff]  }
 0x21f   :  { %7879 = vmatprep.subr.bf16.mxu1 %v8561_v56 }
 0x222   :  { %7880 = vmatpush3.bf16.msra.mxu1 %v8562_v57 }
 0x223   :  { %7881 = vmatprep.subr.bf16.mxu1 %v8563_v58 }
 0x226   :  { %7882 = vmatpush3.bf16.msra.mxu1 %v8564_v59 }
 0x227   :  { %7883 = vmatprep.subr.bf16.mxu1 %v8565_v60  ;;  %v8612_v60 = vld [vmem:[#allocation5 + $0x240] ss:$40 sps:$4 sm:$0xff]  }
 0x22a   :  { %7884 = vmatpush3.bf16.msra.mxu1 %v8566_v61  ;;  %v8617_v61 = vld [vmem:[#allocation5 + $0x294] ss:$40 sps:$4 sm:$0xff]  }
 0x22b   :  { %7885 = vmatprep.subr.bf16.mxu1 %v8567_v62  ;;  %v8615_v62 = vld [vmem:[#allocation5 + $0x290] ss:$40 sps:$4 sm:$0xff]  }
 0x22e   :  { %7886 = vmatpush3.bf16.msra.mxu1 %v8568_v1  ;;  %v8620_v1 = vld [vmem:[#allocation5 + $0x2e4] ss:$40 sps:$4 sm:$0xff]  }
 0x22f   :  { %7887 = vmatprep.subr.bf16.mxu1 %v8569_v2  ;;  %v8618_v2 = vld [vmem:[#allocation5 + $0x2e0] ss:$40 sps:$4 sm:$0xff]  }
 0x232   :  { %7888 = vmatpush3.bf16.msra.mxu1 %v8570_v3  ;;  %v8623_v3 = vld [vmem:[#allocation5 + $0x334] ss:$40 sps:$4 sm:$0xff]  }
 0x233   :  { %7889 = vmatprep.subr.bf16.mxu1 %v8571_v4  ;;  %v8621_v4 = vld [vmem:[#allocation5 + $0x330] ss:$40 sps:$4 sm:$0xff]  }
 0x236   :  { %7890 = vmatpush3.bf16.msra.mxu1 %v8572_v5  ;;  %v8626_v5 = vld [vmem:[#allocation5 + $0x384] ss:$40 sps:$4 sm:$0xff]  }
 0x237   :  { %7891 = vmatprep.subr.bf16.mxu1 %v8573_v9  ;;  %v8624_v9 = vld [vmem:[#allocation5 + $0x380] ss:$40 sps:$4 sm:$0xff]  }
 0x23a   :  { %7892 = vmatpush3.bf16.msra.mxu1 %v8574_v11  ;;  %v8629_v11 = vld [vmem:[#allocation5 + $0x3d4] ss:$40 sps:$4 sm:$0xff]  }
 0x23d   :  { %2832 = vmatmul.mubr.bf16.vlgmr.msra.gmra.mrb[8].mxu1 %v9664_v8 }
 0x2f0   :  { %v2519_v22 = vpop.f32.mrb[4].mxu1 }
 0x2f1   :  { %v7973_v23 = vadd.f32 %v2519_v22, %v1506_v20  ;;  %v2521_v24 = vpop.f32.mrb[5].mxu1  ;;  %v8639_v22 = vld [vmem:[#allocation5 + $0x510] ss:$40 sps:$4 sm:$0xff]  }
 0x2f2   :  { %v7974_v25 = vadd.f32 %v2521_v24, %v1510_v21  ;;  %v2523_v26 = vpop.f32.mrb[6].mxu1  ;;  %v8642_v24 = vld [vmem:[#allocation5 + $0x560] ss:$40 sps:$4 sm:$0xff]  }
 0x2f3   :  { %v7975_v6 = vadd.f32 %v2523_v26, %v1506_v20  ;;  %v2525_v27 = vpop.f32.mrb[7].mxu1  ;;  %v2528_v7 = vmax.f32 %v7973_v23, 0.0  ;;  %v8636_v20 = vld [vmem:[#allocation5 + $0x4c0] ss:$40 sps:$4 sm:$0xff]   ;;  %v8644_v23 = vld [vmem:[#allocation5 + $0x564] ss:$40 sps:$4 sm:$0xff]  }
 0x2f4   :  { %v7976_v29 = vadd.f32 %v2525_v27, %v1510_v21  ;;  %v2529_v32 = vmax.f32 %v7974_v25, 0.0  ;;  %v8641_v21 = vld [vmem:[#allocation5 + $0x514] ss:$40 sps:$4 sm:$0xff]   ;;  %v8645_v26 = vld [vmem:[#allocation5 + $0x5b0] ss:$40 sps:$4 sm:$0xff]  }
 0x2f5   :  { %v2530_v30 = vmax.f32 %v7975_v6, 0.0  ;;  %v8647_v25 = vld [vmem:[#allocation5 + $0x5b4] ss:$40 sps:$4 sm:$0xff]   ;;  %v8650_v6 = vld [vmem:[#allocation5 + $0x604] ss:$40 sps:$4 sm:$0xff]  }
 0x2f6   :  { %v2531_v8 = vmax.f32 %v7976_v29, 0.0  ;;  %v8648_v27 = vld [vmem:[#allocation5 + $0x600] ss:$40 sps:$4 sm:$0xff]   ;;  %v8653_v29 = vld [vmem:[#allocation5 + $0x654] ss:$40 sps:$4 sm:$0xff]  }
 0x2f7   :  { %v2532_v33 = vpack.c.bf16 %v2530_v30, %v2528_v7  ;;  %v8651_v7 = vld [vmem:[#allocation5 + $0x650] ss:$40 sps:$4 sm:$0xff]   ;;  %v8656_v30 = vld [vmem:[#allocation5 + $0x6a4] ss:$40 sps:$4 sm:$0xff]  }
 0x2f8   :  { %v2533_v34 = vpack.c.bf16 %v2531_v8, %v2529_v32  ;;  %v8654_v32 = vld [vmem:[#allocation5 + $0x6a0] ss:$40 sps:$4 sm:$0xff]   ;;  %v8659_v8 = vld [vmem:[#allocation5 + $0x6f4] ss:$40 sps:$4 sm:$0xff]  }
 0x2fa   :  { %2694 = vmatprep.mubr.bf16.mxu0 %v2533_v34  ;;  %v8662_v34 = vld [vmem:[#allocation5 + $0x744] ss:$40 sps:$4 sm:$0xff]  }
 0x2fb   :  { %2695 = vmatmul.mubr.bf16.vlgmr.msra.gmra.mrb[4].mxu0 %v2532_v33  ;;  %v8657_v33 = vld [vmem:[#allocation5 + $0x6f0] ss:$40 sps:$4 sm:$0xff]  }
 0x2fc   :  { %3813 = vmatpush1.bf16.msra.mxu0 %v8591_v10  ;;  %3844 = vmatprep.mubr.bf16.mxu0 %v9607_v52  ;;  %v8660_v10 = vld [vmem:[#allocation5 + $0x740] ss:$40 sps:$4 sm:$0xff]  }
 0x2fd   :  { %3814 = vmatprep.subr.bf16.mxu0 %v8596_v35  ;;  %v8665_v35 = vld [vmem:[#allocation5 + $0x794] ss:$40 sps:$4 sm:$0xff]  }
 0x300   :  { %3815 = vmatpush1.bf16.msra.mxu0 %v8594_v36  ;;  %v8663_v36 = vld [vmem:[#allocation5 + $0x790] ss:$40 sps:$4 sm:$0xff]  }
 0x301   :  { %3816 = vmatprep.subr.bf16.mxu0 %v8599_v37  ;;  %v8668_v37 = vld [vmem:[#allocation5 + $0x7e4] ss:$40 sps:$4 sm:$0xff]  }
 0x304   :  { %3817 = vmatpush1.bf16.msra.mxu0 %v8597_v38  ;;  %v8666_v38 = vld [vmem:[#allocation5 + $0x7e0] ss:$40 sps:$4 sm:$0xff]  }
 0x305   :  { %3818 = vmatprep.subr.bf16.mxu0 %v8602_v39  ;;  %v8671_v39 = vld [vmem:[#allocation5 + $0x834] ss:$40 sps:$4 sm:$0xff]  }
 0x308   :  { %3819 = vmatpush1.bf16.msra.mxu0 %v8600_v41  ;;  %v8669_v41 = vld [vmem:[#allocation5 + $0x830] ss:$40 sps:$4 sm:$0xff]  }
 0x309   :  { %3820 = vmatprep.subr.bf16.mxu0 %v8605_v42  ;;  %v8674_v42 = vld [vmem:[#allocation5 + $0x884] ss:$40 sps:$4 sm:$0xff]  }
 0x30c   :  { %3821 = vmatpush1.bf16.msra.mxu0 %v8603_v45  ;;  %v8672_v45 = vld [vmem:[#allocation5 + $0x880] ss:$40 sps:$4 sm:$0xff]  }
 0x30d   :  { %3822 = vmatprep.subr.bf16.mxu0 %v8608_v46  ;;  %v8677_v46 = vld [vmem:[#allocation5 + $0x8d4] ss:$40 sps:$4 sm:$0xff]  }
 0x310   :  { %3823 = vmatpush1.bf16.msra.mxu0 %v8606_v48  ;;  %v7893_v50 = vpop.f32.mrb[8].mxu1  ;;  %v8675_v48 = vld [vmem:[#allocation5 + $0x8d0] ss:$40 sps:$4 sm:$0xff]  }
 0x311   :  { %v7894_v53 = vpop.f32.mrb[9].mxu1  ;;  %3824 = vmatprep.subr.bf16.mxu0 %v8611_v49  ;;  %v8680_v49 = vld [vmem:[#allocation5 + $0x924] ss:$40 sps:$4 sm:$0xff]  }
 0x312   :  { %v9671_v56 = vadd.f32 %v7894_v53, %v7893_v50  ;;  %v7896_v57 = vpop.f32.mrb[10].mxu1  ;;  %v8678_v50 = vld [vmem:[#allocation5 + $0x920] ss:$40 sps:$4 sm:$0xff]   ;;  %v8681_v53 = vld [vmem:[#allocation5 + $0x970] ss:$40 sps:$4 sm:$0xff]  }
 0x313   :  { %v7897_v58 = vpop.f32.mrb[11].mxu1 }
 0x314   :  { %v9673_v59 = vadd.f32 %v7897_v58, %v7896_v57  ;;  %3825 = vmatpush1.bf16.msra.mxu0 %v8609_v51  ;;  %v8683_v51 = vld [vmem:[#allocation5 + $0x974] ss:$40 sps:$4 sm:$0xff]   ;;  %v8684_v57 = vld [vmem:[#allocation5 + $0x9c0] ss:$40 sps:$4 sm:$0xff]  }
 0x315   :  { %3826 = vmatprep.subr.bf16.mxu0 %v8614_v54  ;;  %v8686_v54 = vld [vmem:[#allocation5 + $0x9c4] ss:$40 sps:$4 sm:$0xff]   ;;  %v8689_v58 = vld [vmem:[#allocation5 + $0xa14] ss:$40 sps:$4 sm:$0xff]  }
 0x318   :  { %3827 = vmatpush1.bf16.msra.mxu0 %v8612_v60  ;;  %v8687_v60 = vld [vmem:[#allocation5 + $0xa10] ss:$40 sps:$4 sm:$0xff]  }
 0x319   :  { %3828 = vmatprep.subr.bf16.mxu0 %v8617_v61  ;;  %v8692_v61 = vld [vmem:[#allocation5 + $0xa64] ss:$40 sps:$4 sm:$0xff]  }
 0x31c   :  { %3829 = vmatpush1.bf16.msra.mxu0 %v8615_v62  ;;  %v8690_v62 = vld [vmem:[#allocation5 + $0xa60] ss:$40 sps:$4 sm:$0xff]  }
 0x31d   :  { %3830 = vmatprep.subr.bf16.mxu0 %v8620_v1  ;;  %v8695_v1 = vld [vmem:[#allocation5 + $0xab4] ss:$40 sps:$4 sm:$0xff]  }
 0x320   :  { %3831 = vmatpush1.bf16.msra.mxu0 %v8618_v2  ;;  %v8693_v2 = vld [vmem:[#allocation5 + $0xab0] ss:$40 sps:$4 sm:$0xff]  }
 0x321   :  { %3832 = vmatprep.subr.bf16.mxu0 %v8623_v3  ;;  %v8698_v3 = vld [vmem:[#allocation5 + $0xb04] ss:$40 sps:$4 sm:$0xff]  }
 0x324   :  { %3833 = vmatpush1.bf16.msra.mxu0 %v8621_v4  ;;  %v8696_v4 = vld [vmem:[#allocation5 + $0xb00] ss:$40 sps:$4 sm:$0xff]  }
 0x325   :  { %3834 = vmatprep.subr.bf16.mxu0 %v8626_v5  ;;  %v8701_v5 = vld [vmem:[#allocation5 + $0xb54] ss:$40 sps:$4 sm:$0xff]  }
 0x328   :  { %3835 = vmatpush1.bf16.msra.mxu0 %v8624_v9  ;;  %v8699_v9 = vld [vmem:[#allocation5 + $0xb50] ss:$40 sps:$4 sm:$0xff]  }
 0x329   :  { %3836 = vmatprep.subr.bf16.mxu0 %v8629_v11  ;;  %v8704_v11 = vld [vmem:[#allocation5 + $0xba4] ss:$40 sps:$4 sm:$0xff]  }
 0x32c   :  { %3837 = vmatpush1.bf16.msra.mxu0 %v8627_v12  ;;  %v8702_v12 = vld [vmem:[#allocation5 + $0xba0] ss:$40 sps:$4 sm:$0xff]  }
 0x32d   :  { %3838 = vmatprep.subr.bf16.mxu0 %v8632_v13  ;;  %v8707_v13 = vld [vmem:[#allocation5 + $0xbf4] ss:$40 sps:$4 sm:$0xff]  }
 0x330   :  { %3839 = vmatpush1.bf16.msra.mxu0 %v8630_v16  ;;  %v8705_v16 = vld [vmem:[#allocation5 + $0xbf0] ss:$40 sps:$4 sm:$0xff]  }
 0x331   :  { %3840 = vmatprep.subr.bf16.mxu0 %v8635_v17  ;;  %v8710_v17 = vld [vmem:[#allocation5 + $0xc44] ss:$40 sps:$4 sm:$0xff]  }
 0x334   :  { %3841 = vmatpush1.bf16.msra.mxu0 %v8633_v18  ;;  %v8708_v18 = vld [vmem:[#allocation5 + $0xc40] ss:$40 sps:$4 sm:$0xff]  }
 0x335   :  { %3842 = vmatprep.subr.bf16.mxu0 %v8638_v19  ;;  %v8713_v19 = vld [vmem:[#allocation5 + $0xc94] ss:$40 sps:$4 sm:$0xff]  }
 0x338   :  { %3843 = vmatpush1.bf16.msra.mxu0 %v8636_v20  ;;  %v8711_v20 = vld [vmem:[#allocation5 + $0xc90] ss:$40 sps:$4 sm:$0xff]  }
 0x339   :  { %3855 = vmatprep.subr.bf16.mxu0 %v8641_v21  ;;  %v8716_v21 = vld [vmem:[#allocation5 + $0xce4] ss:$40 sps:$4 sm:$0xff]  }
 0x33b   :  { %3845 = vmatmul.mubr.bf16.vlgmr.msra.gmra.mrb[8].mxu0 %v9613_v14 }
 0x33c   :  { %3856 = vmatpush1.bf16.msra.mxu0 %v8639_v22  ;;  %3887 = vmatprep.mubr.bf16.mxu0 %v9619_v44  ;;  %v8714_v22 = vld [vmem:[#allocation5 + $0xce0] ss:$40 sps:$4 sm:$0xff]  }
 0x33d   :  { %3857 = vmatprep.subr.bf16.mxu0 %v8644_v23  ;;  %v8719_v23 = vld [vmem:[#allocation5 + $0xd34] ss:$40 sps:$4 sm:$0xff]  }
 0x340   :  { %3858 = vmatpush1.bf16.msra.mxu0 %v8642_v24  ;;  %v8717_v24 = vld [vmem:[#allocation5 + $0xd30] ss:$40 sps:$4 sm:$0xff]  }
 0x341   :  { %3859 = vmatprep.subr.bf16.mxu0 %v8647_v25  ;;  %v8722_v25 = vld [vmem:[#allocation5 + $0xd84] ss:$40 sps:$4 sm:$0xff]  }
 0x344   :  { %3860 = vmatpush1.bf16.msra.mxu0 %v8645_v26  ;;  %v8720_v26 = vld [vmem:[#allocation5 + $0xd80] ss:$40 sps:$4 sm:$0xff]  }
 0x345   :  { %3861 = vmatprep.subr.bf16.mxu0 %v8650_v6  ;;  %v8725_v6 = vld [vmem:[#allocation5 + $0xdd4] ss:$40 sps:$4 sm:$0xff]  }
 0x348   :  { %3862 = vmatpush1.bf16.msra.mxu0 %v8648_v27  ;;  %v8723_v27 = vld [vmem:[#allocation5 + $0xdd0] ss:$40 sps:$4 sm:$0xff]  }
 0x349   :  { %3863 = vmatprep.subr.bf16.mxu0 %v8653_v29  ;;  %v8728_v29 = vld [vmem:[#allocation5 + $0xe24] ss:$40 sps:$4 sm:$0xff]  }
 0x34c   :  { %3864 = vmatpush1.bf16.msra.mxu0 %v8651_v7  ;;  %v8726_v7 = vld [vmem:[#allocation5 + $0xe20] ss:$40 sps:$4 sm:$0xff]  }
 0x34d   :  { %3865 = vmatprep.subr.bf16.mxu0 %v8656_v30  ;;  %v8731_v30 = vld [vmem:[#allocation5 + $0xe74] ss:$40 sps:$4 sm:$0xff]  }
 0x350   :  { %3866 = vmatpush1.bf16.msra.mxu0 %v8654_v32  ;;  %v8729_v32 = vld [vmem:[#allocation5 + $0xe70] ss:$40 sps:$4 sm:$0xff]  }
 0x351   :  { %3867 = vmatprep.subr.bf16.mxu0 %v8659_v8  ;;  %v8734_v8 = vld [vmem:[#allocation5 + $0xec4] ss:$40 sps:$4 sm:$0xff]  }
 0x354   :  { %3868 = vmatpush1.bf16.msra.mxu0 %v8657_v33  ;;  %v8732_v33 = vld [vmem:[#allocation5 + $0xec0] ss:$40 sps:$4 sm:$0xff]  }
 0x355   :  { %3869 = vmatprep.subr.bf16.mxu0 %v8662_v34  ;;  %v8737_v34 = vld [vmem:[#allocation5 + $0xf14] ss:$40 sps:$4 sm:$0xff]  }
 0x358   :  { %3870 = vmatpush1.bf16.msra.mxu0 %v8660_v10  ;;  %v8735_v10 = vld [vmem:[#allocation5 + $0xf10] ss:$40 sps:$4 sm:$0xff]  }
 0x359   :  { %3871 = vmatprep.subr.bf16.mxu0 %v8665_v35  ;;  %v8740_v35 = vld [vmem:[#allocation5 + $0xf64] ss:$40 sps:$4 sm:$0xff]  }
 0x35c   :  { %3872 = vmatpush1.bf16.msra.mxu0 %v8663_v36  ;;  %v8831_v36 = vld [vmem:[#allocation8 + $0x140] sm:$0xff]  }
 0x35d   :  { %3873 = vmatprep.subr.bf16.mxu0 %v8668_v37  ;;  %v8832_v37 = vld [vmem:[#allocation8 + $0x100] sm:$0xff]   ;;  %7899 = vmatprep.subr.bf16.mxu1 %v8831_v36 }
 0x35e   :  { %7900 = vmatpush3.bf16.msra.mxu1 %v8832_v37  ;;  %v8786_v36 = vld [vmem:[#allocation5 + $0x1460] ss:$40 sps:$4 sm:$0xff]   ;;  %v8791_v37 = vld [vmem:[#allocation5 + $0x14b4] ss:$40 sps:$4 sm:$0xff]  }
 0x360   :  { %3874 = vmatpush1.bf16.msra.mxu0 %v8666_v38  ;;  %v8833_v38 = vld [vmem:[#allocation8 + $0x148] sm:$0xff]  }
 0x361   :  { %3875 = vmatprep.subr.bf16.mxu0 %v8671_v39  ;;  %v8738_v39 = vld [vmem:[#allocation5 + $0xf60] ss:$40 sps:$4 sm:$0xff]   ;;  %7901 = vmatprep.subr.bf16.mxu1 %v8833_v38  ;;  %v8789_v38 = vld [vmem:[#allocation5 + $0x14b0] ss:$40 sps:$4 sm:$0xff]  }
 0x364   :  { %3876 = vmatpush1.bf16.msra.mxu0 %v8669_v41  ;;  %v8743_v41 = vld [vmem:[#allocation5 + $0xfb4] ss:$40 sps:$4 sm:$0xff]  }
 0x365   :  { %3877 = vmatprep.subr.bf16.mxu0 %v8674_v42  ;;  %v8834_v42 = vld [vmem:[#allocation8 + $0x108] sm:$0xff]  }
 0x366   :  { %7902 = vmatpush3.bf16.msra.mxu1 %v8834_v42  ;;  %v8797_v42 = vld [vmem:[#allocation5 + $0x1554] ss:$40 sps:$4 sm:$0xff]  }
 0x368   :  { %3878 = vmatpush1.bf16.msra.mxu0 %v8672_v45  ;;  %v8835_v45 = vld [vmem:[#allocation8 + $0x150] sm:$0xff]  }
 0x369   :  { %3879 = vmatprep.subr.bf16.mxu0 %v8677_v46  ;;  %v8741_v46 = vld [vmem:[#allocation5 + $0xfb0] ss:$40 sps:$4 sm:$0xff]   ;;  %7903 = vmatprep.subr.bf16.mxu1 %v8835_v45 }
 0x36a   :  { %v8795_v45 = vld [vmem:[#allocation5 + $0x1550] ss:$40 sps:$4 sm:$0xff]  }
 0x36c   :  { %3880 = vmatpush1.bf16.msra.mxu0 %v8675_v48  ;;  %v8746_v48 = vld [vmem:[#allocation5 + $0x1004] ss:$40 sps:$4 sm:$0xff]  }
 0x36d   :  { %3881 = vmatprep.subr.bf16.mxu0 %v8680_v49  ;;  %v8836_v49 = vld [vmem:[#allocation8 + $0x110] sm:$0xff]  }
 0x36e   :  { %7904 = vmatpush3.bf16.msra.mxu1 %v8836_v49  ;;  %v8803_v49 = vld [vmem:[#allocation5 + $0x15f4] ss:$40 sps:$4 sm:$0xff]  }
 0x370   :  { %3882 = vmatpush1.bf16.msra.mxu0 %v8678_v50  ;;  %v8837_v50 = vld [vmem:[#allocation8 + $0x158] sm:$0xff]  }
 0x371   :  { %3883 = vmatprep.subr.bf16.mxu0 %v8683_v51  ;;  %v8744_v51 = vld [vmem:[#allocation5 + $0x1000] ss:$40 sps:$4 sm:$0xff]   ;;  %7905 = vmatprep.subr.bf16.mxu1 %v8837_v50  ;;  %v8801_v50 = vld [vmem:[#allocation5 + $0x15f0] ss:$40 sps:$4 sm:$0xff]  }
 0x374   :  { %3884 = vmatpush1.bf16.msra.mxu0 %v8681_v53  ;;  %v8749_v53 = vld [vmem:[#allocation5 + $0x1054] ss:$40 sps:$4 sm:$0xff]  }
 0x375   :  { %3885 = vmatprep.subr.bf16.mxu0 %v8686_v54  ;;  %v8838_v54 = vld [vmem:[#allocation8 + $0x118] sm:$0xff]  }
 0x376   :  { %7906 = vmatpush3.bf16.msra.mxu1 %v8838_v54  ;;  %v8809_v54 = vld [vmem:[#allocation5 + $0x1694] ss:$40 sps:$4 sm:$0xff]  }
 0x378   :  { %3886 = vmatpush1.bf16.msra.mxu0 %v8684_v57  ;;  %v8839_v57 = vld [vmem:[#allocation8 + $0x160] sm:$0xff]  }
 0x379   :  { %3898 = vmatprep.subr.bf16.mxu0 %v8689_v58  ;;  %v8747_v58 = vld [vmem:[#allocation5 + $0x1050] ss:$40 sps:$4 sm:$0xff]   ;;  %7907 = vmatprep.subr.bf16.mxu1 %v8839_v57 }
 0x37a   :  { %v8807_v57 = vld [vmem:[#allocation5 + $0x1690] ss:$40 sps:$4 sm:$0xff]  }
 0x37b   :  { %3888 = vmatmul.mubr.bf16.vlgmr.msra.gmra.mrb[8].mxu0 %v9625_v28 }
 0x37c   :  { %3899 = vmatpush1.bf16.msra.mxu0 %v8687_v60  ;;  %3930 = vmatprep.mubr.bf16.mxu0 %v9610_v55  ;;  %v8752_v60 = vld [vmem:[#allocation5 + $0x10a4] ss:$40 sps:$4 sm:$0xff]  }
 0x37d   :  { %3900 = vmatprep.subr.bf16.mxu0 %v8692_v61  ;;  %v8840_v61 = vld [vmem:[#allocation8 + $0x120] sm:$0xff]  }
 0x37e   :  { %7908 = vmatpush3.bf16.msra.mxu1 %v8840_v61  ;;  %v8815_v61 = vld [vmem:[#allocation5 + $0x1734] ss:$40 sps:$4 sm:$0xff]  }
 0x380   :  { %3901 = vmatpush1.bf16.msra.mxu0 %v8690_v62  ;;  %v8841_v62 = vld [vmem:[#allocation8 + $0x168] sm:$0xff]  }
 0x381   :  { %3902 = vmatprep.subr.bf16.mxu0 %v8695_v1  ;;  %v8750_v1 = vld [vmem:[#allocation5 + $0x10a0] ss:$40 sps:$4 sm:$0xff]   ;;  %7909 = vmatprep.subr.bf16.mxu1 %v8841_v62  ;;  %v8813_v62 = vld [vmem:[#allocation5 + $0x1730] ss:$40 sps:$4 sm:$0xff]  }
 0x384   :  { %3903 = vmatpush1.bf16.msra.mxu0 %v8693_v2  ;;  %v8755_v2 = vld [vmem:[#allocation5 + $0x10f4] ss:$40 sps:$4 sm:$0xff]  }
 0x385   :  { %3904 = vmatprep.subr.bf16.mxu0 %v8698_v3 }
 0x388   :  { %3905 = vmatpush1.bf16.msra.mxu0 %v8696_v4  ;;  %v8842_v4 = vld [vmem:[#allocation8 + $0x128] sm:$0xff]  }
 0x389   :  { %3906 = vmatprep.subr.bf16.mxu0 %v8701_v5  ;;  %7910 = vmatpush3.bf16.msra.mxu1 %v8842_v4  ;;  %v8819_v4 = vld [vmem:[#allocation5 + $0x17d0] ss:$40 sps:$4 sm:$0xff]  }
 0x38c   :  { %3907 = vmatpush1.bf16.msra.mxu0 %v8699_v9 }
 0x38d   :  { %3908 = vmatprep.subr.bf16.mxu0 %v8704_v11 }
 0x390   :  { %3909 = vmatpush1.bf16.msra.mxu0 %v8702_v12  ;;  %v8753_v12 = vld [vmem:[#allocation5 + $0x10f0] ss:$40 sps:$4 sm:$0xff]  }
 0x391   :  { %3910 = vmatprep.subr.bf16.mxu0 %v8707_v13 }
 0x394   :  { %3911 = vmatpush1.bf16.msra.mxu0 %v8705_v16  ;;  %v8758_v16 = vld [vmem:[#allocation5 + $0x1144] ss:$40 sps:$4 sm:$0xff]  }
 0x395   :  { %3912 = vmatprep.subr.bf16.mxu0 %v8710_v17 }
 0x398   :  { %3913 = vmatpush1.bf16.msra.mxu0 %v8708_v18 }
 0x399   :  { %3914 = vmatprep.subr.bf16.mxu0 %v8713_v19 }
 0x39c   :  { %3915 = vmatpush1.bf16.msra.mxu0 %v8711_v20  ;;  %v8756_v20 = vld [vmem:[#allocation5 + $0x1140] ss:$40 sps:$4 sm:$0xff]  }
 0x39d   :  { %3916 = vmatprep.subr.bf16.mxu0 %v8716_v21  ;;  %v8761_v21 = vld [vmem:[#allocation5 + $0x1194] ss:$40 sps:$4 sm:$0xff]  }
 0x3a0   :  { %3917 = vmatpush1.bf16.msra.mxu0 %v8714_v22  ;;  %v8759_v22 = vld [vmem:[#allocation5 + $0x1190] ss:$40 sps:$4 sm:$0xff]  }
 0x3a1   :  { %3918 = vmatprep.subr.bf16.mxu0 %v8719_v23  ;;  %v8764_v23 = vld [vmem:[#allocation5 + $0x11e4] ss:$40 sps:$4 sm:$0xff]  }
 0x3a4   :  { %3919 = vmatpush1.bf16.msra.mxu0 %v8717_v24  ;;  %v8762_v24 = vld [vmem:[#allocation5 + $0x11e0] ss:$40 sps:$4 sm:$0xff]  }
 0x3a5   :  { %3920 = vmatprep.subr.bf16.mxu0 %v8722_v25  ;;  %v8767_v25 = vld [vmem:[#allocation5 + $0x1234] ss:$40 sps:$4 sm:$0xff]  }
 0x3a8   :  { %3921 = vmatpush1.bf16.msra.mxu0 %v8720_v26  ;;  %v8770_v26 = vld [vmem:[#allocation5 + $0x1284] ss:$40 sps:$4 sm:$0xff]  }
 0x3a9   :  { %3922 = vmatprep.subr.bf16.mxu0 %v8725_v6  ;;  %v8768_v6 = vld [vmem:[#allocation5 + $0x1280] ss:$40 sps:$4 sm:$0xff]  }
 0x3ac   :  { %3923 = vmatpush1.bf16.msra.mxu0 %v8723_v27  ;;  %v8771_v27 = vld [vmem:[#allocation5 + $0x12d0] ss:$40 sps:$4 sm:$0xff]  }
 0x3ad   :  { %3924 = vmatprep.subr.bf16.mxu0 %v8728_v29  ;;  %v8776_v29 = vld [vmem:[#allocation5 + $0x1324] ss:$40 sps:$4 sm:$0xff]  }
 0x3b0   :  { %3925 = vmatpush1.bf16.msra.mxu0 %v8726_v7  ;;  %v8774_v7 = vld [vmem:[#allocation5 + $0x1320] ss:$40 sps:$4 sm:$0xff]  }
 0x3b1   :  { %3926 = vmatprep.subr.bf16.mxu0 %v8731_v30  ;;  %v8779_v30 = vld [vmem:[#allocation5 + $0x1374] ss:$40 sps:$4 sm:$0xff]  }
 0x3b4   :  { %3927 = vmatpush1.bf16.msra.mxu0 %v8729_v32  ;;  %v8777_v32 = vld [vmem:[#allocation5 + $0x1370] ss:$40 sps:$4 sm:$0xff]  }
 0x3b5   :  { %3928 = vmatprep.subr.bf16.mxu0 %v8734_v8  ;;  %v8782_v8 = vld [vmem:[#allocation5 + $0x13c4] ss:$40 sps:$4 sm:$0xff]  }
 0x3b8   :  { %3929 = vmatpush1.bf16.msra.mxu0 %v8732_v33  ;;  %v8780_v33 = vld [vmem:[#allocation5 + $0x13c0] ss:$40 sps:$4 sm:$0xff]  }
 0x3b9   :  { %3941 = vmatprep.subr.bf16.mxu0 %v8737_v34  ;;  %v8785_v34 = vld [vmem:[#allocation5 + $0x1414] ss:$40 sps:$4 sm:$0xff]  }
 0x3bb   :  { %3931 = vmatmul.mubr.bf16.vlgmr.msra.gmra.mrb[8].mxu0 %v9615_v15 }
 0x3bc   :  { %3942 = vmatpush1.bf16.msra.mxu0 %v8735_v10  ;;  %3973 = vmatprep.mubr.bf16.mxu0 %v9621_v47  ;;  %v8783_v10 = vld [vmem:[#allocation5 + $0x1410] ss:$40 sps:$4 sm:$0xff]  }
 0x3bd   :  { %3943 = vmatprep.subr.bf16.mxu0 %v8740_v35  ;;  %v8788_v35 = vld [vmem:[#allocation5 + $0x1464] ss:$40 sps:$4 sm:$0xff]  }
 0x3c0   :  { %3944 = vmatpush1.bf16.msra.mxu0 %v8738_v39  ;;  %v8794_v39 = vld [vmem:[#allocation5 + $0x1504] ss:$40 sps:$4 sm:$0xff]  }
 0x3c1   :  { %3945 = vmatprep.subr.bf16.mxu0 %v8743_v41  ;;  %v8792_v41 = vld [vmem:[#allocation5 + $0x1500] ss:$40 sps:$4 sm:$0xff]  }
 0x3c4   :  { %3946 = vmatpush1.bf16.msra.mxu0 %v8741_v46  ;;  %v8800_v46 = vld [vmem:[#allocation5 + $0x15a4] ss:$40 sps:$4 sm:$0xff]  }
 0x3c5   :  { %3947 = vmatprep.subr.bf16.mxu0 %v8746_v48  ;;  %v8798_v48 = vld [vmem:[#allocation5 + $0x15a0] ss:$40 sps:$4 sm:$0xff]  }
 0x3c8   :  { %3948 = vmatpush1.bf16.msra.mxu0 %v8744_v51  ;;  %v8806_v51 = vld [vmem:[#allocation5 + $0x1644] ss:$40 sps:$4 sm:$0xff]  }
 0x3c9   :  { %3949 = vmatprep.subr.bf16.mxu0 %v8749_v53  ;;  %v8804_v53 = vld [vmem:[#allocation5 + $0x1640] ss:$40 sps:$4 sm:$0xff]  }
 0x3cc   :  { %3950 = vmatpush1.bf16.msra.mxu0 %v8747_v58  ;;  %v8812_v58 = vld [vmem:[#allocation5 + $0x16e4] ss:$40 sps:$4 sm:$0xff]  }
 0x3cd   :  { %3951 = vmatprep.subr.bf16.mxu0 %v8752_v60  ;;  %v8810_v60 = vld [vmem:[#allocation5 + $0x16e0] ss:$40 sps:$4 sm:$0xff]  }
 0x3ce   :  { %v7871_v3 = vpop.f32.mrb[4].mxu0 }
 0x3cf   :  { %v7872_v5 = vpop.f32.mrb[5].mxu0 }
 0x3d0   :  { %v7873_v9 = vadd.f32 %v7872_v5, %v7871_v3  ;;  %3952 = vmatpush1.bf16.msra.mxu0 %v8750_v1  ;;  %v7874_v11 = vpop.f32.mrb[6].mxu0  ;;  %v8818_v1 = vld [vmem:[#allocation5 + $0x1784] ss:$40 sps:$4 sm:$0xff]   ;;  %v8821_v3 = vld [vmem:[#allocation5 + $0x17d4] ss:$40 sps:$4 sm:$0xff]  }
 0x3d1   :  { %v7875_v13 = vpop.f32.mrb[7].mxu0  ;;  %3953 = vmatprep.subr.bf16.mxu0 %v8755_v2  ;;  %v8816_v2 = vld [vmem:[#allocation5 + $0x1780] ss:$40 sps:$4 sm:$0xff]   ;;  %v8824_v5 = vld [vmem:[#allocation5 + $0x1824] ss:$40 sps:$4 sm:$0xff]  }
 0x3d2   :  { %v9682_v17 = vadd.f32 %v9671_v56, %v7873_v9  ;;  %v7876_v18 = vadd.f32 %v7875_v13, %v7874_v11  ;;  %v8765_v56 = vld [vmem:[#allocation5 + $0x1230] ss:$40 sps:$4 sm:$0xff]   ;;  %v8822_v9 = vld [vmem:[#allocation5 + $0x1820] ss:$40 sps:$4 sm:$0xff]   ;;  %v8827_v11 = vld [vmem:[#allocation5 + $0x1874] ss:$40 sps:$4 sm:$0xff]  }
 0x3d3   :  { %v8830_v13 = vld [vmem:[#allocation5 + $0x18c4] ss:$40 sps:$4 sm:$0xff]  }
 0x3d4   :  { %v9685_v19 = vadd.f32 %v9673_v59, %v7876_v18  ;;  %3954 = vmatpush1.bf16.msra.mxu0 %v8753_v12  ;;  %v8773_v59 = vld [vmem:[#allocation5 + $0x12d4] ss:$40 sps:$4 sm:$0xff]   ;;  %v8825_v12 = vld [vmem:[#allocation5 + $0x1870] ss:$40 sps:$4 sm:$0xff]  }
 0x3d5   :  { %3955 = vmatprep.subr.bf16.mxu0 %v8758_v16  ;;  %v8828_v16 = vld [vmem:[#allocation5 + $0x18c0] ss:$40 sps:$4 sm:$0xff]  }
 0x3d6   :  { %v8843_v18 = vld [vmem:[#allocation8 + $0x170] sm:$0xff]  }
 0x3d7   :  { %7911 = vmatprep.subr.bf16.mxu1 %v8843_v18  ;;  %v8889_v18 = vld [vmem:[#allocation5 + $0x478] ss:$40 sps:$4 sm:$0xff]  }
 0x3d8   :  { %3956 = vmatpush1.bf16.msra.mxu0 %v8756_v20  ;;  %v8844_v20 = vld [vmem:[#allocation8 + $0x130] sm:$0xff]  }
 0x3d9   :  { %3957 = vmatprep.subr.bf16.mxu0 %v8761_v21  ;;  %7912 = vmatpush3.bf16.msra.mxu1 %v8844_v20  ;;  %v8845_v21 = vld [vmem:[#allocation8 + $0x178] sm:$0xff]   ;;  %v8894_v20 = vld [vmem:[#allocation5 + $0x4cc] ss:$40 sps:$4 sm:$0xff]  }
 0x3da   :  { %7913 = vmatprep.subr.bf16.mxu1 %v8845_v21  ;;  %v8892_v21 = vld [vmem:[#allocation5 + $0x4c8] ss:$40 sps:$4 sm:$0xff]  }
 0x3dc   :  { %3958 = vmatpush1.bf16.msra.mxu0 %v8759_v22  ;;  %v8846_v22 = vld [vmem:[#allocation8 + $0x138] sm:$0xff]  }
 0x3dd   :  { %3959 = vmatprep.subr.bf16.mxu0 %v8764_v23  ;;  %7914 = vmatpush3.bf16.msra.mxu1 %v8846_v22  ;;  %v8849_v23 = vld [vmem:[#allocation5 + $0x1c] ss:$40 sps:$4 sm:$0xff]  }
 0x3de   :  { %5176 = vmatprep.subr.bf16.mxu1 %v8849_v23  ;;  %v8897_v22 = vld [vmem:[#allocation5 + $0x51c] ss:$40 sps:$4 sm:$0xff]   ;;  %v8895_v23 = vld [vmem:[#allocation5 + $0x518] ss:$40 sps:$4 sm:$0xff]  }
 0x3e0   :  { %3960 = vmatpush1.bf16.msra.mxu0 %v8762_v24  ;;  %v3000_v24 = vld [vmem:[#allocation7 + $0x4] sm:$0x3] }
 0x3e1   :  { %3961 = vmatprep.subr.bf16.mxu0 %v8767_v25  ;;  %v3005_v25 = vrot.slane %v3000_v24, %v9654_v63 }
 0x3e4   :  { %3962 = vmatpush1.bf16.msra.mxu0 %v8765_v56  ;;  %v3009_v56 = vrot.slane %v3000_v24, %v9656_v0  ;;  %v8900_v24 = vld [vmem:[#allocation5 + $0x56c] ss:$40 sps:$4 sm:$0xff]  }
 0x3e5   :  { %3963 = vmatprep.subr.bf16.mxu0 %v8770_v26 }
 0x3e8   :  { %3964 = vmatpush1.bf16.msra.mxu0 %v8768_v6 }
 0x3e9   :  { %3965 = vmatprep.subr.bf16.mxu0 %v8773_v59 }
 0x3ec   :  { %3966 = vmatpush1.bf16.msra.mxu0 %v8771_v27 }
 0x3ed   :  { %3967 = vmatprep.subr.bf16.mxu0 %v8776_v29 }
 0x3f0   :  { %3968 = vmatpush1.bf16.msra.mxu0 %v8774_v7 }
 0x3f1   :  { %3969 = vmatprep.subr.bf16.mxu0 %v8779_v30 }
 0x3f4   :  { %3970 = vmatpush1.bf16.msra.mxu0 %v8777_v32 }
 0x3f5   :  { %3971 = vmatprep.subr.bf16.mxu0 %v8782_v8 }
 0x3f8   :  { %3972 = vmatpush1.bf16.msra.mxu0 %v8780_v33 }
 0x3f9   :  { %3984 = vmatprep.subr.bf16.mxu0 %v8785_v34 }
 0x3fb   :  { %3974 = vmatmul.mubr.bf16.vlgmr.msra.gmra.mrb[8].mxu0 %v9627_v31 }
 0x3fc   :  { %3985 = vmatpush1.bf16.msra.mxu0 %v8783_v10  ;;  %4016 = vmatprep.mubr.bf16.mxu0 %v9631_v40 }
 0x3fd   :  { %3986 = vmatprep.subr.bf16.mxu0 %v8788_v35 }
 0x400   :  { %3987 = vmatpush1.bf16.msra.mxu0 %v8786_v36 }
 0x401   :  { %3988 = vmatprep.subr.bf16.mxu0 %v8791_v37  ;;  %v8847_v37 = vld [vmem:[#allocation5 + $0x18] ss:$40 sps:$4 sm:$0xff]  }
 0x404   :  { %3989 = vmatpush1.bf16.msra.mxu0 %v8789_v38  ;;  %v8852_v38 = vld [vmem:[#allocation5 + $0x6c] ss:$40 sps:$4 sm:$0xff]  }
 0x405   :  { %3990 = vmatprep.subr.bf16.mxu0 %v8794_v39  ;;  %v8850_v39 = vld [vmem:[#allocation5 + $0x68] ss:$40 sps:$4 sm:$0xff]  }
 0x408   :  { %3991 = vmatpush1.bf16.msra.mxu0 %v8792_v41  ;;  %v8855_v41 = vld [vmem:[#allocation5 + $0xbc] ss:$40 sps:$4 sm:$0xff]  }
 0x409   :  { %3992 = vmatprep.subr.bf16.mxu0 %v8797_v42  ;;  %v8853_v42 = vld [vmem:[#allocation5 + $0xb8] ss:$40 sps:$4 sm:$0xff]  }
 0x40c   :  { %3993 = vmatpush1.bf16.msra.mxu0 %v8795_v45  ;;  %v8858_v45 = vld [vmem:[#allocation5 + $0x10c] ss:$40 sps:$4 sm:$0xff]  }
 0x40d   :  { %3994 = vmatprep.subr.bf16.mxu0 %v8800_v46  ;;  %v8856_v46 = vld [vmem:[#allocation5 + $0x108] ss:$40 sps:$4 sm:$0xff]  }
 0x410   :  { %3995 = vmatpush1.bf16.msra.mxu0 %v8798_v48  ;;  %v8861_v48 = vld [vmem:[#allocation5 + $0x15c] ss:$40 sps:$4 sm:$0xff]  }
 0x411   :  { %3996 = vmatprep.subr.bf16.mxu0 %v8803_v49  ;;  %v8859_v49 = vld [vmem:[#allocation5 + $0x158] ss:$40 sps:$4 sm:$0xff]  }
 0x414   :  { %3997 = vmatpush1.bf16.msra.mxu0 %v8801_v50  ;;  %v8864_v50 = vld [vmem:[#allocation5 + $0x1ac] ss:$40 sps:$4 sm:$0xff]  }
 0x415   :  { %3998 = vmatprep.subr.bf16.mxu0 %v8806_v51  ;;  %v8862_v51 = vld [vmem:[#allocation5 + $0x1a8] ss:$40 sps:$4 sm:$0xff]  }
 0x418   :  { %3999 = vmatpush1.bf16.msra.mxu0 %v8804_v53  ;;  %v8867_v53 = vld [vmem:[#allocation5 + $0x1fc] ss:$40 sps:$4 sm:$0xff]  }
 0x419   :  { %4000 = vmatprep.subr.bf16.mxu0 %v8809_v54  ;;  %v8865_v54 = vld [vmem:[#allocation5 + $0x1f8] ss:$40 sps:$4 sm:$0xff]  }
 0x41c   :  { %4001 = vmatpush1.bf16.msra.mxu0 %v8807_v57  ;;  %v8870_v57 = vld [vmem:[#allocation5 + $0x24c] ss:$40 sps:$4 sm:$0xff]  }
 0x41d   :  { %4002 = vmatprep.subr.bf16.mxu0 %v8812_v58  ;;  %v8868_v58 = vld [vmem:[#allocation5 + $0x248] ss:$40 sps:$4 sm:$0xff]  }
 0x420   :  { %4003 = vmatpush1.bf16.msra.mxu0 %v8810_v60  ;;  %v8873_v60 = vld [vmem:[#allocation5 + $0x29c] ss:$40 sps:$4 sm:$0xff]  }
 0x421   :  { %4004 = vmatprep.subr.bf16.mxu0 %v8815_v61  ;;  %v8871_v61 = vld [vmem:[#allocation5 + $0x298] ss:$40 sps:$4 sm:$0xff]  }
 0x424   :  { %4005 = vmatpush1.bf16.msra.mxu0 %v8813_v62  ;;  %v8876_v62 = vld [vmem:[#allocation5 + $0x2ec] ss:$40 sps:$4 sm:$0xff]  }
 0x425   :  { %4006 = vmatprep.subr.bf16.mxu0 %v8818_v1  ;;  %v8874_v1 = vld [vmem:[#allocation5 + $0x2e8] ss:$40 sps:$4 sm:$0xff]  }
 0x428   :  { %4007 = vmatpush1.bf16.msra.mxu0 %v8816_v2  ;;  %v8879_v2 = vld [vmem:[#allocation5 + $0x33c] ss:$40 sps:$4 sm:$0xff]  }
 0x429   :  { %4008 = vmatprep.subr.bf16.mxu0 %v8821_v3  ;;  %v8877_v3 = vld [vmem:[#allocation5 + $0x338] ss:$40 sps:$4 sm:$0xff]  }
 0x42c   :  { %4009 = vmatpush1.bf16.msra.mxu0 %v8819_v4  ;;  %v8882_v4 = vld [vmem:[#allocation5 + $0x38c] ss:$40 sps:$4 sm:$0xff]  }
 0x42d   :  { %4010 = vmatprep.subr.bf16.mxu0 %v8824_v5  ;;  %v8880_v5 = vld [vmem:[#allocation5 + $0x388] ss:$40 sps:$4 sm:$0xff]  }
 0x430   :  { %4011 = vmatpush1.bf16.msra.mxu0 %v8822_v9  ;;  %v8885_v9 = vld [vmem:[#allocation5 + $0x3dc] ss:$40 sps:$4 sm:$0xff]  }
 0x431   :  { %4012 = vmatprep.subr.bf16.mxu0 %v8827_v11  ;;  %v8883_v11 = vld [vmem:[#allocation5 + $0x3d8] ss:$40 sps:$4 sm:$0xff]  }
 0x434   :  { %4013 = vmatpush1.bf16.msra.mxu0 %v8825_v12  ;;  %v8888_v12 = vld [vmem:[#allocation5 + $0x42c] ss:$40 sps:$4 sm:$0xff]  }
 0x435   :  { %4014 = vmatprep.subr.bf16.mxu0 %v8830_v13  ;;  %v8886_v13 = vld [vmem:[#allocation5 + $0x428] ss:$40 sps:$4 sm:$0xff]  }
 0x438   :  { %4015 = vmatpush1.bf16.msra.mxu0 %v8828_v16  ;;  %v8891_v16 = vld [vmem:[#allocation5 + $0x47c] ss:$40 sps:$4 sm:$0xff]  }
 0x43b   :  { %4017 = vmatmul.mubr.bf16.vlgmr.msra.gmra.mrb[8].mxu0 %v9635_v43 }
 0x50e   :  { %v4018_v26 = vpop.f32.mrb[8].mxu0 }
 0x50f   :  { %v7977_v6 = vadd.f32 %v4018_v26, %v3005_v25  ;;  %v4020_v59 = vpop.f32.mrb[9].mxu0  ;;  %v8901_v26 = vld [vmem:[#allocation5 + $0x5b8] ss:$40 sps:$4 sm:$0xff]  }
 0x510   :  { %v7978_v27 = vadd.f32 %v4020_v59, %v3009_v56  ;;  %v4022_v29 = vpop.f32.mrb[10].mxu0  ;;  %v8904_v59 = vld [vmem:[#allocation5 + $0x608] ss:$40 sps:$4 sm:$0xff]  }
 0x511   :  { %v7979_v7 = vadd.f32 %v4022_v29, %v3005_v25  ;;  %v4024_v30 = vpop.f32.mrb[11].mxu0  ;;  %v4027_v8 = vmax.f32 %v7977_v6, 0.0  ;;  %v8898_v25 = vld [vmem:[#allocation5 + $0x568] ss:$40 sps:$4 sm:$0xff]   ;;  %v8906_v6 = vld [vmem:[#allocation5 + $0x60c] ss:$40 sps:$4 sm:$0xff]  }
 0x512   :  { %v7980_v32 = vadd.f32 %v4024_v30, %v3009_v56  ;;  %v4028_v34 = vmax.f32 %v7978_v27, 0.0  ;;  %v8903_v56 = vld [vmem:[#allocation5 + $0x5bc] ss:$40 sps:$4 sm:$0xff]   ;;  %v8907_v29 = vld [vmem:[#allocation5 + $0x658] ss:$40 sps:$4 sm:$0xff]  }
 0x513   :  { %v4029_v33 = vmax.f32 %v7979_v7, 0.0  ;;  %v8909_v27 = vld [vmem:[#allocation5 + $0x65c] ss:$40 sps:$4 sm:$0xff]   ;;  %v8912_v7 = vld [vmem:[#allocation5 + $0x6ac] ss:$40 sps:$4 sm:$0xff]  }
 0x514   :  { %v4030_v10 = vmax.f32 %v7980_v32, 0.0  ;;  %v8910_v30 = vld [vmem:[#allocation5 + $0x6a8] ss:$40 sps:$4 sm:$0xff]   ;;  %v8915_v32 = vld [vmem:[#allocation5 + $0x6fc] ss:$40 sps:$4 sm:$0xff]  }
 0x515   :  { %v4031_v35 = vpack.c.bf16 %v4029_v33, %v4027_v8  ;;  %v8913_v8 = vld [vmem:[#allocation5 + $0x6f8] ss:$40 sps:$4 sm:$0xff]   ;;  %v8918_v33 = vld [vmem:[#allocation5 + $0x74c] ss:$40 sps:$4 sm:$0xff]  }
 0x516   :  { %v4032_v36 = vpack.c.bf16 %v4030_v10, %v4028_v34  ;;  %v8916_v34 = vld [vmem:[#allocation5 + $0x748] ss:$40 sps:$4 sm:$0xff]   ;;  %v8921_v10 = vld [vmem:[#allocation5 + $0x79c] ss:$40 sps:$4 sm:$0xff]  }
 0x518   :  { %4193 = vmatprep.mubr.bf16.mxu1 %v4032_v36  ;;  %v8924_v36 = vld [vmem:[#allocation5 + $0x7ec] ss:$40 sps:$4 sm:$0xff]  }
 0x519   :  { %4194 = vmatmul.mubr.bf16.vlgmr.msra.gmra.mrb[12].mxu1 %v4031_v35  ;;  %v8919_v35 = vld [vmem:[#allocation5 + $0x798] ss:$40 sps:$4 sm:$0xff]  }
 0x51a   :  { %5177 = vmatpush1.bf16.msra.mxu1 %v8847_v37  ;;  %5208 = vmatprep.mubr.bf16.mxu1 %v9607_v52  ;;  %v8922_v37 = vld [vmem:[#allocation5 + $0x7e8] ss:$40 sps:$4 sm:$0xff]  }
 0x51b   :  { %5178 = vmatprep.subr.bf16.mxu1 %v8852_v38  ;;  %v8927_v38 = vld [vmem:[#allocation5 + $0x83c] ss:$40 sps:$4 sm:$0xff]  }
 0x51e   :  { %5179 = vmatpush1.bf16.msra.mxu1 %v8850_v39  ;;  %v8925_v39 = vld [vmem:[#allocation5 + $0x838] ss:$40 sps:$4 sm:$0xff]  }
 0x51f   :  { %5180 = vmatprep.subr.bf16.mxu1 %v8855_v41  ;;  %v8930_v41 = vld [vmem:[#allocation5 + $0x88c] ss:$40 sps:$4 sm:$0xff]  }
 0x522   :  { %5181 = vmatpush1.bf16.msra.mxu1 %v8853_v42  ;;  %v8928_v42 = vld [vmem:[#allocation5 + $0x888] ss:$40 sps:$4 sm:$0xff]  }
 0x523   :  { %5182 = vmatprep.subr.bf16.mxu1 %v8858_v45  ;;  %v8933_v45 = vld [vmem:[#allocation5 + $0x8dc] ss:$40 sps:$4 sm:$0xff]  }
 0x526   :  { %5183 = vmatpush1.bf16.msra.mxu1 %v8856_v46  ;;  %v8931_v46 = vld [vmem:[#allocation5 + $0x8d8] ss:$40 sps:$4 sm:$0xff]  }
 0x527   :  { %5184 = vmatprep.subr.bf16.mxu1 %v8861_v48  ;;  %v8936_v48 = vld [vmem:[#allocation5 + $0x92c] ss:$40 sps:$4 sm:$0xff]  }
 0x52a   :  { %5185 = vmatpush1.bf16.msra.mxu1 %v8859_v49  ;;  %v8934_v49 = vld [vmem:[#allocation5 + $0x928] ss:$40 sps:$4 sm:$0xff]  }
 0x52b   :  { %5186 = vmatprep.subr.bf16.mxu1 %v8864_v50  ;;  %v8939_v50 = vld [vmem:[#allocation5 + $0x97c] ss:$40 sps:$4 sm:$0xff]  }
 0x52e   :  { %5187 = vmatpush1.bf16.msra.mxu1 %v8862_v51  ;;  %v8937_v51 = vld [vmem:[#allocation5 + $0x978] ss:$40 sps:$4 sm:$0xff]  }
 0x52f   :  { %5188 = vmatprep.subr.bf16.mxu1 %v8867_v53  ;;  %v8942_v53 = vld [vmem:[#allocation5 + $0x9cc] ss:$40 sps:$4 sm:$0xff]  }
 0x532   :  { %5189 = vmatpush1.bf16.msra.mxu1 %v8865_v54  ;;  %v8940_v54 = vld [vmem:[#allocation5 + $0x9c8] ss:$40 sps:$4 sm:$0xff]  }
 0x533   :  { %5190 = vmatprep.subr.bf16.mxu1 %v8870_v57  ;;  %v8945_v57 = vld [vmem:[#allocation5 + $0xa1c] ss:$40 sps:$4 sm:$0xff]  }
 0x536   :  { %5191 = vmatpush1.bf16.msra.mxu1 %v8868_v58  ;;  %v8943_v58 = vld [vmem:[#allocation5 + $0xa18] ss:$40 sps:$4 sm:$0xff]  }
 0x537   :  { %5192 = vmatprep.subr.bf16.mxu1 %v8873_v60  ;;  %v8948_v60 = vld [vmem:[#allocation5 + $0xa6c] ss:$40 sps:$4 sm:$0xff]  }
 0x53a   :  { %5193 = vmatpush1.bf16.msra.mxu1 %v8871_v61  ;;  %v8946_v61 = vld [vmem:[#allocation5 + $0xa68] ss:$40 sps:$4 sm:$0xff]  }
 0x53b   :  { %5194 = vmatprep.subr.bf16.mxu1 %v8876_v62  ;;  %v8951_v62 = vld [vmem:[#allocation5 + $0xabc] ss:$40 sps:$4 sm:$0xff]  }
 0x53e   :  { %5195 = vmatpush1.bf16.msra.mxu1 %v8874_v1  ;;  %v8949_v1 = vld [vmem:[#allocation5 + $0xab8] ss:$40 sps:$4 sm:$0xff]  }
 0x53f   :  { %5196 = vmatprep.subr.bf16.mxu1 %v8879_v2  ;;  %v8954_v2 = vld [vmem:[#allocation5 + $0xb0c] ss:$40 sps:$4 sm:$0xff]  }
 0x542   :  { %5197 = vmatpush1.bf16.msra.mxu1 %v8877_v3  ;;  %v8952_v3 = vld [vmem:[#allocation5 + $0xb08] ss:$40 sps:$4 sm:$0xff]  }
 0x543   :  { %5198 = vmatprep.subr.bf16.mxu1 %v8882_v4  ;;  %v8957_v4 = vld [vmem:[#allocation5 + $0xb5c] ss:$40 sps:$4 sm:$0xff]  }
 0x546   :  { %5199 = vmatpush1.bf16.msra.mxu1 %v8880_v5  ;;  %v8955_v5 = vld [vmem:[#allocation5 + $0xb58] ss:$40 sps:$4 sm:$0xff]  }
 0x547   :  { %5200 = vmatprep.subr.bf16.mxu1 %v8885_v9  ;;  %v8960_v9 = vld [vmem:[#allocation5 + $0xbac] ss:$40 sps:$4 sm:$0xff]  }
 0x54a   :  { %5201 = vmatpush1.bf16.msra.mxu1 %v8883_v11  ;;  %v8958_v11 = vld [vmem:[#allocation5 + $0xba8] ss:$40 sps:$4 sm:$0xff]  }
 0x54b   :  { %5202 = vmatprep.subr.bf16.mxu1 %v8888_v12  ;;  %v8963_v12 = vld [vmem:[#allocation5 + $0xbfc] ss:$40 sps:$4 sm:$0xff]  }
 0x54e   :  { %5203 = vmatpush1.bf16.msra.mxu1 %v8886_v13  ;;  %v8961_v13 = vld [vmem:[#allocation5 + $0xbf8] ss:$40 sps:$4 sm:$0xff]  }
 0x54f   :  { %5204 = vmatprep.subr.bf16.mxu1 %v8891_v16  ;;  %v8966_v16 = vld [vmem:[#allocation5 + $0xc4c] ss:$40 sps:$4 sm:$0xff]  }
 0x552   :  { %5205 = vmatpush1.bf16.msra.mxu1 %v8889_v18  ;;  %v8964_v18 = vld [vmem:[#allocation5 + $0xc48] ss:$40 sps:$4 sm:$0xff]  }
 0x553   :  { %5206 = vmatprep.subr.bf16.mxu1 %v8894_v20  ;;  %v8969_v20 = vld [vmem:[#allocation5 + $0xc9c] ss:$40 sps:$4 sm:$0xff]  }
 0x556   :  { %5207 = vmatpush1.bf16.msra.mxu1 %v8892_v21  ;;  %v8967_v21 = vld [vmem:[#allocation5 + $0xc98] ss:$40 sps:$4 sm:$0xff]  }
 0x557   :  { %5219 = vmatprep.subr.bf16.mxu1 %v8897_v22  ;;  %v8972_v22 = vld [vmem:[#allocation5 + $0xcec] ss:$40 sps:$4 sm:$0xff]  }
 0x559   :  { %5209 = vmatmul.mubr.bf16.vlgmr.msra.gmra.mrb[16].mxu1 %v9613_v14 }
 0x55a   :  { %5220 = vmatpush1.bf16.msra.mxu1 %v8895_v23  ;;  %5251 = vmatprep.mubr.bf16.mxu1 %v9619_v44  ;;  %v8970_v23 = vld [vmem:[#allocation5 + $0xce8] ss:$40 sps:$4 sm:$0xff]  }
 0x55b   :  { %5221 = vmatprep.subr.bf16.mxu1 %v8900_v24  ;;  %v8975_v24 = vld [vmem:[#allocation5 + $0xd3c] ss:$40 sps:$4 sm:$0xff]  }
 0x55e   :  { %5222 = vmatpush1.bf16.msra.mxu1 %v8898_v25  ;;  %v8973_v25 = vld [vmem:[#allocation5 + $0xd38] ss:$40 sps:$4 sm:$0xff]  }
 0x55f   :  { %5223 = vmatprep.subr.bf16.mxu1 %v8903_v56  ;;  %v8978_v56 = vld [vmem:[#allocation5 + $0xd8c] ss:$40 sps:$4 sm:$0xff]  }
 0x562   :  { %5224 = vmatpush1.bf16.msra.mxu1 %v8901_v26  ;;  %v8976_v26 = vld [vmem:[#allocation5 + $0xd88] ss:$40 sps:$4 sm:$0xff]  }
 0x563   :  { %5225 = vmatprep.subr.bf16.mxu1 %v8906_v6  ;;  %v8981_v6 = vld [vmem:[#allocation5 + $0xddc] ss:$40 sps:$4 sm:$0xff]  }
 0x566   :  { %5226 = vmatpush1.bf16.msra.mxu1 %v8904_v59  ;;  %v8979_v59 = vld [vmem:[#allocation5 + $0xdd8] ss:$40 sps:$4 sm:$0xff]  }
 0x567   :  { %5227 = vmatprep.subr.bf16.mxu1 %v8909_v27  ;;  %v8984_v27 = vld [vmem:[#allocation5 + $0xe2c] ss:$40 sps:$4 sm:$0xff]  }
 0x56a   :  { %5228 = vmatpush1.bf16.msra.mxu1 %v8907_v29  ;;  %v8982_v29 = vld [vmem:[#allocation5 + $0xe28] ss:$40 sps:$4 sm:$0xff]  }
 0x56b   :  { %5229 = vmatprep.subr.bf16.mxu1 %v8912_v7  ;;  %v8987_v7 = vld [vmem:[#allocation5 + $0xe7c] ss:$40 sps:$4 sm:$0xff]  }
 0x56e   :  { %5230 = vmatpush1.bf16.msra.mxu1 %v8910_v30  ;;  %v8985_v30 = vld [vmem:[#allocation5 + $0xe78] ss:$40 sps:$4 sm:$0xff]  }
 0x56f   :  { %5231 = vmatprep.subr.bf16.mxu1 %v8915_v32  ;;  %v8990_v32 = vld [vmem:[#allocation5 + $0xecc] ss:$40 sps:$4 sm:$0xff]  }
 0x572   :  { %5232 = vmatpush1.bf16.msra.mxu1 %v8913_v8  ;;  %v8988_v8 = vld [vmem:[#allocation5 + $0xec8] ss:$40 sps:$4 sm:$0xff]  }
 0x573   :  { %5233 = vmatprep.subr.bf16.mxu1 %v8918_v33  ;;  %v8993_v33 = vld [vmem:[#allocation5 + $0xf1c] ss:$40 sps:$4 sm:$0xff]  }
 0x576   :  { %5234 = vmatpush1.bf16.msra.mxu1 %v8916_v34  ;;  %v8991_v34 = vld [vmem:[#allocation5 + $0xf18] ss:$40 sps:$4 sm:$0xff]  }
 0x577   :  { %5235 = vmatprep.subr.bf16.mxu1 %v8921_v10  ;;  %v8996_v10 = vld [vmem:[#allocation5 + $0xf6c] ss:$40 sps:$4 sm:$0xff]  }
 0x57a   :  { %5236 = vmatpush1.bf16.msra.mxu1 %v8919_v35  ;;  %v9087_v35 = vld [vmem:[#allocation8 + $0x1c0] sm:$0xff]  }
 0x57b   :  { %5237 = vmatprep.subr.bf16.mxu1 %v8924_v36  ;;  %v9088_v36 = vld [vmem:[#allocation8 + $0x180] sm:$0xff]   ;;  %7921 = vmatprep.subr.bf16.mxu0 %v9087_v35 }
 0x57c   :  { %7922 = vmatpush3.bf16.msra.mxu0 %v9088_v36  ;;  %v9042_v35 = vld [vmem:[#allocation5 + $0x1468] ss:$40 sps:$4 sm:$0xff]   ;;  %v9047_v36 = vld [vmem:[#allocation5 + $0x14bc] ss:$40 sps:$4 sm:$0xff]  }
 0x57e   :  { %5238 = vmatpush1.bf16.msra.mxu1 %v8922_v37  ;;  %v9089_v37 = vld [vmem:[#allocation8 + $0x1c8] sm:$0xff]  }
 0x57f   :  { %5239 = vmatprep.subr.bf16.mxu1 %v8927_v38  ;;  %v8994_v38 = vld [vmem:[#allocation5 + $0xf68] ss:$40 sps:$4 sm:$0xff]   ;;  %7923 = vmatprep.subr.bf16.mxu0 %v9089_v37  ;;  %v9045_v37 = vld [vmem:[#allocation5 + $0x14b8] ss:$40 sps:$4 sm:$0xff]  }
 0x582   :  { %5240 = vmatpush1.bf16.msra.mxu1 %v8925_v39  ;;  %v8999_v39 = vld [vmem:[#allocation5 + $0xfbc] ss:$40 sps:$4 sm:$0xff]  }
 0x583   :  { %5241 = vmatprep.subr.bf16.mxu1 %v8930_v41  ;;  %v9090_v41 = vld [vmem:[#allocation8 + $0x188] sm:$0xff]  }
 0x584   :  { %7924 = vmatpush3.bf16.msra.mxu0 %v9090_v41  ;;  %v9053_v41 = vld [vmem:[#allocation5 + $0x155c] ss:$40 sps:$4 sm:$0xff]  }
 0x586   :  { %5242 = vmatpush1.bf16.msra.mxu1 %v8928_v42  ;;  %v9091_v42 = vld [vmem:[#allocation8 + $0x1d0] sm:$0xff]  }
 0x587   :  { %5243 = vmatprep.subr.bf16.mxu1 %v8933_v45  ;;  %v8997_v45 = vld [vmem:[#allocation5 + $0xfb8] ss:$40 sps:$4 sm:$0xff]   ;;  %7925 = vmatprep.subr.bf16.mxu0 %v9091_v42 }
 0x588   :  { %v9051_v42 = vld [vmem:[#allocation5 + $0x1558] ss:$40 sps:$4 sm:$0xff]  }
 0x58a   :  { %5244 = vmatpush1.bf16.msra.mxu1 %v8931_v46  ;;  %v9002_v46 = vld [vmem:[#allocation5 + $0x100c] ss:$40 sps:$4 sm:$0xff]  }
 0x58b   :  { %5245 = vmatprep.subr.bf16.mxu1 %v8936_v48  ;;  %v9092_v48 = vld [vmem:[#allocation8 + $0x190] sm:$0xff]  }
 0x58c   :  { %7926 = vmatpush3.bf16.msra.mxu0 %v9092_v48  ;;  %v9059_v48 = vld [vmem:[#allocation5 + $0x15fc] ss:$40 sps:$4 sm:$0xff]  }
 0x58e   :  { %5246 = vmatpush1.bf16.msra.mxu1 %v8934_v49  ;;  %v9093_v49 = vld [vmem:[#allocation8 + $0x1d8] sm:$0xff]  }
 0x58f   :  { %5247 = vmatprep.subr.bf16.mxu1 %v8939_v50  ;;  %v9000_v50 = vld [vmem:[#allocation5 + $0x1008] ss:$40 sps:$4 sm:$0xff]   ;;  %7927 = vmatprep.subr.bf16.mxu0 %v9093_v49  ;;  %v9057_v49 = vld [vmem:[#allocation5 + $0x15f8] ss:$40 sps:$4 sm:$0xff]  }
 0x592   :  { %5248 = vmatpush1.bf16.msra.mxu1 %v8937_v51  ;;  %v9005_v51 = vld [vmem:[#allocation5 + $0x105c] ss:$40 sps:$4 sm:$0xff]  }
 0x593   :  { %5249 = vmatprep.subr.bf16.mxu1 %v8942_v53  ;;  %v9094_v53 = vld [vmem:[#allocation8 + $0x198] sm:$0xff]  }
 0x594   :  { %7928 = vmatpush3.bf16.msra.mxu0 %v9094_v53  ;;  %v9065_v53 = vld [vmem:[#allocation5 + $0x169c] ss:$40 sps:$4 sm:$0xff]  }
 0x596   :  { %5250 = vmatpush1.bf16.msra.mxu1 %v8940_v54  ;;  %v9095_v54 = vld [vmem:[#allocation8 + $0x1e0] sm:$0xff]  }
 0x597   :  { %5262 = vmatprep.subr.bf16.mxu1 %v8945_v57  ;;  %v9003_v57 = vld [vmem:[#allocation5 + $0x1058] ss:$40 sps:$4 sm:$0xff]   ;;  %7929 = vmatprep.subr.bf16.mxu0 %v9095_v54 }
 0x598   :  { %v9063_v54 = vld [vmem:[#allocation5 + $0x1698] ss:$40 sps:$4 sm:$0xff]  }
 0x599   :  { %5252 = vmatmul.mubr.bf16.vlgmr.msra.gmra.mrb[16].mxu1 %v9625_v28 }
 0x59a   :  { %5263 = vmatpush1.bf16.msra.mxu1 %v8943_v58  ;;  %5294 = vmatprep.mubr.bf16.mxu1 %v9610_v55  ;;  %v9008_v58 = vld [vmem:[#allocation5 + $0x10ac] ss:$40 sps:$4 sm:$0xff]  }
 0x59b   :  { %5264 = vmatprep.subr.bf16.mxu1 %v8948_v60  ;;  %v9096_v60 = vld [vmem:[#allocation8 + $0x1a0] sm:$0xff]  }
 0x59c   :  { %7930 = vmatpush3.bf16.msra.mxu0 %v9096_v60  ;;  %v9071_v60 = vld [vmem:[#allocation5 + $0x173c] ss:$40 sps:$4 sm:$0xff]  }
 0x59e   :  { %5265 = vmatpush1.bf16.msra.mxu1 %v8946_v61  ;;  %v9097_v61 = vld [vmem:[#allocation8 + $0x1e8] sm:$0xff]  }
 0x59f   :  { %5266 = vmatprep.subr.bf16.mxu1 %v8951_v62  ;;  %v9006_v62 = vld [vmem:[#allocation5 + $0x10a8] ss:$40 sps:$4 sm:$0xff]   ;;  %7931 = vmatprep.subr.bf16.mxu0 %v9097_v61  ;;  %v9069_v61 = vld [vmem:[#allocation5 + $0x1738] ss:$40 sps:$4 sm:$0xff]  }
 0x5a2   :  { %5267 = vmatpush1.bf16.msra.mxu1 %v8949_v1  ;;  %v9011_v1 = vld [vmem:[#allocation5 + $0x10fc] ss:$40 sps:$4 sm:$0xff]  }
 0x5a3   :  { %5268 = vmatprep.subr.bf16.mxu1 %v8954_v2 }
 0x5a6   :  { %5269 = vmatpush1.bf16.msra.mxu1 %v8952_v3  ;;  %v9098_v3 = vld [vmem:[#allocation8 + $0x1a8] sm:$0xff]  }
 0x5a7   :  { %5270 = vmatprep.subr.bf16.mxu1 %v8957_v4  ;;  %7932 = vmatpush3.bf16.msra.mxu0 %v9098_v3  ;;  %v9075_v3 = vld [vmem:[#allocation5 + $0x17d8] ss:$40 sps:$4 sm:$0xff]  }
 0x5aa   :  { %5271 = vmatpush1.bf16.msra.mxu1 %v8955_v5 }
 0x5ab   :  { %5272 = vmatprep.subr.bf16.mxu1 %v8960_v9 }
 0x5ae   :  { %5273 = vmatpush1.bf16.msra.mxu1 %v8958_v11  ;;  %v9009_v11 = vld [vmem:[#allocation5 + $0x10f8] ss:$40 sps:$4 sm:$0xff]  }
 0x5af   :  { %5274 = vmatprep.subr.bf16.mxu1 %v8963_v12 }
 0x5b2   :  { %5275 = vmatpush1.bf16.msra.mxu1 %v8961_v13  ;;  %v9014_v13 = vld [vmem:[#allocation5 + $0x114c] ss:$40 sps:$4 sm:$0xff]  }
 0x5b3   :  { %5276 = vmatprep.subr.bf16.mxu1 %v8966_v16 }
 0x5b6   :  { %5277 = vmatpush1.bf16.msra.mxu1 %v8964_v18 }
 0x5b7   :  { %5278 = vmatprep.subr.bf16.mxu1 %v8969_v20 }
 0x5ba   :  { %5279 = vmatpush1.bf16.msra.mxu1 %v8967_v21  ;;  %v9012_v21 = vld [vmem:[#allocation5 + $0x1148] ss:$40 sps:$4 sm:$0xff]  }
 0x5bb   :  { %5280 = vmatprep.subr.bf16.mxu1 %v8972_v22  ;;  %v9017_v22 = vld [vmem:[#allocation5 + $0x119c] ss:$40 sps:$4 sm:$0xff]  }
 0x5be   :  { %5281 = vmatpush1.bf16.msra.mxu1 %v8970_v23  ;;  %v9015_v23 = vld [vmem:[#allocation5 + $0x1198] ss:$40 sps:$4 sm:$0xff]  }
 0x5bf   :  { %5282 = vmatprep.subr.bf16.mxu1 %v8975_v24  ;;  %v9020_v24 = vld [vmem:[#allocation5 + $0x11ec] ss:$40 sps:$4 sm:$0xff]  }
 0x5c2   :  { %5283 = vmatpush1.bf16.msra.mxu1 %v8973_v25  ;;  %v9018_v25 = vld [vmem:[#allocation5 + $0x11e8] ss:$40 sps:$4 sm:$0xff]  }
 0x5c3   :  { %5284 = vmatprep.subr.bf16.mxu1 %v8978_v56  ;;  %v9023_v56 = vld [vmem:[#allocation5 + $0x123c] ss:$40 sps:$4 sm:$0xff]  }
 0x5c6   :  { %5285 = vmatpush1.bf16.msra.mxu1 %v8976_v26  ;;  %v9026_v26 = vld [vmem:[#allocation5 + $0x128c] ss:$40 sps:$4 sm:$0xff]  }
 0x5c7   :  { %5286 = vmatprep.subr.bf16.mxu1 %v8981_v6  ;;  %v9024_v6 = vld [vmem:[#allocation5 + $0x1288] ss:$40 sps:$4 sm:$0xff]  }
 0x5ca   :  { %5287 = vmatpush1.bf16.msra.mxu1 %v8979_v59  ;;  %v9027_v59 = vld [vmem:[#allocation5 + $0x12d8] ss:$40 sps:$4 sm:$0xff]  }
 0x5cb   :  { %5288 = vmatprep.subr.bf16.mxu1 %v8984_v27  ;;  %v9032_v27 = vld [vmem:[#allocation5 + $0x132c] ss:$40 sps:$4 sm:$0xff]  }
 0x5ce   :  { %5289 = vmatpush1.bf16.msra.mxu1 %v8982_v29  ;;  %v9030_v29 = vld [vmem:[#allocation5 + $0x1328] ss:$40 sps:$4 sm:$0xff]  }
 0x5cf   :  { %5290 = vmatprep.subr.bf16.mxu1 %v8987_v7  ;;  %v9035_v7 = vld [vmem:[#allocation5 + $0x137c] ss:$40 sps:$4 sm:$0xff]  }
 0x5d2   :  { %5291 = vmatpush1.bf16.msra.mxu1 %v8985_v30  ;;  %v9033_v30 = vld [vmem:[#allocation5 + $0x1378] ss:$40 sps:$4 sm:$0xff]  }
 0x5d3   :  { %5292 = vmatprep.subr.bf16.mxu1 %v8990_v32  ;;  %v9038_v32 = vld [vmem:[#allocation5 + $0x13cc] ss:$40 sps:$4 sm:$0xff]  }
 0x5d6   :  { %5293 = vmatpush1.bf16.msra.mxu1 %v8988_v8  ;;  %v9036_v8 = vld [vmem:[#allocation5 + $0x13c8] ss:$40 sps:$4 sm:$0xff]  }
 0x5d7   :  { %5305 = vmatprep.subr.bf16.mxu1 %v8993_v33  ;;  %v9041_v33 = vld [vmem:[#allocation5 + $0x141c] ss:$40 sps:$4 sm:$0xff]  }
 0x5d9   :  { %5295 = vmatmul.mubr.bf16.vlgmr.msra.gmra.mrb[16].mxu1 %v9615_v15 }
 0x5da   :  { %5306 = vmatpush1.bf16.msra.mxu1 %v8991_v34  ;;  %5337 = vmatprep.mubr.bf16.mxu1 %v9621_v47  ;;  %v9039_v34 = vld [vmem:[#allocation5 + $0x1418] ss:$40 sps:$4 sm:$0xff]  }
 0x5db   :  { %5307 = vmatprep.subr.bf16.mxu1 %v8996_v10  ;;  %v9044_v10 = vld [vmem:[#allocation5 + $0x146c] ss:$40 sps:$4 sm:$0xff]  }
 0x5de   :  { %5308 = vmatpush1.bf16.msra.mxu1 %v8994_v38  ;;  %v9050_v38 = vld [vmem:[#allocation5 + $0x150c] ss:$40 sps:$4 sm:$0xff]  }
 0x5df   :  { %5309 = vmatprep.subr.bf16.mxu1 %v8999_v39  ;;  %v9048_v39 = vld [vmem:[#allocation5 + $0x1508] ss:$40 sps:$4 sm:$0xff]  }
 0x5e2   :  { %5310 = vmatpush1.bf16.msra.mxu1 %v8997_v45  ;;  %v9056_v45 = vld [vmem:[#allocation5 + $0x15ac] ss:$40 sps:$4 sm:$0xff]  }
 0x5e3   :  { %5311 = vmatprep.subr.bf16.mxu1 %v9002_v46  ;;  %v9054_v46 = vld [vmem:[#allocation5 + $0x15a8] ss:$40 sps:$4 sm:$0xff]  }
 0x5e6   :  { %5312 = vmatpush1.bf16.msra.mxu1 %v9000_v50  ;;  %v9062_v50 = vld [vmem:[#allocation5 + $0x164c] ss:$40 sps:$4 sm:$0xff]  }
 0x5e7   :  { %5313 = vmatprep.subr.bf16.mxu1 %v9005_v51  ;;  %v9060_v51 = vld [vmem:[#allocation5 + $0x1648] ss:$40 sps:$4 sm:$0xff]  }
 0x5ea   :  { %5314 = vmatpush1.bf16.msra.mxu1 %v9003_v57  ;;  %v9068_v57 = vld [vmem:[#allocation5 + $0x16ec] ss:$40 sps:$4 sm:$0xff]  }
 0x5eb   :  { %5315 = vmatprep.subr.bf16.mxu1 %v9008_v58  ;;  %v9066_v58 = vld [vmem:[#allocation5 + $0x16e8] ss:$40 sps:$4 sm:$0xff]  }
 0x5ec   :  { %v7915_v2 = vpop.f32.mrb[12].mxu1 }
 0x5ed   :  { %v7916_v4 = vpop.f32.mrb[13].mxu1 }
 0x5ee   :  { %v7917_v5 = vadd.f32 %v7916_v4, %v7915_v2  ;;  %5316 = vmatpush1.bf16.msra.mxu1 %v9006_v62  ;;  %v7918_v9 = vpop.f32.mrb[14].mxu1  ;;  %v9074_v62 = vld [vmem:[#allocation5 + $0x178c] ss:$40 sps:$4 sm:$0xff]   ;;  %v9077_v2 = vld [vmem:[#allocation5 + $0x17dc] ss:$40 sps:$4 sm:$0xff]  }
 0x5ef   :  { %v7919_v12 = vpop.f32.mrb[15].mxu1  ;;  %5317 = vmatprep.subr.bf16.mxu1 %v9011_v1  ;;  %v9072_v1 = vld [vmem:[#allocation5 + $0x1788] ss:$40 sps:$4 sm:$0xff]   ;;  %v9080_v4 = vld [vmem:[#allocation5 + $0x182c] ss:$40 sps:$4 sm:$0xff]  }
 0x5f0   :  { %v9700_v16 = vadd.f32 %v7917_v5, %v9682_v17  ;;  %v7920_v18 = vadd.f32 %v7919_v12, %v7918_v9  ;;  %v9021_v17 = vld [vmem:[#allocation5 + $0x1238] ss:$40 sps:$4 sm:$0xff]   ;;  %v9078_v5 = vld [vmem:[#allocation5 + $0x1828] ss:$40 sps:$4 sm:$0xff]   ;;  %v9083_v9 = vld [vmem:[#allocation5 + $0x187c] ss:$40 sps:$4 sm:$0xff]  }
 0x5f1   :  { %v9086_v12 = vld [vmem:[#allocation5 + $0x18cc] ss:$40 sps:$4 sm:$0xff]  }
 0x5f2   :  { %v9703_v20 = vadd.f32 %v7920_v18, %v9685_v19  ;;  %5318 = vmatpush1.bf16.msra.mxu1 %v9009_v11  ;;  %v9029_v19 = vld [vmem:[#allocation5 + $0x12dc] ss:$40 sps:$4 sm:$0xff]   ;;  %v9081_v11 = vld [vmem:[#allocation5 + $0x1878] ss:$40 sps:$4 sm:$0xff]  }
 0x5f3   :  { %5319 = vmatprep.subr.bf16.mxu1 %v9014_v13  ;;  %v9084_v13 = vld [vmem:[#allocation5 + $0x18c8] ss:$40 sps:$4 sm:$0xff]   ;;  %v9099_v18 = vld [vmem:[#allocation8 + $0x1f0] sm:$0xff]  }
 0x5f4   :  { %7933 = vmatprep.subr.bf16.mxu0 %v9099_v18  ;;  %v9150_v18 = vld [vmem:[#allocation5 + $0x4d4] ss:$40 sps:$4 sm:$0xff]  }
 0x5f6   :  { %5320 = vmatpush1.bf16.msra.mxu1 %v9012_v21  ;;  %v9100_v21 = vld [vmem:[#allocation8 + $0x1b0] sm:$0xff]  }
 0x5f7   :  { %5321 = vmatprep.subr.bf16.mxu1 %v9017_v22  ;;  %7934 = vmatpush3.bf16.msra.mxu0 %v9100_v21  ;;  %v9101_v22 = vld [vmem:[#allocation8 + $0x1f8] sm:$0xff]   ;;  %v9148_v21 = vld [vmem:[#allocation5 + $0x4d0] ss:$40 sps:$4 sm:$0xff]  }
 0x5f8   :  { %7935 = vmatprep.subr.bf16.mxu0 %v9101_v22  ;;  %v9153_v22 = vld [vmem:[#allocation5 + $0x524] ss:$40 sps:$4 sm:$0xff]  }
 0x5fa   :  { %5322 = vmatpush1.bf16.msra.mxu1 %v9015_v23  ;;  %v9102_v23 = vld [vmem:[#allocation8 + $0x1b8] sm:$0xff]  }
 0x5fb   :  { %5323 = vmatprep.subr.bf16.mxu1 %v9020_v24  ;;  %7936 = vmatpush3.bf16.msra.mxu0 %v9102_v23  ;;  %v9105_v24 = vld [vmem:[#allocation5 + $0x24] ss:$40 sps:$4 sm:$0xff]   ;;  %v9151_v23 = vld [vmem:[#allocation5 + $0x520] ss:$40 sps:$4 sm:$0xff]  }
 0x5fc   :  { %6540 = vmatprep.subr.bf16.mxu0 %v9105_v24  ;;  %v9156_v24 = vld [vmem:[#allocation5 + $0x574] ss:$40 sps:$4 sm:$0xff]  }
 0x5fe   :  { %5324 = vmatpush1.bf16.msra.mxu1 %v9018_v25  ;;  %v4364_v25 = vld [vmem:[#allocation7 + $0x6] sm:$0x3] }
 0x5ff   :  { %5325 = vmatprep.subr.bf16.mxu1 %v9023_v56  ;;  %v4369_v56 = vrot.slane %v4364_v25, %v9654_v63 }
 0x602   :  { %5326 = vmatpush1.bf16.msra.mxu1 %v9021_v17  ;;  %v4373_v17 = vrot.slane %v4364_v25, %v9656_v0  ;;  %v9154_v25 = vld [vmem:[#allocation5 + $0x570] ss:$40 sps:$4 sm:$0xff]  }
 0x603   :  { %5327 = vmatprep.subr.bf16.mxu1 %v9026_v26 }
 0x606   :  { %5328 = vmatpush1.bf16.msra.mxu1 %v9024_v6 }
 0x607   :  { %5329 = vmatprep.subr.bf16.mxu1 %v9029_v19 }
 0x60a   :  { %5330 = vmatpush1.bf16.msra.mxu1 %v9027_v59 }
 0x60b   :  { %5331 = vmatprep.subr.bf16.mxu1 %v9032_v27 }
 0x60e   :  { %5332 = vmatpush1.bf16.msra.mxu1 %v9030_v29 }
 0x60f   :  { %5333 = vmatprep.subr.bf16.mxu1 %v9035_v7 }
 0x612   :  { %5334 = vmatpush1.bf16.msra.mxu1 %v9033_v30 }
 0x613   :  { %5335 = vmatprep.subr.bf16.mxu1 %v9038_v32 }
 0x616   :  { %5336 = vmatpush1.bf16.msra.mxu1 %v9036_v8 }
 0x617   :  { %5348 = vmatprep.subr.bf16.mxu1 %v9041_v33 }
 0x619   :  { %5338 = vmatmul.mubr.bf16.vlgmr.msra.gmra.mrb[16].mxu1 %v9627_v31 }
 0x61a   :  { %5349 = vmatpush1.bf16.msra.mxu1 %v9039_v34  ;;  %5380 = vmatprep.mubr.bf16.mxu1 %v9631_v40 }
 0x61b   :  { %5350 = vmatprep.subr.bf16.mxu1 %v9044_v10 }
 0x61e   :  { %5351 = vmatpush1.bf16.msra.mxu1 %v9042_v35 }
 0x61f   :  { %5352 = vmatprep.subr.bf16.mxu1 %v9047_v36  ;;  %v9103_v36 = vld [vmem:[#allocation5 + $0x20] ss:$40 sps:$4 sm:$0xff]  }
 0x622   :  { %5353 = vmatpush1.bf16.msra.mxu1 %v9045_v37  ;;  %v9108_v37 = vld [vmem:[#allocation5 + $0x74] ss:$40 sps:$4 sm:$0xff]  }
 0x623   :  { %5354 = vmatprep.subr.bf16.mxu1 %v9050_v38  ;;  %v9106_v38 = vld [vmem:[#allocation5 + $0x70] ss:$40 sps:$4 sm:$0xff]  }
 0x626   :  { %5355 = vmatpush1.bf16.msra.mxu1 %v9048_v39  ;;  %v9111_v39 = vld [vmem:[#allocation5 + $0xc4] ss:$40 sps:$4 sm:$0xff]  }
 0x627   :  { %5356 = vmatprep.subr.bf16.mxu1 %v9053_v41  ;;  %v9109_v41 = vld [vmem:[#allocation5 + $0xc0] ss:$40 sps:$4 sm:$0xff]  }
 0x62a   :  { %5357 = vmatpush1.bf16.msra.mxu1 %v9051_v42  ;;  %v9114_v42 = vld [vmem:[#allocation5 + $0x114] ss:$40 sps:$4 sm:$0xff]  }
 0x62b   :  { %5358 = vmatprep.subr.bf16.mxu1 %v9056_v45  ;;  %v9112_v45 = vld [vmem:[#allocation5 + $0x110] ss:$40 sps:$4 sm:$0xff]  }
 0x62e   :  { %5359 = vmatpush1.bf16.msra.mxu1 %v9054_v46  ;;  %v9117_v46 = vld [vmem:[#allocation5 + $0x164] ss:$40 sps:$4 sm:$0xff]  }
 0x62f   :  { %5360 = vmatprep.subr.bf16.mxu1 %v9059_v48  ;;  %v9115_v48 = vld [vmem:[#allocation5 + $0x160] ss:$40 sps:$4 sm:$0xff]  }
 0x632   :  { %5361 = vmatpush1.bf16.msra.mxu1 %v9057_v49  ;;  %v9120_v49 = vld [vmem:[#allocation5 + $0x1b4] ss:$40 sps:$4 sm:$0xff]  }
 0x633   :  { %5362 = vmatprep.subr.bf16.mxu1 %v9062_v50  ;;  %v9118_v50 = vld [vmem:[#allocation5 + $0x1b0] ss:$40 sps:$4 sm:$0xff]  }
 0x636   :  { %5363 = vmatpush1.bf16.msra.mxu1 %v9060_v51  ;;  %v9123_v51 = vld [vmem:[#allocation5 + $0x204] ss:$40 sps:$4 sm:$0xff]  }
 0x637   :  { %5364 = vmatprep.subr.bf16.mxu1 %v9065_v53  ;;  %v9126_v53 = vld [vmem:[#allocation5 + $0x254] ss:$40 sps:$4 sm:$0xff]  }
 0x63a   :  { %5365 = vmatpush1.bf16.msra.mxu1 %v9063_v54  ;;  %v9124_v54 = vld [vmem:[#allocation5 + $0x250] ss:$40 sps:$4 sm:$0xff]  }
 0x63b   :  { %5366 = vmatprep.subr.bf16.mxu1 %v9068_v57  ;;  %v9129_v57 = vld [vmem:[#allocation5 + $0x2a4] ss:$40 sps:$4 sm:$0xff]  }
 0x63e   :  { %5367 = vmatpush1.bf16.msra.mxu1 %v9066_v58  ;;  %v9127_v58 = vld [vmem:[#allocation5 + $0x2a0] ss:$40 sps:$4 sm:$0xff]  }
 0x63f   :  { %5368 = vmatprep.subr.bf16.mxu1 %v9071_v60  ;;  %v9132_v60 = vld [vmem:[#allocation5 + $0x2f4] ss:$40 sps:$4 sm:$0xff]  }
 0x642   :  { %5369 = vmatpush1.bf16.msra.mxu1 %v9069_v61  ;;  %v9130_v61 = vld [vmem:[#allocation5 + $0x2f0] ss:$40 sps:$4 sm:$0xff]  }
 0x643   :  { %5370 = vmatprep.subr.bf16.mxu1 %v9074_v62  ;;  %v9135_v62 = vld [vmem:[#allocation5 + $0x344] ss:$40 sps:$4 sm:$0xff]  }
 0x646   :  { %5371 = vmatpush1.bf16.msra.mxu1 %v9072_v1  ;;  %v9133_v1 = vld [vmem:[#allocation5 + $0x340] ss:$40 sps:$4 sm:$0xff]  }
 0x647   :  { %5372 = vmatprep.subr.bf16.mxu1 %v9077_v2  ;;  %v9138_v2 = vld [vmem:[#allocation5 + $0x394] ss:$40 sps:$4 sm:$0xff]  }
 0x64a   :  { %5373 = vmatpush1.bf16.msra.mxu1 %v9075_v3  ;;  %v9136_v3 = vld [vmem:[#allocation5 + $0x390] ss:$40 sps:$4 sm:$0xff]  }
 0x64b   :  { %5374 = vmatprep.subr.bf16.mxu1 %v9080_v4  ;;  %v9141_v4 = vld [vmem:[#allocation5 + $0x3e4] ss:$40 sps:$4 sm:$0xff]  }
 0x64e   :  { %5375 = vmatpush1.bf16.msra.mxu1 %v9078_v5  ;;  %v9139_v5 = vld [vmem:[#allocation5 + $0x3e0] ss:$40 sps:$4 sm:$0xff]  }
 0x64f   :  { %5376 = vmatprep.subr.bf16.mxu1 %v9083_v9  ;;  %v9144_v9 = vld [vmem:[#allocation5 + $0x434] ss:$40 sps:$4 sm:$0xff]  }
 0x652   :  { %5377 = vmatpush1.bf16.msra.mxu1 %v9081_v11  ;;  %v9142_v11 = vld [vmem:[#allocation5 + $0x430] ss:$40 sps:$4 sm:$0xff]  }
 0x653   :  { %5378 = vmatprep.subr.bf16.mxu1 %v9086_v12  ;;  %v9147_v12 = vld [vmem:[#allocation5 + $0x484] ss:$40 sps:$4 sm:$0xff]  }
 0x656   :  { %5379 = vmatpush1.bf16.msra.mxu1 %v9084_v13  ;;  %v9145_v13 = vld [vmem:[#allocation5 + $0x480] ss:$40 sps:$4 sm:$0xff]  }
 0x659   :  { %5381 = vmatmul.mubr.bf16.vlgmr.msra.gmra.mrb[16].mxu1 %v9635_v43 }
 0x72c   :  { %v5382_v26 = vpop.f32.mrb[16].mxu1 }
 0x72d   :  { %v7981_v6 = vadd.f32 %v5382_v26, %v4369_v56  ;;  %v5384_v19 = vpop.f32.mrb[17].mxu1  ;;  %v9162_v26 = vld [vmem:[#allocation5 + $0x614] ss:$40 sps:$4 sm:$0xff]  }
 0x72e   :  { %v7982_v59 = vadd.f32 %v5384_v19, %v4373_v17  ;;  %v5386_v27 = vpop.f32.mrb[18].mxu1  ;;  %v9165_v19 = vld [vmem:[#allocation5 + $0x664] ss:$40 sps:$4 sm:$0xff]  }
 0x72f   :  { %v7983_v29 = vadd.f32 %v5386_v27, %v4369_v56  ;;  %v5388_v7 = vpop.f32.mrb[19].mxu1  ;;  %v5391_v32 = vmax.f32 %v7981_v6, 0.0  ;;  %v9159_v56 = vld [vmem:[#allocation5 + $0x5c4] ss:$40 sps:$4 sm:$0xff]   ;;  %v9160_v6 = vld [vmem:[#allocation5 + $0x610] ss:$40 sps:$4 sm:$0xff]  }
 0x730   :  { %v7984_v30 = vadd.f32 %v5388_v7, %v4373_v17  ;;  %v5392_v33 = vmax.f32 %v7982_v59, 0.0  ;;  %v9157_v17 = vld [vmem:[#allocation5 + $0x5c0] ss:$40 sps:$4 sm:$0xff]   ;;  %v9168_v27 = vld [vmem:[#allocation5 + $0x6b4] ss:$40 sps:$4 sm:$0xff]  }
 0x731   :  { %v5393_v8 = vmax.f32 %v7983_v29, 0.0  ;;  %v9163_v59 = vld [vmem:[#allocation5 + $0x660] ss:$40 sps:$4 sm:$0xff]   ;;  %v9171_v29 = vld [vmem:[#allocation5 + $0x704] ss:$40 sps:$4 sm:$0xff]  }
 0x732   :  { %v5394_v34 = vmax.f32 %v7984_v30, 0.0  ;;  %v9174_v7 = vld [vmem:[#allocation5 + $0x754] ss:$40 sps:$4 sm:$0xff]   ;;  %v9172_v30 = vld [vmem:[#allocation5 + $0x750] ss:$40 sps:$4 sm:$0xff]  }
 0x733   :  { %v5395_v10 = vpack.c.bf16 %v5393_v8, %v5391_v32  ;;  %v9177_v32 = vld [vmem:[#allocation5 + $0x7a4] ss:$40 sps:$4 sm:$0xff]   ;;  %v9175_v8 = vld [vmem:[#allocation5 + $0x7a0] ss:$40 sps:$4 sm:$0xff]  }
 0x734   :  { %v5396_v35 = vpack.c.bf16 %v5394_v34, %v5392_v33  ;;  %v9180_v33 = vld [vmem:[#allocation5 + $0x7f4] ss:$40 sps:$4 sm:$0xff]   ;;  %v9178_v34 = vld [vmem:[#allocation5 + $0x7f0] ss:$40 sps:$4 sm:$0xff]  }
 0x736   :  { %5557 = vmatprep.mubr.bf16.mxu0 %v5396_v35  ;;  %v9181_v35 = vld [vmem:[#allocation5 + $0x840] ss:$40 sps:$4 sm:$0xff]  }
 0x737   :  { %5558 = vmatmul.mubr.bf16.vlgmr.msra.gmra.mrb[12].mxu0 %v5395_v10  ;;  %v9183_v10 = vld [vmem:[#allocation5 + $0x844] ss:$40 sps:$4 sm:$0xff]  }
 0x738   :  { %6541 = vmatpush1.bf16.msra.mxu0 %v9103_v36  ;;  %6572 = vmatprep.mubr.bf16.mxu0 %v9607_v52  ;;  %v9121_v52 = vld [vmem:[#allocation5 + $0x200] ss:$40 sps:$4 sm:$0xff]   ;;  %v9186_v36 = vld [vmem:[#allocation5 + $0x894] ss:$40 sps:$4 sm:$0xff]  }
 0x739   :  { %6542 = vmatprep.subr.bf16.mxu0 %v9108_v37  ;;  %v9184_v37 = vld [vmem:[#allocation5 + $0x890] ss:$40 sps:$4 sm:$0xff]  }
 0x73c   :  { %6543 = vmatpush1.bf16.msra.mxu0 %v9106_v38  ;;  %v9189_v38 = vld [vmem:[#allocation5 + $0x8e4] ss:$40 sps:$4 sm:$0xff]  }
 0x73d   :  { %6544 = vmatprep.subr.bf16.mxu0 %v9111_v39  ;;  %v9187_v39 = vld [vmem:[#allocation5 + $0x8e0] ss:$40 sps:$4 sm:$0xff]  }
 0x740   :  { %6545 = vmatpush1.bf16.msra.mxu0 %v9109_v41  ;;  %v9192_v41 = vld [vmem:[#allocation5 + $0x934] ss:$40 sps:$4 sm:$0xff]  }
 0x741   :  { %6546 = vmatprep.subr.bf16.mxu0 %v9114_v42  ;;  %v9190_v42 = vld [vmem:[#allocation5 + $0x930] ss:$40 sps:$4 sm:$0xff]  }
 0x744   :  { %6547 = vmatpush1.bf16.msra.mxu0 %v9112_v45  ;;  %v9195_v45 = vld [vmem:[#allocation5 + $0x984] ss:$40 sps:$4 sm:$0xff]  }
 0x745   :  { %6548 = vmatprep.subr.bf16.mxu0 %v9117_v46  ;;  %v9193_v46 = vld [vmem:[#allocation5 + $0x980] ss:$40 sps:$4 sm:$0xff]  }
 0x748   :  { %6549 = vmatpush1.bf16.msra.mxu0 %v9115_v48  ;;  %v9198_v48 = vld [vmem:[#allocation5 + $0x9d4] ss:$40 sps:$4 sm:$0xff]  }
 0x749   :  { %6550 = vmatprep.subr.bf16.mxu0 %v9120_v49  ;;  %v9196_v49 = vld [vmem:[#allocation5 + $0x9d0] ss:$40 sps:$4 sm:$0xff]  }
 0x74c   :  { %6551 = vmatpush1.bf16.msra.mxu0 %v9118_v50  ;;  %v9201_v50 = vld [vmem:[#allocation5 + $0xa24] ss:$40 sps:$4 sm:$0xff]  }
 0x74d   :  { %6552 = vmatprep.subr.bf16.mxu0 %v9123_v51  ;;  %v9199_v51 = vld [vmem:[#allocation5 + $0xa20] ss:$40 sps:$4 sm:$0xff]  }
 0x750   :  { %6553 = vmatpush1.bf16.msra.mxu0 %v9121_v52  ;;  %v9204_v52 = vld [vmem:[#allocation5 + $0xa74] ss:$40 sps:$4 sm:$0xff]  }
 0x751   :  { %6554 = vmatprep.subr.bf16.mxu0 %v9126_v53  ;;  %v9202_v53 = vld [vmem:[#allocation5 + $0xa70] ss:$40 sps:$4 sm:$0xff]  }
 0x754   :  { %6555 = vmatpush1.bf16.msra.mxu0 %v9124_v54  ;;  %v9207_v54 = vld [vmem:[#allocation5 + $0xac4] ss:$40 sps:$4 sm:$0xff]  }
 0x755   :  { %6556 = vmatprep.subr.bf16.mxu0 %v9129_v57  ;;  %v9205_v57 = vld [vmem:[#allocation5 + $0xac0] ss:$40 sps:$4 sm:$0xff]  }
 0x758   :  { %6557 = vmatpush1.bf16.msra.mxu0 %v9127_v58  ;;  %v9210_v58 = vld [vmem:[#allocation5 + $0xb14] ss:$40 sps:$4 sm:$0xff]  }
 0x759   :  { %6558 = vmatprep.subr.bf16.mxu0 %v9132_v60  ;;  %v9208_v60 = vld [vmem:[#allocation5 + $0xb10] ss:$40 sps:$4 sm:$0xff]  }
 0x75c   :  { %6559 = vmatpush1.bf16.msra.mxu0 %v9130_v61  ;;  %v9213_v61 = vld [vmem:[#allocation5 + $0xb64] ss:$40 sps:$4 sm:$0xff]  }
 0x75d   :  { %6560 = vmatprep.subr.bf16.mxu0 %v9135_v62  ;;  %v9211_v62 = vld [vmem:[#allocation5 + $0xb60] ss:$40 sps:$4 sm:$0xff]  }
 0x760   :  { %6561 = vmatpush1.bf16.msra.mxu0 %v9133_v1  ;;  %v9216_v1 = vld [vmem:[#allocation5 + $0xbb4] ss:$40 sps:$4 sm:$0xff]  }
 0x761   :  { %6562 = vmatprep.subr.bf16.mxu0 %v9138_v2  ;;  %v9219_v2 = vld [vmem:[#allocation5 + $0xc04] ss:$40 sps:$4 sm:$0xff]  }
 0x764   :  { %6563 = vmatpush1.bf16.msra.mxu0 %v9136_v3  ;;  %v9222_v3 = vld [vmem:[#allocation5 + $0xc54] ss:$40 sps:$4 sm:$0xff]  }
 0x765   :  { %6564 = vmatprep.subr.bf16.mxu0 %v9141_v4  ;;  %v9220_v4 = vld [vmem:[#allocation5 + $0xc50] ss:$40 sps:$4 sm:$0xff]  }
 0x768   :  { %6565 = vmatpush1.bf16.msra.mxu0 %v9139_v5  ;;  %v9225_v5 = vld [vmem:[#allocation5 + $0xca4] ss:$40 sps:$4 sm:$0xff]  }
 0x769   :  { %6566 = vmatprep.subr.bf16.mxu0 %v9144_v9  ;;  %v9223_v9 = vld [vmem:[#allocation5 + $0xca0] ss:$40 sps:$4 sm:$0xff]  }
 0x76c   :  { %6567 = vmatpush1.bf16.msra.mxu0 %v9142_v11  ;;  %v9228_v11 = vld [vmem:[#allocation5 + $0xcf4] ss:$40 sps:$4 sm:$0xff]  }
 0x76d   :  { %6568 = vmatprep.subr.bf16.mxu0 %v9147_v12  ;;  %v9226_v12 = vld [vmem:[#allocation5 + $0xcf0] ss:$40 sps:$4 sm:$0xff]  }
 0x770   :  { %6569 = vmatpush1.bf16.msra.mxu0 %v9145_v13  ;;  %v9231_v13 = vld [vmem:[#allocation5 + $0xd44] ss:$40 sps:$4 sm:$0xff]  }
 0x771   :  { %6570 = vmatprep.subr.bf16.mxu0 %v9150_v18  ;;  %v9229_v18 = vld [vmem:[#allocation5 + $0xd40] ss:$40 sps:$4 sm:$0xff]  }
 0x774   :  { %6571 = vmatpush1.bf16.msra.mxu0 %v9148_v21  ;;  %v9234_v21 = vld [vmem:[#allocation5 + $0xd94] ss:$40 sps:$4 sm:$0xff]  }
 0x775   :  { %6583 = vmatprep.subr.bf16.mxu0 %v9153_v22  ;;  %v9232_v22 = vld [vmem:[#allocation5 + $0xd90] ss:$40 sps:$4 sm:$0xff]  }
 0x777   :  { %6573 = vmatmul.mubr.bf16.vlgmr.msra.gmra.mrb[16].mxu0 %v9613_v14  ;;  %v9166_v14 = vld [vmem:[#allocation5 + $0x6b0] ss:$40 sps:$4 sm:$0xff]  }
 0x778   :  { %6584 = vmatpush1.bf16.msra.mxu0 %v9151_v23  ;;  %6615 = vmatprep.mubr.bf16.mxu0 %v9619_v44  ;;  %v9169_v44 = vld [vmem:[#allocation5 + $0x700] ss:$40 sps:$4 sm:$0xff]   ;;  %v9237_v23 = vld [vmem:[#allocation5 + $0xde4] ss:$40 sps:$4 sm:$0xff]  }
 0x779   :  { %6585 = vmatprep.subr.bf16.mxu0 %v9156_v24  ;;  %v9235_v24 = vld [vmem:[#allocation5 + $0xde0] ss:$40 sps:$4 sm:$0xff]  }
 0x77c   :  { %6586 = vmatpush1.bf16.msra.mxu0 %v9154_v25  ;;  %v9240_v25 = vld [vmem:[#allocation5 + $0xe34] ss:$40 sps:$4 sm:$0xff]  }
 0x77d   :  { %6587 = vmatprep.subr.bf16.mxu0 %v9159_v56  ;;  %v9238_v56 = vld [vmem:[#allocation5 + $0xe30] ss:$40 sps:$4 sm:$0xff]  }
 0x780   :  { %6588 = vmatpush1.bf16.msra.mxu0 %v9157_v17  ;;  %v9243_v17 = vld [vmem:[#allocation5 + $0xe84] ss:$40 sps:$4 sm:$0xff]  }
 0x781   :  { %6589 = vmatprep.subr.bf16.mxu0 %v9162_v26  ;;  %v9241_v26 = vld [vmem:[#allocation5 + $0xe80] ss:$40 sps:$4 sm:$0xff]  }
 0x784   :  { %6590 = vmatpush1.bf16.msra.mxu0 %v9160_v6  ;;  %v9246_v6 = vld [vmem:[#allocation5 + $0xed4] ss:$40 sps:$4 sm:$0xff]  }
 0x785   :  { %6591 = vmatprep.subr.bf16.mxu0 %v9165_v19  ;;  %v9244_v19 = vld [vmem:[#allocation5 + $0xed0] ss:$40 sps:$4 sm:$0xff]  }
 0x788   :  { %6592 = vmatpush1.bf16.msra.mxu0 %v9163_v59  ;;  %v9249_v59 = vld [vmem:[#allocation5 + $0xf24] ss:$40 sps:$4 sm:$0xff]  }
 0x789   :  { %6593 = vmatprep.subr.bf16.mxu0 %v9168_v27  ;;  %v9247_v27 = vld [vmem:[#allocation5 + $0xf20] ss:$40 sps:$4 sm:$0xff]  }
 0x78c   :  { %6594 = vmatpush1.bf16.msra.mxu0 %v9166_v14  ;;  %v9252_v14 = vld [vmem:[#allocation5 + $0xf74] ss:$40 sps:$4 sm:$0xff]  }
 0x78d   :  { %6595 = vmatprep.subr.bf16.mxu0 %v9171_v29  ;;  %v9343_v29 = vld [vmem:[#allocation8 + $0x240] sm:$0xff]  }
 0x78e   :  { %7943 = vmatprep.subr.bf16.mxu1 %v9343_v29  ;;  %v9315_v29 = vld [vmem:[#allocation5 + $0x1604] ss:$40 sps:$4 sm:$0xff]  }
 0x790   :  { %6596 = vmatpush1.bf16.msra.mxu0 %v9169_v44  ;;  %v9344_v44 = vld [vmem:[#allocation8 + $0x200] sm:$0xff]  }
 0x791   :  { %6597 = vmatprep.subr.bf16.mxu0 %v9174_v7  ;;  %v9345_v7 = vld [vmem:[#allocation8 + $0x248] sm:$0xff]   ;;  %7944 = vmatpush3.bf16.msra.mxu1 %v9344_v44 }
 0x792   :  { %7945 = vmatprep.subr.bf16.mxu1 %v9345_v7  ;;  %v9318_v44 = vld [vmem:[#allocation5 + $0x1654] ss:$40 sps:$4 sm:$0xff]   ;;  %v9316_v7 = vld [vmem:[#allocation5 + $0x1650] ss:$40 sps:$4 sm:$0xff]  }
 0x794   :  { %6598 = vmatpush1.bf16.msra.mxu0 %v9172_v30  ;;  %v9250_v30 = vld [vmem:[#allocation5 + $0xf70] ss:$40 sps:$4 sm:$0xff]  }
 0x795   :  { %6599 = vmatprep.subr.bf16.mxu0 %v9177_v32  ;;  %v9255_v32 = vld [vmem:[#allocation5 + $0xfc4] ss:$40 sps:$4 sm:$0xff]  }
 0x798   :  { %6600 = vmatpush1.bf16.msra.mxu0 %v9175_v8  ;;  %v9346_v8 = vld [vmem:[#allocation8 + $0x208] sm:$0xff]  }
 0x799   :  { %6601 = vmatprep.subr.bf16.mxu0 %v9180_v33  ;;  %v9347_v33 = vld [vmem:[#allocation8 + $0x250] sm:$0xff]   ;;  %7946 = vmatpush3.bf16.msra.mxu1 %v9346_v8 }
 0x79a   :  { %7947 = vmatprep.subr.bf16.mxu1 %v9347_v33  ;;  %v9324_v8 = vld [vmem:[#allocation5 + $0x16f4] ss:$40 sps:$4 sm:$0xff]   ;;  %v9322_v33 = vld [vmem:[#allocation5 + $0x16f0] ss:$40 sps:$4 sm:$0xff]  }
 0x79c   :  { %6602 = vmatpush1.bf16.msra.mxu0 %v9178_v34  ;;  %v9253_v34 = vld [vmem:[#allocation5 + $0xfc0] ss:$40 sps:$4 sm:$0xff]  }
 0x79d   :  { %6603 = vmatprep.subr.bf16.mxu0 %v9183_v10  ;;  %v9258_v10 = vld [vmem:[#allocation5 + $0x1014] ss:$40 sps:$4 sm:$0xff]  }
 0x7a0   :  { %6604 = vmatpush1.bf16.msra.mxu0 %v9181_v35  ;;  %v9349_v35 = vld [vmem:[#allocation8 + $0x258] sm:$0xff]  }
 0x7a1   :  { %6605 = vmatprep.subr.bf16.mxu0 %v9186_v36  ;;  %v9256_v36 = vld [vmem:[#allocation5 + $0x1010] ss:$40 sps:$4 sm:$0xff]  }
 0x7a4   :  { %6606 = vmatpush1.bf16.msra.mxu0 %v9184_v37  ;;  %v9261_v37 = vld [vmem:[#allocation5 + $0x1064] ss:$40 sps:$4 sm:$0xff]  }
 0x7a5   :  { %6607 = vmatprep.subr.bf16.mxu0 %v9189_v38  ;;  %v9351_v38 = vld [vmem:[#allocation8 + $0x260] sm:$0xff]  }
 0x7a8   :  { %6608 = vmatpush1.bf16.msra.mxu0 %v9187_v39  ;;  %v9259_v39 = vld [vmem:[#allocation5 + $0x1060] ss:$40 sps:$4 sm:$0xff]  }
 0x7a9   :  { %6609 = vmatprep.subr.bf16.mxu0 %v9192_v41  ;;  %v9264_v41 = vld [vmem:[#allocation5 + $0x10b4] ss:$40 sps:$4 sm:$0xff]  }
 0x7ac   :  { %6610 = vmatpush1.bf16.msra.mxu0 %v9190_v42  ;;  %v9352_v42 = vld [vmem:[#allocation8 + $0x220] sm:$0xff]  }
 0x7ad   :  { %6611 = vmatprep.subr.bf16.mxu0 %v9195_v45  ;;  %v9353_v45 = vld [vmem:[#allocation8 + $0x268] sm:$0xff]  }
 0x7b0   :  { %6612 = vmatpush1.bf16.msra.mxu0 %v9193_v46  ;;  %v9262_v46 = vld [vmem:[#allocation5 + $0x10b0] ss:$40 sps:$4 sm:$0xff]  }
 0x7b1   :  { %6613 = vmatprep.subr.bf16.mxu0 %v9198_v48  ;;  %v9267_v48 = vld [vmem:[#allocation5 + $0x1104] ss:$40 sps:$4 sm:$0xff]  }
 0x7b4   :  { %6614 = vmatpush1.bf16.msra.mxu0 %v9196_v49 }
 0x7b5   :  { %6626 = vmatprep.subr.bf16.mxu0 %v9201_v50 }
 0x7b7   :  { %6616 = vmatmul.mubr.bf16.vlgmr.msra.gmra.mrb[16].mxu0 %v9625_v28  ;;  %v9214_v28 = vld [vmem:[#allocation5 + $0xbb0] ss:$40 sps:$4 sm:$0xff]  }
 0x7b8   :  { %6627 = vmatpush1.bf16.msra.mxu0 %v9199_v51  ;;  %6658 = vmatprep.mubr.bf16.mxu0 %v9610_v55  ;;  %v9217_v55 = vld [vmem:[#allocation5 + $0xc00] ss:$40 sps:$4 sm:$0xff]  }
 0x7b9   :  { %6628 = vmatprep.subr.bf16.mxu0 %v9204_v52 }
 0x7bc   :  { %6629 = vmatpush1.bf16.msra.mxu0 %v9202_v53  ;;  %v9265_v53 = vld [vmem:[#allocation5 + $0x1100] ss:$40 sps:$4 sm:$0xff]  }
 0x7bd   :  { %6630 = vmatprep.subr.bf16.mxu0 %v9207_v54 }
 0x7c0   :  { %6631 = vmatpush1.bf16.msra.mxu0 %v9205_v57  ;;  %v9270_v57 = vld [vmem:[#allocation5 + $0x1154] ss:$40 sps:$4 sm:$0xff]  }
 0x7c1   :  { %6632 = vmatprep.subr.bf16.mxu0 %v9210_v58 }
 0x7c4   :  { %6633 = vmatpush1.bf16.msra.mxu0 %v9208_v60 }
 0x7c5   :  { %6634 = vmatprep.subr.bf16.mxu0 %v9213_v61 }
 0x7c8   :  { %6635 = vmatpush1.bf16.msra.mxu0 %v9211_v62  ;;  %v9268_v62 = vld [vmem:[#allocation5 + $0x1150] ss:$40 sps:$4 sm:$0xff]  }
 0x7c9   :  { %6636 = vmatprep.subr.bf16.mxu0 %v9216_v1  ;;  %v9273_v1 = vld [vmem:[#allocation5 + $0x11a4] ss:$40 sps:$4 sm:$0xff]  }
 0x7cc   :  { %6637 = vmatpush1.bf16.msra.mxu0 %v9214_v28  ;;  %v9271_v28 = vld [vmem:[#allocation5 + $0x11a0] ss:$40 sps:$4 sm:$0xff]  }
 0x7cd   :  { %6638 = vmatprep.subr.bf16.mxu0 %v9219_v2  ;;  %v9276_v2 = vld [vmem:[#allocation5 + $0x11f4] ss:$40 sps:$4 sm:$0xff]  }
 0x7d0   :  { %6639 = vmatpush1.bf16.msra.mxu0 %v9217_v55  ;;  %v9274_v55 = vld [vmem:[#allocation5 + $0x11f0] ss:$40 sps:$4 sm:$0xff]  }
 0x7d1   :  { %6640 = vmatprep.subr.bf16.mxu0 %v9222_v3  ;;  %v9279_v3 = vld [vmem:[#allocation5 + $0x1244] ss:$40 sps:$4 sm:$0xff]  }
 0x7d4   :  { %6641 = vmatpush1.bf16.msra.mxu0 %v9220_v4  ;;  %v9277_v4 = vld [vmem:[#allocation5 + $0x1240] ss:$40 sps:$4 sm:$0xff]  }
 0x7d5   :  { %6642 = vmatprep.subr.bf16.mxu0 %v9225_v5  ;;  %v9280_v5 = vld [vmem:[#allocation5 + $0x1290] ss:$40 sps:$4 sm:$0xff]  }
 0x7d8   :  { %6643 = vmatpush1.bf16.msra.mxu0 %v9223_v9  ;;  %v9283_v9 = vld [vmem:[#allocation5 + $0x12e0] ss:$40 sps:$4 sm:$0xff]  }
 0x7d9   :  { %6644 = vmatprep.subr.bf16.mxu0 %v9228_v11  ;;  %v9288_v11 = vld [vmem:[#allocation5 + $0x1334] ss:$40 sps:$4 sm:$0xff]  }
 0x7dc   :  { %6645 = vmatpush1.bf16.msra.mxu0 %v9226_v12  ;;  %v9286_v12 = vld [vmem:[#allocation5 + $0x1330] ss:$40 sps:$4 sm:$0xff]  }
 0x7dd   :  { %6646 = vmatprep.subr.bf16.mxu0 %v9231_v13  ;;  %v9291_v13 = vld [vmem:[#allocation5 + $0x1384] ss:$40 sps:$4 sm:$0xff]  }
 0x7e0   :  { %6647 = vmatpush1.bf16.msra.mxu0 %v9229_v18  ;;  %v9289_v18 = vld [vmem:[#allocation5 + $0x1380] ss:$40 sps:$4 sm:$0xff]  }
 0x7e1   :  { %6648 = vmatprep.subr.bf16.mxu0 %v9234_v21  ;;  %v9294_v21 = vld [vmem:[#allocation5 + $0x13d4] ss:$40 sps:$4 sm:$0xff]  }
 0x7e4   :  { %6649 = vmatpush1.bf16.msra.mxu0 %v9232_v22  ;;  %v9292_v22 = vld [vmem:[#allocation5 + $0x13d0] ss:$40 sps:$4 sm:$0xff]  }
 0x7e5   :  { %6650 = vmatprep.subr.bf16.mxu0 %v9237_v23  ;;  %v9297_v23 = vld [vmem:[#allocation5 + $0x1424] ss:$40 sps:$4 sm:$0xff]  }
 0x7e8   :  { %6651 = vmatpush1.bf16.msra.mxu0 %v9235_v24  ;;  %v9295_v24 = vld [vmem:[#allocation5 + $0x1420] ss:$40 sps:$4 sm:$0xff]  }
 0x7e9   :  { %6652 = vmatprep.subr.bf16.mxu0 %v9240_v25  ;;  %v9300_v25 = vld [vmem:[#allocation5 + $0x1474] ss:$40 sps:$4 sm:$0xff]  }
 0x7ec   :  { %6653 = vmatpush1.bf16.msra.mxu0 %v9238_v56  ;;  %v9298_v56 = vld [vmem:[#allocation5 + $0x1470] ss:$40 sps:$4 sm:$0xff]  }
 0x7ed   :  { %6654 = vmatprep.subr.bf16.mxu0 %v9243_v17  ;;  %v9303_v17 = vld [vmem:[#allocation5 + $0x14c4] ss:$40 sps:$4 sm:$0xff]  }
 0x7f0   :  { %6655 = vmatpush1.bf16.msra.mxu0 %v9241_v26  ;;  %v9301_v26 = vld [vmem:[#allocation5 + $0x14c0] ss:$40 sps:$4 sm:$0xff]  }
 0x7f1   :  { %6656 = vmatprep.subr.bf16.mxu0 %v9246_v6  ;;  %v9306_v6 = vld [vmem:[#allocation5 + $0x1514] ss:$40 sps:$4 sm:$0xff]  }
 0x7f4   :  { %6657 = vmatpush1.bf16.msra.mxu0 %v9244_v19  ;;  %v9304_v19 = vld [vmem:[#allocation5 + $0x1510] ss:$40 sps:$4 sm:$0xff]  }
 0x7f5   :  { %6669 = vmatprep.subr.bf16.mxu0 %v9249_v59  ;;  %v9309_v59 = vld [vmem:[#allocation5 + $0x1564] ss:$40 sps:$4 sm:$0xff]  }
 0x7f7   :  { %6659 = vmatmul.mubr.bf16.vlgmr.msra.gmra.mrb[16].mxu0 %v9615_v15  ;;  %v9348_v15 = vld [vmem:[#allocation8 + $0x210] sm:$0xff]  }
 0x7f8   :  { %6670 = vmatpush1.bf16.msra.mxu0 %v9247_v27  ;;  %6701 = vmatprep.mubr.bf16.mxu0 %v9621_v47  ;;  %v9350_v47 = vld [vmem:[#allocation8 + $0x218] sm:$0xff]  }
 0x7f9   :  { %6671 = vmatprep.subr.bf16.mxu0 %v9252_v14  ;;  %7948 = vmatpush3.bf16.msra.mxu1 %v9348_v15  ;;  %v9307_v27 = vld [vmem:[#allocation5 + $0x1560] ss:$40 sps:$4 sm:$0xff]   ;;  %v9312_v14 = vld [vmem:[#allocation5 + $0x15b4] ss:$40 sps:$4 sm:$0xff]  }
 0x7fa   :  { %7949 = vmatprep.subr.bf16.mxu1 %v9349_v35  ;;  %v9330_v15 = vld [vmem:[#allocation5 + $0x1794] ss:$40 sps:$4 sm:$0xff]   ;;  %v9328_v35 = vld [vmem:[#allocation5 + $0x1790] ss:$40 sps:$4 sm:$0xff]  }
 0x7fc   :  { %6672 = vmatpush1.bf16.msra.mxu0 %v9250_v30  ;;  %v9321_v30 = vld [vmem:[#allocation5 + $0x16a4] ss:$40 sps:$4 sm:$0xff]  }
 0x7fd   :  { %6673 = vmatprep.subr.bf16.mxu0 %v9255_v32  ;;  %7950 = vmatpush3.bf16.msra.mxu1 %v9350_v47  ;;  %v9319_v32 = vld [vmem:[#allocation5 + $0x16a0] ss:$40 sps:$4 sm:$0xff]   ;;  %v9336_v47 = vld [vmem:[#allocation5 + $0x1834] ss:$40 sps:$4 sm:$0xff]  }
 0x7fe   :  { %7951 = vmatprep.subr.bf16.mxu1 %v9351_v38  ;;  %v9334_v38 = vld [vmem:[#allocation5 + $0x1830] ss:$40 sps:$4 sm:$0xff]  }
 0x800   :  { %6674 = vmatpush1.bf16.msra.mxu0 %v9253_v34  ;;  %v9327_v34 = vld [vmem:[#allocation5 + $0x1744] ss:$40 sps:$4 sm:$0xff]  }
 0x801   :  { %6675 = vmatprep.subr.bf16.mxu0 %v9258_v10  ;;  %7952 = vmatpush3.bf16.msra.mxu1 %v9352_v42  ;;  %v9325_v10 = vld [vmem:[#allocation5 + $0x1740] ss:$40 sps:$4 sm:$0xff]   ;;  %v9342_v42 = vld [vmem:[#allocation5 + $0x18d4] ss:$40 sps:$4 sm:$0xff]  }
 0x802   :  { %7953 = vmatprep.subr.bf16.mxu1 %v9353_v45  ;;  %v9340_v45 = vld [vmem:[#allocation5 + $0x18d0] ss:$40 sps:$4 sm:$0xff]  }
 0x804   :  { %6676 = vmatpush1.bf16.msra.mxu0 %v9256_v36  ;;  %v9333_v36 = vld [vmem:[#allocation5 + $0x17e4] ss:$40 sps:$4 sm:$0xff]  }
 0x805   :  { %6677 = vmatprep.subr.bf16.mxu0 %v9261_v37  ;;  %v9331_v37 = vld [vmem:[#allocation5 + $0x17e0] ss:$40 sps:$4 sm:$0xff]  }
 0x808   :  { %6678 = vmatpush1.bf16.msra.mxu0 %v9259_v39  ;;  %v9339_v39 = vld [vmem:[#allocation5 + $0x1884] ss:$40 sps:$4 sm:$0xff]  }
 0x809   :  { %6679 = vmatprep.subr.bf16.mxu0 %v9264_v41  ;;  %v9337_v41 = vld [vmem:[#allocation5 + $0x1880] ss:$40 sps:$4 sm:$0xff]  }
 0x80a   :  { %v7937_v49 = vpop.f32.mrb[12].mxu0 }
 0x80b   :  { %v7938_v50 = vpop.f32.mrb[13].mxu0 }
 0x80c   :  { %v7939_v51 = vadd.f32 %v7938_v50, %v7937_v49  ;;  %6680 = vmatpush1.bf16.msra.mxu0 %v9262_v46  ;;  %v7940_v52 = vpop.f32.mrb[14].mxu0  ;;  %v9354_v46 = vld [vmem:[#allocation8 + $0x228] sm:$0xff]   ;;  %v9356_v49 = vld [vmem:[#allocation8 + $0x230] sm:$0xff]   ;;  %v9357_v50 = vld [vmem:[#allocation8 + $0x278] sm:$0xff]  }
 0x80d   :  { %v7941_v54 = vpop.f32.mrb[15].mxu0  ;;  %6681 = vmatprep.subr.bf16.mxu0 %v9267_v48  ;;  %7954 = vmatpush3.bf16.msra.mxu1 %v9354_v46  ;;  %v9355_v48 = vld [vmem:[#allocation8 + $0x270] sm:$0xff]  }
 0x80e   :  { %v9718_v58 = vadd.f32 %v7939_v51, %v9700_v16  ;;  %v7942_v60 = vadd.f32 %v7941_v54, %v7940_v52  ;;  %v9282_v16 = vld [vmem:[#allocation5 + $0x1294] ss:$40 sps:$4 sm:$0xff]   ;;  %7955 = vmatprep.subr.bf16.mxu1 %v9355_v48  ;;  %v9358_v51 = vld [vmem:[#allocation8 + $0x238] sm:$0xff]  }
 0x80f   :  { %v5728_v52 = vld [vmem:[#allocation7 + $0x8] sm:$0x3] }
 0x810   :  { %v9721_v61 = vadd.f32 %v7942_v60, %v9703_v20  ;;  %6682 = vmatpush1.bf16.msra.mxu0 %v9265_v53  ;;  %v9285_v20 = vld [vmem:[#allocation5 + $0x12e4] ss:$40 sps:$4 sm:$0xff]   ;;  %v5733_v53 = vrot.slane %v5728_v52, %v9654_v63  ;;  %v5737_v54 = vrot.slane %v5728_v52, %v9656_v0 }
 0x811   :  { %6683 = vmatprep.subr.bf16.mxu0 %v9270_v57  ;;  %7956 = vmatpush3.bf16.msra.mxu1 %v9356_v49 }
 0x812   :  { %7957 = vmatprep.subr.bf16.mxu1 %v9357_v50 }
 0x814   :  { %6684 = vmatpush1.bf16.msra.mxu0 %v9268_v62 }
 0x815   :  { %6685 = vmatprep.subr.bf16.mxu0 %v9273_v1  ;;  %7958 = vmatpush3.bf16.msra.mxu1 %v9358_v51 }
 0x818   :  { %6686 = vmatpush1.bf16.msra.mxu0 %v9271_v28 }
 0x819   :  { %6687 = vmatprep.subr.bf16.mxu0 %v9276_v2 }
 0x81c   :  { %6688 = vmatpush1.bf16.msra.mxu0 %v9274_v55 }
 0x81d   :  { %6689 = vmatprep.subr.bf16.mxu0 %v9279_v3 }
 0x820   :  { %6690 = vmatpush1.bf16.msra.mxu0 %v9277_v4 }
 0x821   :  { %6691 = vmatprep.subr.bf16.mxu0 %v9282_v16 }
 0x824   :  { %6692 = vmatpush1.bf16.msra.mxu0 %v9280_v5 }
 0x825   :  { %6693 = vmatprep.subr.bf16.mxu0 %v9285_v20 }
 0x828   :  { %6694 = vmatpush1.bf16.msra.mxu0 %v9283_v9 }
 0x829   :  { %6695 = vmatprep.subr.bf16.mxu0 %v9288_v11 }
 0x82c   :  { %6696 = vmatpush1.bf16.msra.mxu0 %v9286_v12 }
 0x82d   :  { %6697 = vmatprep.subr.bf16.mxu0 %v9291_v13 }
 0x830   :  { %6698 = vmatpush1.bf16.msra.mxu0 %v9289_v18  ;;  %v7854_v18 = vld [vmem:[#allocation10] ss:$0 sm:$0xff] }
 0x831   :  { %6699 = vmatprep.subr.bf16.mxu0 %v9294_v21 }
 0x834   :  { %6700 = vmatpush1.bf16.msra.mxu0 %v9292_v22 }
 0x835   :  { %6712 = vmatprep.subr.bf16.mxu0 %v9297_v23 }
 0x837   :  { %6702 = vmatmul.mubr.bf16.vlgmr.msra.gmra.mrb[16].mxu0 %v9627_v31  ;;  %v9310_v31 = vld [vmem:[#allocation5 + $0x15b0] ss:$40 sps:$4 sm:$0xff]  }
 0x838   :  { %6713 = vmatpush1.bf16.msra.mxu0 %v9295_v24  ;;  %6744 = vmatprep.mubr.bf16.mxu0 %v9631_v40  ;;  %v9313_v40 = vld [vmem:[#allocation5 + $0x1600] ss:$40 sps:$4 sm:$0xff]  }
 0x839   :  { %6714 = vmatprep.subr.bf16.mxu0 %v9300_v25 }
 0x83c   :  { %6715 = vmatpush1.bf16.msra.mxu0 %v9298_v56 }
 0x83d   :  { %6716 = vmatprep.subr.bf16.mxu0 %v9303_v17 }
 0x840   :  { %6717 = vmatpush1.bf16.msra.mxu0 %v9301_v26 }
 0x841   :  { %6718 = vmatprep.subr.bf16.mxu0 %v9306_v6 }
 0x844   :  { %6719 = vmatpush1.bf16.msra.mxu0 %v9304_v19 }
 0x845   :  { %6720 = vmatprep.subr.bf16.mxu0 %v9309_v59 }
 0x848   :  { %6721 = vmatpush1.bf16.msra.mxu0 %v9307_v27 }
 0x849   :  { %6722 = vmatprep.subr.bf16.mxu0 %v9312_v14 }
 0x84c   :  { %6723 = vmatpush1.bf16.msra.mxu0 %v9310_v31 }
 0x84d   :  { %6724 = vmatprep.subr.bf16.mxu0 %v9315_v29 }
 0x850   :  { %6725 = vmatpush1.bf16.msra.mxu0 %v9313_v40 }
 0x851   :  { %6726 = vmatprep.subr.bf16.mxu0 %v9318_v44 }
 0x854   :  { %6727 = vmatpush1.bf16.msra.mxu0 %v9316_v7 }
 0x855   :  { %6728 = vmatprep.subr.bf16.mxu0 %v9321_v30 }
 0x858   :  { %6729 = vmatpush1.bf16.msra.mxu0 %v9319_v32 }
 0x859   :  { %6730 = vmatprep.subr.bf16.mxu0 %v9324_v8 }
 0x85c   :  { %6731 = vmatpush1.bf16.msra.mxu0 %v9322_v33 }
 0x85d   :  { %6732 = vmatprep.subr.bf16.mxu0 %v9327_v34 }
 0x860   :  { %6733 = vmatpush1.bf16.msra.mxu0 %v9325_v10 }
 0x861   :  { %6734 = vmatprep.subr.bf16.mxu0 %v9330_v15 }
 0x864   :  { %6735 = vmatpush1.bf16.msra.mxu0 %v9328_v35 }
 0x865   :  { %6736 = vmatprep.subr.bf16.mxu0 %v9333_v36 }
 0x868   :  { %6737 = vmatpush1.bf16.msra.mxu0 %v9331_v37 }
 0x869   :  { %6738 = vmatprep.subr.bf16.mxu0 %v9336_v47 }
 0x86c   :  { %6739 = vmatpush1.bf16.msra.mxu0 %v9334_v38 }
 0x86d   :  { %6740 = vmatprep.subr.bf16.mxu0 %v9339_v39 }
 0x870   :  { %6741 = vmatpush1.bf16.msra.mxu0 %v9337_v41 }
 0x871   :  { %6742 = vmatprep.subr.bf16.mxu0 %v9342_v42 }
 0x874   :  { %6743 = vmatpush1.bf16.msra.mxu0 %v9340_v45 }
 0x877   :  { %6745 = vmatmul.mubr.bf16.vlgmr.msra.gmra.mrb[16].mxu0 %v9635_v43 }
 0x94a   :  { %v6746_v57 = vpop.f32.mrb[16].mxu0 }
 0x94b   :  { %v7985_v60 = vadd.f32 %v6746_v57, %v5733_v53  ;;  %v6748_v62 = vpop.f32.mrb[17].mxu0 }
 0x94c   :  { %v7986_v1 = vadd.f32 %v6748_v62, %v5737_v54  ;;  %v6750_v43 = vpop.f32.mrb[18].mxu0 }
 0x94d   :  { %v7987_v28 = vadd.f32 %v6750_v43, %v5733_v53  ;;  %v6752_v2 = vpop.f32.mrb[19].mxu0  ;;  %v6755_v3 = vmax.f32 %v7985_v60, 0.0 }
 0x94e   :  { %v7988_v55 = vadd.f32 %v6752_v2, %v5737_v54  ;;  %v6756_v16 = vmax.f32 %v7986_v1, 0.0 }
 0x94f   :  { %v6757_v4 = vmax.f32 %v7987_v28, 0.0 }
 0x950   :  { %v6758_v5 = vmax.f32 %v7988_v55, 0.0 }
 0x951   :  { %v6759_v20 = vpack.c.bf16 %v6757_v4, %v6755_v3 }
 0x952   :  { %v6760_v9 = vpack.c.bf16 %v6758_v5, %v6756_v16 }
 0x954   :  { %6921 = vmatprep.mubr.bf16.mxu1 %v6760_v9 }
 0x955   :  { %6922 = vmatmul.mubr.bf16.vlgmr.msra.gmra.mrb[20].mxu1 %v6759_v20 }
 0xa28   :  { %v7959_v11 = vpop.f32.mrb[20].mxu1 }
 0xa29   :  { %v7960_v63 = vpop.f32.mrb[21].mxu1 }
 0xa2a   :  { %v7961_v12 = vadd.f32 %v7960_v63, %v7959_v11  ;;  %v7962_v0 = vpop.f32.mrb[22].mxu1 }
 0xa2b   :  { %v7963_v13 = vpop.f32.mrb[23].mxu1 }
 0xa2c   :  { %v6930_v21 = vadd.f32 %v7961_v12, %v9718_v58  ;;  %v7964_v22 = vadd.f32 %v7963_v13, %v7962_v0 }
 0xa2e   :  { %v6931_v23 = vadd.f32 %v7964_v22, %v9721_v61  ;;  %v6939_v24 = vadd.f32 %v7854_v18, %v6930_v21 }
 0xa30   :  { %v6941_v25 = vmul.f32 %v6939_v24, %v6939_v24  ;;  %v6940_v56 = vadd.f32 %v7854_v18, %v6931_v23 }
 0xa32   :  { %6943 = vadd.xlane.f32.xlu0 %v6941_v25  ;;  %v6942_v17 = vmul.f32 %v6940_v56, %v6940_v56 }
 0xa36   :  { %6945 = vadd.xlane.f32.xlu0 %v6942_v17 }
 0xabf   :  { %v6944_v26 = vpop.xlane.xlu0 %6943 }
 0xac0   :  { %v6947_v6 = vmax.f32 %v6944_v26, 1e-24 }
 0xac2   :  { %9359 = vrsqrt.f32 %v6947_v6 }
 0xac3   :  { %v6946_v19 = vpop.xlane.xlu0 %6945 }
 0xac4   :  { %v6948_v59 = vmax.f32 %v6946_v19, 1e-24 }
 0xac6   :  { %9361 = vrsqrt.f32 %v6948_v59 }
 0xacc   :  { %v9360_v27 = vpop.eup %9359 }
 0xacd   :  { %v6951_v14 = vmul.f32 %v9360_v27, %v6939_v24 }
 0xacf   :  { %6953 = vst [vmem:[#allocation11] sm:$0xff] %v6951_v14 }
 0xad0   :  { %v9362_v58 = vpop.eup %9361 }
 0xad1   :  { %v6952_v61 = vmul.f32 %v9362_v58, %v6940_v56 }
 0xad3   :  { %6954 = vst [vmem:[#allocation11 + $0x8] sm:$0xff] %v6952_v61 }
 0xad4   :  { %9484 = shalt.err (!%p9481_p2)
}
 0xad5   :  { %s9485_s8 = scalar_lea.hbm %s9747_s5, 256 }
 0xad6   :  { %p9486_p3 = scmp.ne.s32.totalorder %s9747_s5, %s9485_s8  ;;  %p9489_p4 = scmp.lt.u32.totalorder %s9485_s8, %s9747_s5 }
 0xad8   :  { %p9491_p5 = pnand %p9489_p4, %p9486_p3 }
 0xada   :  { %9494 = shalt.err (!%p9491_p5)
}
 0xadb   :  { %s9515_s13 = smov 128   ;;  %s9516_s14 = smov 8  }
 0xadc   :  { %6966 = dma.vmem_to_hbm [thread:$0]  %s6961_s3, 256, %s9747_s5, [#allocation4], %s9515_s13, %s9515_s13, %s9516_s14  }
 0xadd   :  { %9501 = dma.done.wait [#allocation4], 256  }
 0xade   :  { %9502 = vsyncadd [#allocation4], 4294967040 }
 0xadf   :  { %6970 = vsyncpa [#allocation3], 1 }
 0xae0   :  { %6971 = vsyncpa [#allocation6], 1 }
 0xae1   :  { %6972 = vsyncpa [#allocation9], 1 }
 0xae2   :  { %6973 = vsyncpa [#allocation4], 1 }

</bundles_post_ra>
